<compile_context>
chip_gen: v7x
topology: tpu7x:2x2x1
jax: 0.10.0
libtpu: 0.0.40
codegen_flags: <defaults>
</compile_context>

<pallas_src>
import jax
import jax.numpy as jnp
from jax import lax
from jax.experimental import pallas as pl
from jax.experimental.pallas import tpu as pltpu


# ------------------------------ helpers ---------------------------------------------------
def _round_up(x, m):
    return ((x + m - 1) // m) * m


def _pad_rows(a, rows):
    return jnp.pad(a, ((0, rows - a.shape[0]), (0, 0)))


def _pad_gate_cols(a, H, Hp):
    """Pad each of the 4 gate blocks (i|f|g|o) along the last axis from H to Hp columns."""
    if Hp == H:
        return a
    pad = [(0, 0)] * (a.ndim - 1) + [(0, Hp - H)]
    parts = [jnp.pad(a[..., k * H:(k + 1) * H], pad) for k in range(4)]
    return jnp.concatenate(parts, axis=-1)


# ------------------------------ fused LSTM + fc kernel -------------------------------------
def _make_fused_kernel(n_layers, T, Hp, unroll):
    G = 4 * Hp

    def kernel(*refs):
        it = iter(refs)
        gx0_ref = next(it)                          # (T, BB, 4Hp) f32: layer-0 x-proj (+bias)
        whh_refs, wih_refs, b_refs = [next(it)], [None], [None]
        for _ in range(n_layers - 1):
            wih_refs.append(next(it))               # (Hp, 4Hp) bf16
            b_refs.append(next(it))                 # (1, 4Hp)  f32
            whh_refs.append(next(it))               # (Hp, 4Hp) bf16
        fc_w_ref = next(it)                         # (Hp, Op) f32
        fc_b_ref = next(it)                         # (1, Op)  f32
        out_ref = next(it)                          # (BB, Op) f32
        hseq_scr = next(it)                         # (T, BB, Hp)  bf16 scratch (next layer's x)
        gx_scr = next(it)                           # (T, BB, 4Hp) f32  scratch (hoisted gates)

        BB = out_ref.shape[0]

        def run_layer(gx_ref, whh_ref, write_hseq):
            whh = whh_ref[...]                      # hoist the recurrent weight load

            def step(t, carry):
                h, c = carry                                              # (BB, Hp) f32
                gates = gx_ref[t] + jnp.dot(h.astype(jnp.bfloat16), whh,
                                            preferred_element_type=jnp.float32)
                i_g = jax.nn.sigmoid(gates[:, 0 * Hp:1 * Hp])             # 128-lane aligned slices
                f_g = jax.nn.sigmoid(gates[:, 1 * Hp:2 * Hp])
                g_g = jnp.tanh(gates[:, 2 * Hp:3 * Hp])
                o_g = jax.nn.sigmoid(gates[:, 3 * Hp:4 * Hp])
                c_new = f_g * c + i_g * g_g
                h_new = o_g * jnp.tanh(c_new)
                if write_hseq:
                    hseq_scr[t] = h_new.astype(jnp.bfloat16)              # feed next layer
                return h_new, c_new

            init = (jnp.zeros((BB, Hp), jnp.float32),
                    jnp.zeros((BB, Hp), jnp.float32))
            h_last, _ = lax.fori_loop(0, T, step, init, unroll=unroll)
            return h_last

        h_last = run_layer(gx0_ref, whh_refs[0], write_hseq=(n_layers > 1))
        for l in range(1, n_layers):
            # Hoisted input projection for layer l: ONE (T*BB, Hp)x(Hp, 4Hp) MXU matmul.
            hs = hseq_scr[...].reshape(T * BB, Hp)                        # bf16, no cast needed
            gx = jnp.dot(hs, wih_refs[l][...], preferred_element_type=jnp.float32)
            gx_scr[...] = gx.reshape(T, BB, G) + b_refs[l][...]
            h_last = run_layer(gx_scr, whh_refs[l], write_hseq=(l < n_layers - 1))

        # TODO(synk): nn.Dropout / inter-layer LSTM dropout are identity in eval mode (not for training).
        logits = jnp.dot(h_last, fc_w_ref[...], preferred_element_type=jnp.float32) + fc_b_ref[...]
        out_ref[...] = jax.nn.sigmoid(logits)

    return kernel


# ------------------------------ forward pass ------------------------------------------------
def sentiment_lstm_forward(tokens, params):
    """tokens: (B, T) int32 token ids. Returns (B, output_dim) sigmoid scores."""
    layers = params["lstm_layers"]
    n_layers = len(layers)
    B, T = tokens.shape
    H = layers[0]["w_hh"].shape[0]
    O = params["fc_w"].shape[1]

    Hp = _round_up(H, 128)            # lane-align hidden dim / each gate block
    Op = _round_up(O, 128)            # lane-dense output store
    Bp = _round_up(B, 8)              # sublane-align batch
    BB = Bp if Bp <= 64 else 8        # batch block (the "parallel" grid axis)

    # ---- glue (plain JAX): embedding gather + hoisted layer-0 input projection (+ bias) ----
    x = jnp.take(params["embedding"], tokens, axis=0)                    # (B, T, E)
    x = jnp.transpose(x, (1, 0, 2))                                      # (T, B, E) time-major
    gx0 = jnp.einsum("tbe,eg->tbg", x, layers[0]["w_ih"]) + layers[0]["b"]   # (T, B, 4H)
    gx0 = _pad_gate_cols(gx0, H, Hp)                                     # (T, B, 4Hp)
    gx0 = jnp.pad(gx0, ((0, 0), (0, Bp - B), (0, 0)))                    # (T, Bp, 4Hp)

    # ---- pad / cast weights for the fused kernel --------------------------------------------
    def prep_w(w):   # (in_dim, 4H) -> (Hp, 4Hp) bf16, gate blocks lane-aligned, zero padded
        return _pad_gate_cols(_pad_rows(w, Hp), H, Hp).astype(jnp.bfloat16)

    w_spec = pl.BlockSpec((Hp, 4 * Hp), lambda b: (0, 0))
    b_spec = pl.BlockSpec((1, 4 * Hp), lambda b: (0, 0))

    inputs = [gx0, prep_w(layers[0]["w_hh"])]
    in_specs = [pl.BlockSpec((T, BB, 4 * Hp), lambda b: (0, b, 0)), w_spec]
    for layer in layers[1:]:
        inputs += [prep_w(layer["w_ih"]), _pad_gate_cols(layer["b"], H, Hp), prep_w(layer["w_hh"])]
        in_specs += [w_spec, b_spec, w_spec]

    fc_w = jnp.pad(params["fc_w"], ((0, Hp - H), (0, Op - O)))           # (Hp, Op)
    fc_b = jnp.pad(params["fc_b"], ((0, 0), (0, Op - O)))                # (1, Op)
    inputs += [fc_w, fc_b]
    in_specs += [pl.BlockSpec((Hp, Op), lambda b: (0, 0)),
                 pl.BlockSpec((1, Op), lambda b: (0, 0))]

    kernel = _make_fused_kernel(n_layers, T, Hp, unroll=(True if T <= 32 else 8))

    out = pl.pallas_call(
        kernel,
        out_shape=jax.ShapeDtypeStruct((Bp, Op), jnp.float32),
        grid=(Bp // BB,),
        in_specs=in_specs,
        out_specs=pl.BlockSpec((BB, Op), lambda b: (b, 0)),
        scratch_shapes=[
            pltpu.VMEM((T, BB, Hp), jnp.bfloat16),       # hidden sequence (input to next layer)
            pltpu.VMEM((T, BB, 4 * Hp), jnp.float32),    # hoisted gate projections, layers >= 1
        ],
        compiler_params=pltpu.CompilerParams(
            dimension_semantics=("parallel",),           # batch blocks shard across v7x's 2 TCs
            vmem_limit_bytes=32 * 1024 * 1024,
        ),
    )(*inputs)

    return out[:B, :O]


# ------------------------------ parameter init ----------------------------------------------
def init_params(key, vocab_size, embedding_dim, hidden_dim, output_dim, n_layers):
    keys = jax.random.split(key, 2 + 4 * n_layers + 2)
    ki = iter(keys)
    k_lstm = 1.0 / jnp.sqrt(hidden_dim)

    params = {
        "embedding": jax.random.normal(next(ki), (vocab_size, embedding_dim), jnp.float32),
        "lstm_layers": [],
    }
    in_dim = embedding_dim
    for _ in range(n_layers):
        w_ih = jax.random.uniform(next(ki), (in_dim, 4 * hidden_dim), jnp.float32, -k_lstm, k_lstm)
        w_hh = jax.random.uniform(next(ki), (hidden_dim, 4 * hidden_dim), jnp.float32, -k_lstm, k_lstm)
        b_ih = jax.random.uniform(next(ki), (1, 4 * hidden_dim), jnp.float32, -k_lstm, k_lstm)
        b_hh = jax.random.uniform(next(ki), (1, 4 * hidden_dim), jnp.float32, -k_lstm, k_lstm)
        params["lstm_layers"].append({"w_ih": w_ih, "w_hh": w_hh, "b": b_ih + b_hh})
        in_dim = hidden_dim

    k_fc = 1.0 / jnp.sqrt(hidden_dim)
    params["fc_w"] = jax.random.uniform(next(ki), (hidden_dim, output_dim), jnp.float32, -k_fc, k_fc)
    params["fc_b"] = jax.random.uniform(next(ki), (1, output_dim), jnp.float32, -k_fc, k_fc)
    return params


if __name__ == "__main__":
    # Small, deterministic config consistent with the module's forward.
    vocab_size = 50
    embedding_dim = 32
    hidden_dim = 32
    output_dim = 1
    n_layers = 2
    batch = 2
    seq_len = 8

    key = jax.random.PRNGKey(0)
    k_param, k_tok = jax.random.split(key)

    params = init_params(k_param, vocab_size, embedding_dim, hidden_dim, output_dim, n_layers)
    tokens = jax.random.randint(k_tok, (batch, seq_len), 0, vocab_size, dtype=jnp.int32)

    out = jax.jit(sentiment_lstm_forward)(tokens, params)
    out = jax.block_until_ready(out)

    assert out.shape == (batch, output_dim)
    assert bool(jnp.all((out >= 0.0) & (out <= 1.0)))
    print("KERNEL_OK")
</pallas_src>

<mosaic_0001>
module attributes {stable_mosaic.version = 11 : i64} {
  func.func @kernel(%arg0: i32, %arg1: memref<8x8x512xf32, #tpu.memory_space<vmem>>, %arg2: memref<128x512xbf16, #tpu.memory_space<vmem>>, %arg3: memref<128x512xbf16, #tpu.memory_space<vmem>>, %arg4: memref<1x512xf32, #tpu.memory_space<vmem>>, %arg5: memref<128x512xbf16, #tpu.memory_space<vmem>>, %arg6: memref<128x128xf32, #tpu.memory_space<vmem>>, %arg7: memref<1x128xf32, #tpu.memory_space<vmem>>, %arg8: memref<8x128xf32, #tpu.memory_space<vmem>>, %arg9: memref<8x8x128xbf16, #tpu.memory_space<vmem>>, %arg10: memref<8x8x512xf32, #tpu.memory_space<vmem>>) attributes {dimension_semantics = [#tpu.dimension_semantics<parallel>], iteration_bounds = array<i64: 1>, scalar_prefetch = 0 : i64, scratch_operands = 2 : i64, tpu.core_type = #tpu.core_type<tc>, window_params = [{transform_indices = @transform_0, window_bounds = array<i64: 8, 8, 512>}, {pipeline_mode = #tpu.pipeline_mode<synchronous>, transform_indices = @transform_1, window_bounds = array<i64: 128, 512>}, {pipeline_mode = #tpu.pipeline_mode<synchronous>, transform_indices = @transform_2, window_bounds = array<i64: 128, 512>}, {pipeline_mode = #tpu.pipeline_mode<synchronous>, transform_indices = @transform_3, window_bounds = array<i64: 1, 512>}, {pipeline_mode = #tpu.pipeline_mode<synchronous>, transform_indices = @transform_4, window_bounds = array<i64: 128, 512>}, {pipeline_mode = #tpu.pipeline_mode<synchronous>, transform_indices = @transform_5, window_bounds = array<i64: 128, 128>}, {pipeline_mode = #tpu.pipeline_mode<synchronous>, transform_indices = @transform_6, window_bounds = array<i64: 1, 128>}, {transform_indices = @transform_7, window_bounds = array<i64: 8, 128>}]} {
    %c0 = arith.constant 0 : index
    %c0_0 = arith.constant 0 : index
    %0 = vector.load %arg2[%c0, %c0_0] : memref<128x512xbf16, #tpu.memory_space<vmem>>, vector<128x512xbf16>
    %cst = arith.constant 0.000000e+00 : f32
    %1 = vector.broadcast %cst : f32 to vector<8x128xf32>
    %cst_1 = arith.constant 0.000000e+00 : f32
    %2 = vector.broadcast %cst_1 : f32 to vector<8x128xf32>
    %c0_i32 = arith.constant 0 : i32
    %3 = arith.index_cast %c0_i32 : i32 to index
    %c0_2 = arith.constant 0 : index
    %c0_3 = arith.constant 0 : index
    %4 = vector.load %arg1[%3, %c0_2, %c0_3] : memref<8x8x512xf32, #tpu.memory_space<vmem>>, vector<1x8x512xf32>
    %5 = vector.shape_cast %4 : vector<1x8x512xf32> to vector<8x512xf32>
    %6 = arith.truncf %1 : vector<8x128xf32> to vector<8x128xbf16>
    %cst_4 = arith.constant dense<0.000000e+00> : vector<8x512xf32>
    %7 = tpu.matmul %6, %0, %cst_4 {dimension_numbers = #tpu.dot_dimension_numbers<[1], [0], [0], [1], [0, 0, 1, 1], [], []>} : vector<8x128xbf16>, vector<128x512xbf16>, vector<8x512xf32> -> vector<8x512xf32>
    %8 = arith.addf %5, %7 : vector<8x512xf32>
    %9 = vector.extract_strided_slice %8 {offsets = [0, 0], sizes = [8, 128], strides = [1, 1]} : vector<8x512xf32> to vector<8x128xf32>
    %10 = arith.negf %9 : vector<8x128xf32>
    %11 = math.exp %10 : vector<8x128xf32>
    %cst_5 = arith.constant 1.000000e+00 : f32
    %12 = vector.broadcast %cst_5 : f32 to vector<8x128xf32>
    %13 = arith.addf %12, %11 : vector<8x128xf32>
    %14 = arith.divf %12, %13 : vector<8x128xf32>
    %15 = vector.extract_strided_slice %8 {offsets = [0, 128], sizes = [8, 128], strides = [1, 1]} : vector<8x512xf32> to vector<8x128xf32>
    %16 = arith.negf %15 : vector<8x128xf32>
    %17 = math.exp %16 : vector<8x128xf32>
    %cst_6 = arith.constant 1.000000e+00 : f32
    %18 = vector.broadcast %cst_6 : f32 to vector<8x128xf32>
    %19 = arith.addf %18, %17 : vector<8x128xf32>
    %20 = arith.divf %18, %19 : vector<8x128xf32>
    %21 = vector.extract_strided_slice %8 {offsets = [0, 256], sizes = [8, 128], strides = [1, 1]} : vector<8x512xf32> to vector<8x128xf32>
    %22 = math.tanh %21 : vector<8x128xf32>
    %23 = vector.extract_strided_slice %8 {offsets = [0, 384], sizes = [8, 128], strides = [1, 1]} : vector<8x512xf32> to vector<8x128xf32>
    %24 = arith.negf %23 : vector<8x128xf32>
    %25 = math.exp %24 : vector<8x128xf32>
    %cst_7 = arith.constant 1.000000e+00 : f32
    %26 = vector.broadcast %cst_7 : f32 to vector<8x128xf32>
    %27 = arith.addf %26, %25 : vector<8x128xf32>
    %28 = arith.divf %26, %27 : vector<8x128xf32>
    %29 = arith.mulf %20, %2 : vector<8x128xf32>
    %30 = arith.mulf %14, %22 : vector<8x128xf32>
    %31 = arith.addf %29, %30 : vector<8x128xf32>
    %32 = math.tanh %31 : vector<8x128xf32>
    %33 = arith.mulf %28, %32 : vector<8x128xf32>
    %34 = arith.truncf %33 : vector<8x128xf32> to vector<8x128xbf16>
    %35 = arith.index_cast %c0_i32 : i32 to index
    %c0_8 = arith.constant 0 : index
    %c0_9 = arith.constant 0 : index
    %36 = vector.load %arg9[%35, %c0_8, %c0_9] : memref<8x8x128xbf16, #tpu.memory_space<vmem>>, vector<1x8x128xbf16>
    %37 = vector.shape_cast %36 : vector<1x8x128xbf16> to vector<8x128xbf16>
    %38 = vector.shape_cast %34 : vector<8x128xbf16> to vector<1x8x128xbf16>
    tpu.vector_store %arg9[%35, %c0_8, %c0_9], %38 {strides = array<i32>} : memref<8x8x128xbf16, #tpu.memory_space<vmem>>, vector<1x8x128xbf16>,
    %c1_i32 = arith.constant 1 : i32
    %39 = arith.index_cast %c1_i32 : i32 to index
    %c0_10 = arith.constant 0 : index
    %c0_11 = arith.constant 0 : index
    %40 = vector.load %arg1[%39, %c0_10, %c0_11] : memref<8x8x512xf32, #tpu.memory_space<vmem>>, vector<1x8x512xf32>
    %41 = vector.shape_cast %40 : vector<1x8x512xf32> to vector<8x512xf32>
    %42 = arith.truncf %33 : vector<8x128xf32> to vector<8x128xbf16>
    %cst_12 = arith.constant dense<0.000000e+00> : vector<8x512xf32>
    %43 = tpu.matmul %42, %0, %cst_12 {dimension_numbers = #tpu.dot_dimension_numbers<[1], [0], [0], [1], [0, 0, 1, 1], [], []>} : vector<8x128xbf16>, vector<128x512xbf16>, vector<8x512xf32> -> vector<8x512xf32>
    %44 = arith.addf %41, %43 : vector<8x512xf32>
    %45 = vector.extract_strided_slice %44 {offsets = [0, 0], sizes = [8, 128], strides = [1, 1]} : vector<8x512xf32> to vector<8x128xf32>
    %46 = arith.negf %45 : vector<8x128xf32>
    %47 = math.exp %46 : vector<8x128xf32>
    %cst_13 = arith.constant 1.000000e+00 : f32
    %48 = vector.broadcast %cst_13 : f32 to vector<8x128xf32>
    %49 = arith.addf %48, %47 : vector<8x128xf32>
    %50 = arith.divf %48, %49 : vector<8x128xf32>
    %51 = vector.extract_strided_slice %44 {offsets = [0, 128], sizes = [8, 128], strides = [1, 1]} : vector<8x512xf32> to vector<8x128xf32>
    %52 = arith.negf %51 : vector<8x128xf32>
    %53 = math.exp %52 : vector<8x128xf32>
    %cst_14 = arith.constant 1.000000e+00 : f32
    %54 = vector.broadcast %cst_14 : f32 to vector<8x128xf32>
    %55 = arith.addf %54, %53 : vector<8x128xf32>
    %56 = arith.divf %54, %55 : vector<8x128xf32>
    %57 = vector.extract_strided_slice %44 {offsets = [0, 256], sizes = [8, 128], strides = [1, 1]} : vector<8x512xf32> to vector<8x128xf32>
    %58 = math.tanh %57 : vector<8x128xf32>
    %59 = vector.extract_strided_slice %44 {offsets = [0, 384], sizes = [8, 128], strides = [1, 1]} : vector<8x512xf32> to vector<8x128xf32>
    %60 = arith.negf %59 : vector<8x128xf32>
    %61 = math.exp %60 : vector<8x128xf32>
    %cst_15 = arith.constant 1.000000e+00 : f32
    %62 = vector.broadcast %cst_15 : f32 to vector<8x128xf32>
    %63 = arith.addf %62, %61 : vector<8x128xf32>
    %64 = arith.divf %62, %63 : vector<8x128xf32>
    %65 = arith.mulf %56, %31 : vector<8x128xf32>
    %66 = arith.mulf %50, %58 : vector<8x128xf32>
    %67 = arith.addf %65, %66 : vector<8x128xf32>
    %68 = math.tanh %67 : vector<8x128xf32>
    %69 = arith.mulf %64, %68 : vector<8x128xf32>
    %70 = arith.truncf %69 : vector<8x128xf32> to vector<8x128xbf16>
    %71 = arith.index_cast %c1_i32 : i32 to index
    %c0_16 = arith.constant 0 : index
    %c0_17 = arith.constant 0 : index
    %72 = vector.load %arg9[%71, %c0_16, %c0_17] : memref<8x8x128xbf16, #tpu.memory_space<vmem>>, vector<1x8x128xbf16>
    %73 = vector.shape_cast %72 : vector<1x8x128xbf16> to vector<8x128xbf16>
    %74 = vector.shape_cast %70 : vector<8x128xbf16> to vector<1x8x128xbf16>
    tpu.vector_store %arg9[%71, %c0_16, %c0_17], %74 {strides = array<i32>} : memref<8x8x128xbf16, #tpu.memory_space<vmem>>, vector<1x8x128xbf16>,
    %c2_i32 = arith.constant 2 : i32
    %75 = arith.index_cast %c2_i32 : i32 to index
    %c0_18 = arith.constant 0 : index
    %c0_19 = arith.constant 0 : index
    %76 = vector.load %arg1[%75, %c0_18, %c0_19] : memref<8x8x512xf32, #tpu.memory_space<vmem>>, vector<1x8x512xf32>
    %77 = vector.shape_cast %76 : vector<1x8x512xf32> to vector<8x512xf32>
    %78 = arith.truncf %69 : vector<8x128xf32> to vector<8x128xbf16>
    %cst_20 = arith.constant dense<0.000000e+00> : vector<8x512xf32>
    %79 = tpu.matmul %78, %0, %cst_20 {dimension_numbers = #tpu.dot_dimension_numbers<[1], [0], [0], [1], [0, 0, 1, 1], [], []>} : vector<8x128xbf16>, vector<128x512xbf16>, vector<8x512xf32> -> vector<8x512xf32>
    %80 = arith.addf %77, %79 : vector<8x512xf32>
    %81 = vector.extract_strided_slice %80 {offsets = [0, 0], sizes = [8, 128], strides = [1, 1]} : vector<8x512xf32> to vector<8x128xf32>
    %82 = arith.negf %81 : vector<8x128xf32>
    %83 = math.exp %82 : vector<8x128xf32>
    %cst_21 = arith.constant 1.000000e+00 : f32
    %84 = vector.broadcast %cst_21 : f32 to vector<8x128xf32>
    %85 = arith.addf %84, %83 : vector<8x128xf32>
    %86 = arith.divf %84, %85 : vector<8x128xf32>
    %87 = vector.extract_strided_slice %80 {offsets = [0, 128], sizes = [8, 128], strides = [1, 1]} : vector<8x512xf32> to vector<8x128xf32>
    %88 = arith.negf %87 : vector<8x128xf32>
    %89 = math.exp %88 : vector<8x128xf32>
    %cst_22 = arith.constant 1.000000e+00 : f32
    %90 = vector.broadcast %cst_22 : f32 to vector<8x128xf32>
    %91 = arith.addf %90, %89 : vector<8x128xf32>
    %92 = arith.divf %90, %91 : vector<8x128xf32>
    %93 = vector.extract_strided_slice %80 {offsets = [0, 256], sizes = [8, 128], strides = [1, 1]} : vector<8x512xf32> to vector<8x128xf32>
    %94 = math.tanh %93 : vector<8x128xf32>
    %95 = vector.extract_strided_slice %80 {offsets = [0, 384], sizes = [8, 128], strides = [1, 1]} : vector<8x512xf32> to vector<8x128xf32>
    %96 = arith.negf %95 : vector<8x128xf32>
    %97 = math.exp %96 : vector<8x128xf32>
    %cst_23 = arith.constant 1.000000e+00 : f32
    %98 = vector.broadcast %cst_23 : f32 to vector<8x128xf32>
    %99 = arith.addf %98, %97 : vector<8x128xf32>
    %100 = arith.divf %98, %99 : vector<8x128xf32>
    %101 = arith.mulf %92, %67 : vector<8x128xf32>
    %102 = arith.mulf %86, %94 : vector<8x128xf32>
    %103 = arith.addf %101, %102 : vector<8x128xf32>
    %104 = math.tanh %103 : vector<8x128xf32>
    %105 = arith.mulf %100, %104 : vector<8x128xf32>
    %106 = arith.truncf %105 : vector<8x128xf32> to vector<8x128xbf16>
    %107 = arith.index_cast %c2_i32 : i32 to index
    %c0_24 = arith.constant 0 : index
    %c0_25 = arith.constant 0 : index
    %108 = vector.load %arg9[%107, %c0_24, %c0_25] : memref<8x8x128xbf16, #tpu.memory_space<vmem>>, vector<1x8x128xbf16>
    %109 = vector.shape_cast %108 : vector<1x8x128xbf16> to vector<8x128xbf16>
    %110 = vector.shape_cast %106 : vector<8x128xbf16> to vector<1x8x128xbf16>
    tpu.vector_store %arg9[%107, %c0_24, %c0_25], %110 {strides = array<i32>} : memref<8x8x128xbf16, #tpu.memory_space<vmem>>, vector<1x8x128xbf16>,
    %c3_i32 = arith.constant 3 : i32
    %111 = arith.index_cast %c3_i32 : i32 to index
    %c0_26 = arith.constant 0 : index
    %c0_27 = arith.constant 0 : index
    %112 = vector.load %arg1[%111, %c0_26, %c0_27] : memref<8x8x512xf32, #tpu.memory_space<vmem>>, vector<1x8x512xf32>
    %113 = vector.shape_cast %112 : vector<1x8x512xf32> to vector<8x512xf32>
    %114 = arith.truncf %105 : vector<8x128xf32> to vector<8x128xbf16>
    %cst_28 = arith.constant dense<0.000000e+00> : vector<8x512xf32>
    %115 = tpu.matmul %114, %0, %cst_28 {dimension_numbers = #tpu.dot_dimension_numbers<[1], [0], [0], [1], [0, 0, 1, 1], [], []>} : vector<8x128xbf16>, vector<128x512xbf16>, vector<8x512xf32> -> vector<8x512xf32>
    %116 = arith.addf %113, %115 : vector<8x512xf32>
    %117 = vector.extract_strided_slice %116 {offsets = [0, 0], sizes = [8, 128], strides = [1, 1]} : vector<8x512xf32> to vector<8x128xf32>
    %118 = arith.negf %117 : vector<8x128xf32>
    %119 = math.exp %118 : vector<8x128xf32>
    %cst_29 = arith.constant 1.000000e+00 : f32
    %120 = vector.broadcast %cst_29 : f32 to vector<8x128xf32>
    %121 = arith.addf %120, %119 : vector<8x128xf32>
    %122 = arith.divf %120, %121 : vector<8x128xf32>
    %123 = vector.extract_strided_slice %116 {offsets = [0, 128], sizes = [8, 128], strides = [1, 1]} : vector<8x512xf32> to vector<8x128xf32>
    %124 = arith.negf %123 : vector<8x128xf32>
    %125 = math.exp %124 : vector<8x128xf32>
    %cst_30 = arith.constant 1.000000e+00 : f32
    %126 = vector.broadcast %cst_30 : f32 to vector<8x128xf32>
    %127 = arith.addf %126, %125 : vector<8x128xf32>
    %128 = arith.divf %126, %127 : vector<8x128xf32>
    %129 = vector.extract_strided_slice %116 {offsets = [0, 256], sizes = [8, 128], strides = [1, 1]} : vector<8x512xf32> to vector<8x128xf32>
    %130 = math.tanh %129 : vector<8x128xf32>
    %131 = vector.extract_strided_slice %116 {offsets = [0, 384], sizes = [8, 128], strides = [1, 1]} : vector<8x512xf32> to vector<8x128xf32>
    %132 = arith.negf %131 : vector<8x128xf32>
    %133 = math.exp %132 : vector<8x128xf32>
    %cst_31 = arith.constant 1.000000e+00 : f32
    %134 = vector.broadcast %cst_31 : f32 to vector<8x128xf32>
    %135 = arith.addf %134, %133 : vector<8x128xf32>
    %136 = arith.divf %134, %135 : vector<8x128xf32>
    %137 = arith.mulf %128, %103 : vector<8x128xf32>
    %138 = arith.mulf %122, %130 : vector<8x128xf32>
    %139 = arith.addf %137, %138 : vector<8x128xf32>
    %140 = math.tanh %139 : vector<8x128xf32>
    %141 = arith.mulf %136, %140 : vector<8x128xf32>
    %142 = arith.truncf %141 : vector<8x128xf32> to vector<8x128xbf16>
    %143 = arith.index_cast %c3_i32 : i32 to index
    %c0_32 = arith.constant 0 : index
    %c0_33 = arith.constant 0 : index
    %144 = vector.load %arg9[%143, %c0_32, %c0_33] : memref<8x8x128xbf16, #tpu.memory_space<vmem>>, vector<1x8x128xbf16>
    %145 = vector.shape_cast %144 : vector<1x8x128xbf16> to vector<8x128xbf16>
    %146 = vector.shape_cast %142 : vector<8x128xbf16> to vector<1x8x128xbf16>
    tpu.vector_store %arg9[%143, %c0_32, %c0_33], %146 {strides = array<i32>} : memref<8x8x128xbf16, #tpu.memory_space<vmem>>, vector<1x8x128xbf16>,
    %c4_i32 = arith.constant 4 : i32
    %147 = arith.index_cast %c4_i32 : i32 to index
    %c0_34 = arith.constant 0 : index
    %c0_35 = arith.constant 0 : index
    %148 = vector.load %arg1[%147, %c0_34, %c0_35] : memref<8x8x512xf32, #tpu.memory_space<vmem>>, vector<1x8x512xf32>
    %149 = vector.shape_cast %148 : vector<1x8x512xf32> to vector<8x512xf32>
    %150 = arith.truncf %141 : vector<8x128xf32> to vector<8x128xbf16>
    %cst_36 = arith.constant dense<0.000000e+00> : vector<8x512xf32>
    %151 = tpu.matmul %150, %0, %cst_36 {dimension_numbers = #tpu.dot_dimension_numbers<[1], [0], [0], [1], [0, 0, 1, 1], [], []>} : vector<8x128xbf16>, vector<128x512xbf16>, vector<8x512xf32> -> vector<8x512xf32>
    %152 = arith.addf %149, %151 : vector<8x512xf32>
    %153 = vector.extract_strided_slice %152 {offsets = [0, 0], sizes = [8, 128], strides = [1, 1]} : vector<8x512xf32> to vector<8x128xf32>
    %154 = arith.negf %153 : vector<8x128xf32>
    %155 = math.exp %154 : vector<8x128xf32>
    %cst_37 = arith.constant 1.000000e+00 : f32
    %156 = vector.broadcast %cst_37 : f32 to vector<8x128xf32>
    %157 = arith.addf %156, %155 : vector<8x128xf32>
    %158 = arith.divf %156, %157 : vector<8x128xf32>
    %159 = vector.extract_strided_slice %152 {offsets = [0, 128], sizes = [8, 128], strides = [1, 1]} : vector<8x512xf32> to vector<8x128xf32>
    %160 = arith.negf %159 : vector<8x128xf32>
    %161 = math.exp %160 : vector<8x128xf32>
    %cst_38 = arith.constant 1.000000e+00 : f32
    %162 = vector.broadcast %cst_38 : f32 to vector<8x128xf32>
    %163 = arith.addf %162, %161 : vector<8x128xf32>
    %164 = arith.divf %162, %163 : vector<8x128xf32>
    %165 = vector.extract_strided_slice %152 {offsets = [0, 256], sizes = [8, 128], strides = [1, 1]} : vector<8x512xf32> to vector<8x128xf32>
    %166 = math.tanh %165 : vector<8x128xf32>
    %167 = vector.extract_strided_slice %152 {offsets = [0, 384], sizes = [8, 128], strides = [1, 1]} : vector<8x512xf32> to vector<8x128xf32>
    %168 = arith.negf %167 : vector<8x128xf32>
    %169 = math.exp %168 : vector<8x128xf32>
    %cst_39 = arith.constant 1.000000e+00 : f32
    %170 = vector.broadcast %cst_39 : f32 to vector<8x128xf32>
    %171 = arith.addf %170, %169 : vector<8x128xf32>
    %172 = arith.divf %170, %171 : vector<8x128xf32>
    %173 = arith.mulf %164, %139 : vector<8x128xf32>
    %174 = arith.mulf %158, %166 : vector<8x128xf32>
    %175 = arith.addf %173, %174 : vector<8x128xf32>
    %176 = math.tanh %175 : vector<8x128xf32>
    %177 = arith.mulf %172, %176 : vector<8x128xf32>
    %178 = arith.truncf %177 : vector<8x128xf32> to vector<8x128xbf16>
    %179 = arith.index_cast %c4_i32 : i32 to index
    %c0_40 = arith.constant 0 : index
    %c0_41 = arith.constant 0 : index
    %180 = vector.load %arg9[%179, %c0_40, %c0_41] : memref<8x8x128xbf16, #tpu.memory_space<vmem>>, vector<1x8x128xbf16>
    %181 = vector.shape_cast %180 : vector<1x8x128xbf16> to vector<8x128xbf16>
    %182 = vector.shape_cast %178 : vector<8x128xbf16> to vector<1x8x128xbf16>
    tpu.vector_store %arg9[%179, %c0_40, %c0_41], %182 {strides = array<i32>} : memref<8x8x128xbf16, #tpu.memory_space<vmem>>, vector<1x8x128xbf16>,
    %c5_i32 = arith.constant 5 : i32
    %183 = arith.index_cast %c5_i32 : i32 to index
    %c0_42 = arith.constant 0 : index
    %c0_43 = arith.constant 0 : index
    %184 = vector.load %arg1[%183, %c0_42, %c0_43] : memref<8x8x512xf32, #tpu.memory_space<vmem>>, vector<1x8x512xf32>
    %185 = vector.shape_cast %184 : vector<1x8x512xf32> to vector<8x512xf32>
    %186 = arith.truncf %177 : vector<8x128xf32> to vector<8x128xbf16>
    %cst_44 = arith.constant dense<0.000000e+00> : vector<8x512xf32>
    %187 = tpu.matmul %186, %0, %cst_44 {dimension_numbers = #tpu.dot_dimension_numbers<[1], [0], [0], [1], [0, 0, 1, 1], [], []>} : vector<8x128xbf16>, vector<128x512xbf16>, vector<8x512xf32> -> vector<8x512xf32>
    %188 = arith.addf %185, %187 : vector<8x512xf32>
    %189 = vector.extract_strided_slice %188 {offsets = [0, 0], sizes = [8, 128], strides = [1, 1]} : vector<8x512xf32> to vector<8x128xf32>
    %190 = arith.negf %189 : vector<8x128xf32>
    %191 = math.exp %190 : vector<8x128xf32>
    %cst_45 = arith.constant 1.000000e+00 : f32
    %192 = vector.broadcast %cst_45 : f32 to vector<8x128xf32>
    %193 = arith.addf %192, %191 : vector<8x128xf32>
    %194 = arith.divf %192, %193 : vector<8x128xf32>
    %195 = vector.extract_strided_slice %188 {offsets = [0, 128], sizes = [8, 128], strides = [1, 1]} : vector<8x512xf32> to vector<8x128xf32>
    %196 = arith.negf %195 : vector<8x128xf32>
    %197 = math.exp %196 : vector<8x128xf32>
    %cst_46 = arith.constant 1.000000e+00 : f32
    %198 = vector.broadcast %cst_46 : f32 to vector<8x128xf32>
    %199 = arith.addf %198, %197 : vector<8x128xf32>
    %200 = arith.divf %198, %199 : vector<8x128xf32>
    %201 = vector.extract_strided_slice %188 {offsets = [0, 256], sizes = [8, 128], strides = [1, 1]} : vector<8x512xf32> to vector<8x128xf32>
    %202 = math.tanh %201 : vector<8x128xf32>
    %203 = vector.extract_strided_slice %188 {offsets = [0, 384], sizes = [8, 128], strides = [1, 1]} : vector<8x512xf32> to vector<8x128xf32>
    %204 = arith.negf %203 : vector<8x128xf32>
    %205 = math.exp %204 : vector<8x128xf32>
    %cst_47 = arith.constant 1.000000e+00 : f32
    %206 = vector.broadcast %cst_47 : f32 to vector<8x128xf32>
    %207 = arith.addf %206, %205 : vector<8x128xf32>
    %208 = arith.divf %206, %207 : vector<8x128xf32>
    %209 = arith.mulf %200, %175 : vector<8x128xf32>
    %210 = arith.mulf %194, %202 : vector<8x128xf32>
    %211 = arith.addf %209, %210 : vector<8x128xf32>
    %212 = math.tanh %211 : vector<8x128xf32>
    %213 = arith.mulf %208, %212 : vector<8x128xf32>
    %214 = arith.truncf %213 : vector<8x128xf32> to vector<8x128xbf16>
    %215 = arith.index_cast %c5_i32 : i32 to index
    %c0_48 = arith.constant 0 : index
    %c0_49 = arith.constant 0 : index
    %216 = vector.load %arg9[%215, %c0_48, %c0_49] : memref<8x8x128xbf16, #tpu.memory_space<vmem>>, vector<1x8x128xbf16>
    %217 = vector.shape_cast %216 : vector<1x8x128xbf16> to vector<8x128xbf16>
    %218 = vector.shape_cast %214 : vector<8x128xbf16> to vector<1x8x128xbf16>
    tpu.vector_store %arg9[%215, %c0_48, %c0_49], %218 {strides = array<i32>} : memref<8x8x128xbf16, #tpu.memory_space<vmem>>, vector<1x8x128xbf16>,
    %c6_i32 = arith.constant 6 : i32
    %219 = arith.index_cast %c6_i32 : i32 to index
    %c0_50 = arith.constant 0 : index
    %c0_51 = arith.constant 0 : index
    %220 = vector.load %arg1[%219, %c0_50, %c0_51] : memref<8x8x512xf32, #tpu.memory_space<vmem>>, vector<1x8x512xf32>
    %221 = vector.shape_cast %220 : vector<1x8x512xf32> to vector<8x512xf32>
    %222 = arith.truncf %213 : vector<8x128xf32> to vector<8x128xbf16>
    %cst_52 = arith.constant dense<0.000000e+00> : vector<8x512xf32>
    %223 = tpu.matmul %222, %0, %cst_52 {dimension_numbers = #tpu.dot_dimension_numbers<[1], [0], [0], [1], [0, 0, 1, 1], [], []>} : vector<8x128xbf16>, vector<128x512xbf16>, vector<8x512xf32> -> vector<8x512xf32>
    %224 = arith.addf %221, %223 : vector<8x512xf32>
    %225 = vector.extract_strided_slice %224 {offsets = [0, 0], sizes = [8, 128], strides = [1, 1]} : vector<8x512xf32> to vector<8x128xf32>
    %226 = arith.negf %225 : vector<8x128xf32>
    %227 = math.exp %226 : vector<8x128xf32>
    %cst_53 = arith.constant 1.000000e+00 : f32
    %228 = vector.broadcast %cst_53 : f32 to vector<8x128xf32>
    %229 = arith.addf %228, %227 : vector<8x128xf32>
    %230 = arith.divf %228, %229 : vector<8x128xf32>
    %231 = vector.extract_strided_slice %224 {offsets = [0, 128], sizes = [8, 128], strides = [1, 1]} : vector<8x512xf32> to vector<8x128xf32>
    %232 = arith.negf %231 : vector<8x128xf32>
    %233 = math.exp %232 : vector<8x128xf32>
    %cst_54 = arith.constant 1.000000e+00 : f32
    %234 = vector.broadcast %cst_54 : f32 to vector<8x128xf32>
    %235 = arith.addf %234, %233 : vector<8x128xf32>
    %236 = arith.divf %234, %235 : vector<8x128xf32>
    %237 = vector.extract_strided_slice %224 {offsets = [0, 256], sizes = [8, 128], strides = [1, 1]} : vector<8x512xf32> to vector<8x128xf32>
    %238 = math.tanh %237 : vector<8x128xf32>
    %239 = vector.extract_strided_slice %224 {offsets = [0, 384], sizes = [8, 128], strides = [1, 1]} : vector<8x512xf32> to vector<8x128xf32>
    %240 = arith.negf %239 : vector<8x128xf32>
    %241 = math.exp %240 : vector<8x128xf32>
    %cst_55 = arith.constant 1.000000e+00 : f32
    %242 = vector.broadcast %cst_55 : f32 to vector<8x128xf32>
    %243 = arith.addf %242, %241 : vector<8x128xf32>
    %244 = arith.divf %242, %243 : vector<8x128xf32>
    %245 = arith.mulf %236, %211 : vector<8x128xf32>
    %246 = arith.mulf %230, %238 : vector<8x128xf32>
    %247 = arith.addf %245, %246 : vector<8x128xf32>
    %248 = math.tanh %247 : vector<8x128xf32>
    %249 = arith.mulf %244, %248 : vector<8x128xf32>
    %250 = arith.truncf %249 : vector<8x128xf32> to vector<8x128xbf16>
    %251 = arith.index_cast %c6_i32 : i32 to index
    %c0_56 = arith.constant 0 : index
    %c0_57 = arith.constant 0 : index
    %252 = vector.load %arg9[%251, %c0_56, %c0_57] : memref<8x8x128xbf16, #tpu.memory_space<vmem>>, vector<1x8x128xbf16>
    %253 = vector.shape_cast %252 : vector<1x8x128xbf16> to vector<8x128xbf16>
    %254 = vector.shape_cast %250 : vector<8x128xbf16> to vector<1x8x128xbf16>
    tpu.vector_store %arg9[%251, %c0_56, %c0_57], %254 {strides = array<i32>} : memref<8x8x128xbf16, #tpu.memory_space<vmem>>, vector<1x8x128xbf16>,
    %c7_i32 = arith.constant 7 : i32
    %255 = arith.index_cast %c7_i32 : i32 to index
    %c0_58 = arith.constant 0 : index
    %c0_59 = arith.constant 0 : index
    %256 = vector.load %arg1[%255, %c0_58, %c0_59] : memref<8x8x512xf32, #tpu.memory_space<vmem>>, vector<1x8x512xf32>
    %257 = vector.shape_cast %256 : vector<1x8x512xf32> to vector<8x512xf32>
    %258 = arith.truncf %249 : vector<8x128xf32> to vector<8x128xbf16>
    %cst_60 = arith.constant dense<0.000000e+00> : vector<8x512xf32>
    %259 = tpu.matmul %258, %0, %cst_60 {dimension_numbers = #tpu.dot_dimension_numbers<[1], [0], [0], [1], [0, 0, 1, 1], [], []>} : vector<8x128xbf16>, vector<128x512xbf16>, vector<8x512xf32> -> vector<8x512xf32>
    %260 = arith.addf %257, %259 : vector<8x512xf32>
    %261 = vector.extract_strided_slice %260 {offsets = [0, 0], sizes = [8, 128], strides = [1, 1]} : vector<8x512xf32> to vector<8x128xf32>
    %262 = arith.negf %261 : vector<8x128xf32>
    %263 = math.exp %262 : vector<8x128xf32>
    %cst_61 = arith.constant 1.000000e+00 : f32
    %264 = vector.broadcast %cst_61 : f32 to vector<8x128xf32>
    %265 = arith.addf %264, %263 : vector<8x128xf32>
    %266 = arith.divf %264, %265 : vector<8x128xf32>
    %267 = vector.extract_strided_slice %260 {offsets = [0, 128], sizes = [8, 128], strides = [1, 1]} : vector<8x512xf32> to vector<8x128xf32>
    %268 = arith.negf %267 : vector<8x128xf32>
    %269 = math.exp %268 : vector<8x128xf32>
    %cst_62 = arith.constant 1.000000e+00 : f32
    %270 = vector.broadcast %cst_62 : f32 to vector<8x128xf32>
    %271 = arith.addf %270, %269 : vector<8x128xf32>
    %272 = arith.divf %270, %271 : vector<8x128xf32>
    %273 = vector.extract_strided_slice %260 {offsets = [0, 256], sizes = [8, 128], strides = [1, 1]} : vector<8x512xf32> to vector<8x128xf32>
    %274 = math.tanh %273 : vector<8x128xf32>
    %275 = vector.extract_strided_slice %260 {offsets = [0, 384], sizes = [8, 128], strides = [1, 1]} : vector<8x512xf32> to vector<8x128xf32>
    %276 = arith.negf %275 : vector<8x128xf32>
    %277 = math.exp %276 : vector<8x128xf32>
    %cst_63 = arith.constant 1.000000e+00 : f32
    %278 = vector.broadcast %cst_63 : f32 to vector<8x128xf32>
    %279 = arith.addf %278, %277 : vector<8x128xf32>
    %280 = arith.divf %278, %279 : vector<8x128xf32>
    %281 = arith.mulf %272, %247 : vector<8x128xf32>
    %282 = arith.mulf %266, %274 : vector<8x128xf32>
    %283 = arith.addf %281, %282 : vector<8x128xf32>
    %284 = math.tanh %283 : vector<8x128xf32>
    %285 = arith.mulf %280, %284 : vector<8x128xf32>
    %286 = arith.truncf %285 : vector<8x128xf32> to vector<8x128xbf16>
    %287 = arith.index_cast %c7_i32 : i32 to index
    %c0_64 = arith.constant 0 : index
    %c0_65 = arith.constant 0 : index
    %288 = vector.load %arg9[%287, %c0_64, %c0_65] : memref<8x8x128xbf16, #tpu.memory_space<vmem>>, vector<1x8x128xbf16>
    %289 = vector.shape_cast %288 : vector<1x8x128xbf16> to vector<8x128xbf16>
    %290 = vector.shape_cast %286 : vector<8x128xbf16> to vector<1x8x128xbf16>
    tpu.vector_store %arg9[%287, %c0_64, %c0_65], %290 {strides = array<i32>} : memref<8x8x128xbf16, #tpu.memory_space<vmem>>, vector<1x8x128xbf16>,
    %c8_i32 = arith.constant 8 : i32
    %c0_66 = arith.constant 0 : index
    %c0_67 = arith.constant 0 : index
    %c0_68 = arith.constant 0 : index
    %291 = vector.load %arg9[%c0_66, %c0_67, %c0_68] : memref<8x8x128xbf16, #tpu.memory_space<vmem>>, vector<8x8x128xbf16>
    %292 = vector.shape_cast %291 : vector<8x8x128xbf16> to vector<64x128xbf16>
    %c0_69 = arith.constant 0 : index
    %c0_70 = arith.constant 0 : index
    %293 = vector.load %arg3[%c0_69, %c0_70] : memref<128x512xbf16, #tpu.memory_space<vmem>>, vector<128x512xbf16>
    %cst_71 = arith.constant dense<0.000000e+00> : vector<64x512xf32>
    %294 = tpu.matmul %292, %293, %cst_71 {dimension_numbers = #tpu.dot_dimension_numbers<[1], [0], [0], [1], [0, 0, 1, 1], [], []>} : vector<64x128xbf16>, vector<128x512xbf16>, vector<64x512xf32> -> vector<64x512xf32>
    %295 = vector.shape_cast %294 : vector<64x512xf32> to vector<8x8x512xf32>
    %c0_72 = arith.constant 0 : index
    %c0_73 = arith.constant 0 : index
    %296 = vector.load %arg4[%c0_72, %c0_73] : memref<1x512xf32, #tpu.memory_space<vmem>>, vector<1x512xf32>
    %297 = vector.shape_cast %296 : vector<1x512xf32> to vector<1x1x512xf32>
    %298 = vector.broadcast %297 : vector<1x1x512xf32> to vector<8x8x512xf32>
    %299 = arith.addf %295, %298 : vector<8x8x512xf32>
    %c0_74 = arith.constant 0 : index
    %c0_75 = arith.constant 0 : index
    %c0_76 = arith.constant 0 : index
    %300 = vector.load %arg10[%c0_74, %c0_75, %c0_76] : memref<8x8x512xf32, #tpu.memory_space<vmem>>, vector<8x8x512xf32>
    tpu.vector_store %arg10[%c0_74, %c0_75, %c0_76], %299 {strides = array<i32>} : memref<8x8x512xf32, #tpu.memory_space<vmem>>, vector<8x8x512xf32>,
    %c0_77 = arith.constant 0 : index
    %c0_78 = arith.constant 0 : index
    %301 = vector.load %arg5[%c0_77, %c0_78] : memref<128x512xbf16, #tpu.memory_space<vmem>>, vector<128x512xbf16>
    %cst_79 = arith.constant 0.000000e+00 : f32
    %302 = vector.broadcast %cst_79 : f32 to vector<8x128xf32>
    %cst_80 = arith.constant 0.000000e+00 : f32
    %303 = vector.broadcast %cst_80 : f32 to vector<8x128xf32>
    %c0_i32_81 = arith.constant 0 : i32
    %304 = arith.index_cast %c0_i32_81 : i32 to index
    %c0_82 = arith.constant 0 : index
    %c0_83 = arith.constant 0 : index
    %305 = vector.load %arg10[%304, %c0_82, %c0_83] : memref<8x8x512xf32, #tpu.memory_space<vmem>>, vector<1x8x512xf32>
    %306 = vector.shape_cast %305 : vector<1x8x512xf32> to vector<8x512xf32>
    %307 = arith.truncf %302 : vector<8x128xf32> to vector<8x128xbf16>
    %cst_84 = arith.constant dense<0.000000e+00> : vector<8x512xf32>
    %308 = tpu.matmul %307, %301, %cst_84 {dimension_numbers = #tpu.dot_dimension_numbers<[1], [0], [0], [1], [0, 0, 1, 1], [], []>} : vector<8x128xbf16>, vector<128x512xbf16>, vector<8x512xf32> -> vector<8x512xf32>
    %309 = arith.addf %306, %308 : vector<8x512xf32>
    %310 = vector.extract_strided_slice %309 {offsets = [0, 0], sizes = [8, 128], strides = [1, 1]} : vector<8x512xf32> to vector<8x128xf32>
    %311 = arith.negf %310 : vector<8x128xf32>
    %312 = math.exp %311 : vector<8x128xf32>
    %cst_85 = arith.constant 1.000000e+00 : f32
    %313 = vector.broadcast %cst_85 : f32 to vector<8x128xf32>
    %314 = arith.addf %313, %312 : vector<8x128xf32>
    %315 = arith.divf %313, %314 : vector<8x128xf32>
    %316 = vector.extract_strided_slice %309 {offsets = [0, 128], sizes = [8, 128], strides = [1, 1]} : vector<8x512xf32> to vector<8x128xf32>
    %317 = arith.negf %316 : vector<8x128xf32>
    %318 = math.exp %317 : vector<8x128xf32>
    %cst_86 = arith.constant 1.000000e+00 : f32
    %319 = vector.broadcast %cst_86 : f32 to vector<8x128xf32>
    %320 = arith.addf %319, %318 : vector<8x128xf32>
    %321 = arith.divf %319, %320 : vector<8x128xf32>
    %322 = vector.extract_strided_slice %309 {offsets = [0, 256], sizes = [8, 128], strides = [1, 1]} : vector<8x512xf32> to vector<8x128xf32>
    %323 = math.tanh %322 : vector<8x128xf32>
    %324 = vector.extract_strided_slice %309 {offsets = [0, 384], sizes = [8, 128], strides = [1, 1]} : vector<8x512xf32> to vector<8x128xf32>
    %325 = arith.negf %324 : vector<8x128xf32>
    %326 = math.exp %325 : vector<8x128xf32>
    %cst_87 = arith.constant 1.000000e+00 : f32
    %327 = vector.broadcast %cst_87 : f32 to vector<8x128xf32>
    %328 = arith.addf %327, %326 : vector<8x128xf32>
    %329 = arith.divf %327, %328 : vector<8x128xf32>
    %330 = arith.mulf %321, %303 : vector<8x128xf32>
    %331 = arith.mulf %315, %323 : vector<8x128xf32>
    %332 = arith.addf %330, %331 : vector<8x128xf32>
    %333 = math.tanh %332 : vector<8x128xf32>
    %334 = arith.mulf %329, %333 : vector<8x128xf32>
    %c1_i32_88 = arith.constant 1 : i32
    %335 = arith.index_cast %c1_i32_88 : i32 to index
    %c0_89 = arith.constant 0 : index
    %c0_90 = arith.constant 0 : index
    %336 = vector.load %arg10[%335, %c0_89, %c0_90] : memref<8x8x512xf32, #tpu.memory_space<vmem>>, vector<1x8x512xf32>
    %337 = vector.shape_cast %336 : vector<1x8x512xf32> to vector<8x512xf32>
    %338 = arith.truncf %334 : vector<8x128xf32> to vector<8x128xbf16>
    %cst_91 = arith.constant dense<0.000000e+00> : vector<8x512xf32>
    %339 = tpu.matmul %338, %301, %cst_91 {dimension_numbers = #tpu.dot_dimension_numbers<[1], [0], [0], [1], [0, 0, 1, 1], [], []>} : vector<8x128xbf16>, vector<128x512xbf16>, vector<8x512xf32> -> vector<8x512xf32>
    %340 = arith.addf %337, %339 : vector<8x512xf32>
    %341 = vector.extract_strided_slice %340 {offsets = [0, 0], sizes = [8, 128], strides = [1, 1]} : vector<8x512xf32> to vector<8x128xf32>
    %342 = arith.negf %341 : vector<8x128xf32>
    %343 = math.exp %342 : vector<8x128xf32>
    %cst_92 = arith.constant 1.000000e+00 : f32
    %344 = vector.broadcast %cst_92 : f32 to vector<8x128xf32>
    %345 = arith.addf %344, %343 : vector<8x128xf32>
    %346 = arith.divf %344, %345 : vector<8x128xf32>
    %347 = vector.extract_strided_slice %340 {offsets = [0, 128], sizes = [8, 128], strides = [1, 1]} : vector<8x512xf32> to vector<8x128xf32>
    %348 = arith.negf %347 : vector<8x128xf32>
    %349 = math.exp %348 : vector<8x128xf32>
    %cst_93 = arith.constant 1.000000e+00 : f32
    %350 = vector.broadcast %cst_93 : f32 to vector<8x128xf32>
    %351 = arith.addf %350, %349 : vector<8x128xf32>
    %352 = arith.divf %350, %351 : vector<8x128xf32>
    %353 = vector.extract_strided_slice %340 {offsets = [0, 256], sizes = [8, 128], strides = [1, 1]} : vector<8x512xf32> to vector<8x128xf32>
    %354 = math.tanh %353 : vector<8x128xf32>
    %355 = vector.extract_strided_slice %340 {offsets = [0, 384], sizes = [8, 128], strides = [1, 1]} : vector<8x512xf32> to vector<8x128xf32>
    %356 = arith.negf %355 : vector<8x128xf32>
    %357 = math.exp %356 : vector<8x128xf32>
    %cst_94 = arith.constant 1.000000e+00 : f32
    %358 = vector.broadcast %cst_94 : f32 to vector<8x128xf32>
    %359 = arith.addf %358, %357 : vector<8x128xf32>
    %360 = arith.divf %358, %359 : vector<8x128xf32>
    %361 = arith.mulf %352, %332 : vector<8x128xf32>
    %362 = arith.mulf %346, %354 : vector<8x128xf32>
    %363 = arith.addf %361, %362 : vector<8x128xf32>
    %364 = math.tanh %363 : vector<8x128xf32>
    %365 = arith.mulf %360, %364 : vector<8x128xf32>
    %c2_i32_95 = arith.constant 2 : i32
    %366 = arith.index_cast %c2_i32_95 : i32 to index
    %c0_96 = arith.constant 0 : index
    %c0_97 = arith.constant 0 : index
    %367 = vector.load %arg10[%366, %c0_96, %c0_97] : memref<8x8x512xf32, #tpu.memory_space<vmem>>, vector<1x8x512xf32>
    %368 = vector.shape_cast %367 : vector<1x8x512xf32> to vector<8x512xf32>
    %369 = arith.truncf %365 : vector<8x128xf32> to vector<8x128xbf16>
    %cst_98 = arith.constant dense<0.000000e+00> : vector<8x512xf32>
    %370 = tpu.matmul %369, %301, %cst_98 {dimension_numbers = #tpu.dot_dimension_numbers<[1], [0], [0], [1], [0, 0, 1, 1], [], []>} : vector<8x128xbf16>, vector<128x512xbf16>, vector<8x512xf32> -> vector<8x512xf32>
    %371 = arith.addf %368, %370 : vector<8x512xf32>
    %372 = vector.extract_strided_slice %371 {offsets = [0, 0], sizes = [8, 128], strides = [1, 1]} : vector<8x512xf32> to vector<8x128xf32>
    %373 = arith.negf %372 : vector<8x128xf32>
    %374 = math.exp %373 : vector<8x128xf32>
    %cst_99 = arith.constant 1.000000e+00 : f32
    %375 = vector.broadcast %cst_99 : f32 to vector<8x128xf32>
    %376 = arith.addf %375, %374 : vector<8x128xf32>
    %377 = arith.divf %375, %376 : vector<8x128xf32>
    %378 = vector.extract_strided_slice %371 {offsets = [0, 128], sizes = [8, 128], strides = [1, 1]} : vector<8x512xf32> to vector<8x128xf32>
    %379 = arith.negf %378 : vector<8x128xf32>
    %380 = math.exp %379 : vector<8x128xf32>
    %cst_100 = arith.constant 1.000000e+00 : f32
    %381 = vector.broadcast %cst_100 : f32 to vector<8x128xf32>
    %382 = arith.addf %381, %380 : vector<8x128xf32>
    %383 = arith.divf %381, %382 : vector<8x128xf32>
    %384 = vector.extract_strided_slice %371 {offsets = [0, 256], sizes = [8, 128], strides = [1, 1]} : vector<8x512xf32> to vector<8x128xf32>
    %385 = math.tanh %384 : vector<8x128xf32>
    %386 = vector.extract_strided_slice %371 {offsets = [0, 384], sizes = [8, 128], strides = [1, 1]} : vector<8x512xf32> to vector<8x128xf32>
    %387 = arith.negf %386 : vector<8x128xf32>
    %388 = math.exp %387 : vector<8x128xf32>
    %cst_101 = arith.constant 1.000000e+00 : f32
    %389 = vector.broadcast %cst_101 : f32 to vector<8x128xf32>
    %390 = arith.addf %389, %388 : vector<8x128xf32>
    %391 = arith.divf %389, %390 : vector<8x128xf32>
    %392 = arith.mulf %383, %363 : vector<8x128xf32>
    %393 = arith.mulf %377, %385 : vector<8x128xf32>
    %394 = arith.addf %392, %393 : vector<8x128xf32>
    %395 = math.tanh %394 : vector<8x128xf32>
    %396 = arith.mulf %391, %395 : vector<8x128xf32>
    %c3_i32_102 = arith.constant 3 : i32
    %397 = arith.index_cast %c3_i32_102 : i32 to index
    %c0_103 = arith.constant 0 : index
    %c0_104 = arith.constant 0 : index
    %398 = vector.load %arg10[%397, %c0_103, %c0_104] : memref<8x8x512xf32, #tpu.memory_space<vmem>>, vector<1x8x512xf32>
    %399 = vector.shape_cast %398 : vector<1x8x512xf32> to vector<8x512xf32>
    %400 = arith.truncf %396 : vector<8x128xf32> to vector<8x128xbf16>
    %cst_105 = arith.constant dense<0.000000e+00> : vector<8x512xf32>
    %401 = tpu.matmul %400, %301, %cst_105 {dimension_numbers = #tpu.dot_dimension_numbers<[1], [0], [0], [1], [0, 0, 1, 1], [], []>} : vector<8x128xbf16>, vector<128x512xbf16>, vector<8x512xf32> -> vector<8x512xf32>
    %402 = arith.addf %399, %401 : vector<8x512xf32>
    %403 = vector.extract_strided_slice %402 {offsets = [0, 0], sizes = [8, 128], strides = [1, 1]} : vector<8x512xf32> to vector<8x128xf32>
    %404 = arith.negf %403 : vector<8x128xf32>
    %405 = math.exp %404 : vector<8x128xf32>
    %cst_106 = arith.constant 1.000000e+00 : f32
    %406 = vector.broadcast %cst_106 : f32 to vector<8x128xf32>
    %407 = arith.addf %406, %405 : vector<8x128xf32>
    %408 = arith.divf %406, %407 : vector<8x128xf32>
    %409 = vector.extract_strided_slice %402 {offsets = [0, 128], sizes = [8, 128], strides = [1, 1]} : vector<8x512xf32> to vector<8x128xf32>
    %410 = arith.negf %409 : vector<8x128xf32>
    %411 = math.exp %410 : vector<8x128xf32>
    %cst_107 = arith.constant 1.000000e+00 : f32
    %412 = vector.broadcast %cst_107 : f32 to vector<8x128xf32>
    %413 = arith.addf %412, %411 : vector<8x128xf32>
    %414 = arith.divf %412, %413 : vector<8x128xf32>
    %415 = vector.extract_strided_slice %402 {offsets = [0, 256], sizes = [8, 128], strides = [1, 1]} : vector<8x512xf32> to vector<8x128xf32>
    %416 = math.tanh %415 : vector<8x128xf32>
    %417 = vector.extract_strided_slice %402 {offsets = [0, 384], sizes = [8, 128], strides = [1, 1]} : vector<8x512xf32> to vector<8x128xf32>
    %418 = arith.negf %417 : vector<8x128xf32>
    %419 = math.exp %418 : vector<8x128xf32>
    %cst_108 = arith.constant 1.000000e+00 : f32
    %420 = vector.broadcast %cst_108 : f32 to vector<8x128xf32>
    %421 = arith.addf %420, %419 : vector<8x128xf32>
    %422 = arith.divf %420, %421 : vector<8x128xf32>
    %423 = arith.mulf %414, %394 : vector<8x128xf32>
    %424 = arith.mulf %408, %416 : vector<8x128xf32>
    %425 = arith.addf %423, %424 : vector<8x128xf32>
    %426 = math.tanh %425 : vector<8x128xf32>
    %427 = arith.mulf %422, %426 : vector<8x128xf32>
    %c4_i32_109 = arith.constant 4 : i32
    %428 = arith.index_cast %c4_i32_109 : i32 to index
    %c0_110 = arith.constant 0 : index
    %c0_111 = arith.constant 0 : index
    %429 = vector.load %arg10[%428, %c0_110, %c0_111] : memref<8x8x512xf32, #tpu.memory_space<vmem>>, vector<1x8x512xf32>
    %430 = vector.shape_cast %429 : vector<1x8x512xf32> to vector<8x512xf32>
    %431 = arith.truncf %427 : vector<8x128xf32> to vector<8x128xbf16>
    %cst_112 = arith.constant dense<0.000000e+00> : vector<8x512xf32>
    %432 = tpu.matmul %431, %301, %cst_112 {dimension_numbers = #tpu.dot_dimension_numbers<[1], [0], [0], [1], [0, 0, 1, 1], [], []>} : vector<8x128xbf16>, vector<128x512xbf16>, vector<8x512xf32> -> vector<8x512xf32>
    %433 = arith.addf %430, %432 : vector<8x512xf32>
    %434 = vector.extract_strided_slice %433 {offsets = [0, 0], sizes = [8, 128], strides = [1, 1]} : vector<8x512xf32> to vector<8x128xf32>
    %435 = arith.negf %434 : vector<8x128xf32>
    %436 = math.exp %435 : vector<8x128xf32>
    %cst_113 = arith.constant 1.000000e+00 : f32
    %437 = vector.broadcast %cst_113 : f32 to vector<8x128xf32>
    %438 = arith.addf %437, %436 : vector<8x128xf32>
    %439 = arith.divf %437, %438 : vector<8x128xf32>
    %440 = vector.extract_strided_slice %433 {offsets = [0, 128], sizes = [8, 128], strides = [1, 1]} : vector<8x512xf32> to vector<8x128xf32>
    %441 = arith.negf %440 : vector<8x128xf32>
    %442 = math.exp %441 : vector<8x128xf32>
    %cst_114 = arith.constant 1.000000e+00 : f32
    %443 = vector.broadcast %cst_114 : f32 to vector<8x128xf32>
    %444 = arith.addf %443, %442 : vector<8x128xf32>
    %445 = arith.divf %443, %444 : vector<8x128xf32>
    %446 = vector.extract_strided_slice %433 {offsets = [0, 256], sizes = [8, 128], strides = [1, 1]} : vector<8x512xf32> to vector<8x128xf32>
    %447 = math.tanh %446 : vector<8x128xf32>
    %448 = vector.extract_strided_slice %433 {offsets = [0, 384], sizes = [8, 128], strides = [1, 1]} : vector<8x512xf32> to vector<8x128xf32>
    %449 = arith.negf %448 : vector<8x128xf32>
    %450 = math.exp %449 : vector<8x128xf32>
    %cst_115 = arith.constant 1.000000e+00 : f32
    %451 = vector.broadcast %cst_115 : f32 to vector<8x128xf32>
    %452 = arith.addf %451, %450 : vector<8x128xf32>
    %453 = arith.divf %451, %452 : vector<8x128xf32>
    %454 = arith.mulf %445, %425 : vector<8x128xf32>
    %455 = arith.mulf %439, %447 : vector<8x128xf32>
    %456 = arith.addf %454, %455 : vector<8x128xf32>
    %457 = math.tanh %456 : vector<8x128xf32>
    %458 = arith.mulf %453, %457 : vector<8x128xf32>
    %c5_i32_116 = arith.constant 5 : i32
    %459 = arith.index_cast %c5_i32_116 : i32 to index
    %c0_117 = arith.constant 0 : index
    %c0_118 = arith.constant 0 : index
    %460 = vector.load %arg10[%459, %c0_117, %c0_118] : memref<8x8x512xf32, #tpu.memory_space<vmem>>, vector<1x8x512xf32>
    %461 = vector.shape_cast %460 : vector<1x8x512xf32> to vector<8x512xf32>
    %462 = arith.truncf %458 : vector<8x128xf32> to vector<8x128xbf16>
    %cst_119 = arith.constant dense<0.000000e+00> : vector<8x512xf32>
    %463 = tpu.matmul %462, %301, %cst_119 {dimension_numbers = #tpu.dot_dimension_numbers<[1], [0], [0], [1], [0, 0, 1, 1], [], []>} : vector<8x128xbf16>, vector<128x512xbf16>, vector<8x512xf32> -> vector<8x512xf32>
    %464 = arith.addf %461, %463 : vector<8x512xf32>
    %465 = vector.extract_strided_slice %464 {offsets = [0, 0], sizes = [8, 128], strides = [1, 1]} : vector<8x512xf32> to vector<8x128xf32>
    %466 = arith.negf %465 : vector<8x128xf32>
    %467 = math.exp %466 : vector<8x128xf32>
    %cst_120 = arith.constant 1.000000e+00 : f32
    %468 = vector.broadcast %cst_120 : f32 to vector<8x128xf32>
    %469 = arith.addf %468, %467 : vector<8x128xf32>
    %470 = arith.divf %468, %469 : vector<8x128xf32>
    %471 = vector.extract_strided_slice %464 {offsets = [0, 128], sizes = [8, 128], strides = [1, 1]} : vector<8x512xf32> to vector<8x128xf32>
    %472 = arith.negf %471 : vector<8x128xf32>
    %473 = math.exp %472 : vector<8x128xf32>
    %cst_121 = arith.constant 1.000000e+00 : f32
    %474 = vector.broadcast %cst_121 : f32 to vector<8x128xf32>
    %475 = arith.addf %474, %473 : vector<8x128xf32>
    %476 = arith.divf %474, %475 : vector<8x128xf32>
    %477 = vector.extract_strided_slice %464 {offsets = [0, 256], sizes = [8, 128], strides = [1, 1]} : vector<8x512xf32> to vector<8x128xf32>
    %478 = math.tanh %477 : vector<8x128xf32>
    %479 = vector.extract_strided_slice %464 {offsets = [0, 384], sizes = [8, 128], strides = [1, 1]} : vector<8x512xf32> to vector<8x128xf32>
    %480 = arith.negf %479 : vector<8x128xf32>
    %481 = math.exp %480 : vector<8x128xf32>
    %cst_122 = arith.constant 1.000000e+00 : f32
    %482 = vector.broadcast %cst_122 : f32 to vector<8x128xf32>
    %483 = arith.addf %482, %481 : vector<8x128xf32>
    %484 = arith.divf %482, %483 : vector<8x128xf32>
    %485 = arith.mulf %476, %456 : vector<8x128xf32>
    %486 = arith.mulf %470, %478 : vector<8x128xf32>
    %487 = arith.addf %485, %486 : vector<8x128xf32>
    %488 = math.tanh %487 : vector<8x128xf32>
    %489 = arith.mulf %484, %488 : vector<8x128xf32>
    %c6_i32_123 = arith.constant 6 : i32
    %490 = arith.index_cast %c6_i32_123 : i32 to index
    %c0_124 = arith.constant 0 : index
    %c0_125 = arith.constant 0 : index
    %491 = vector.load %arg10[%490, %c0_124, %c0_125] : memref<8x8x512xf32, #tpu.memory_space<vmem>>, vector<1x8x512xf32>
    %492 = vector.shape_cast %491 : vector<1x8x512xf32> to vector<8x512xf32>
    %493 = arith.truncf %489 : vector<8x128xf32> to vector<8x128xbf16>
    %cst_126 = arith.constant dense<0.000000e+00> : vector<8x512xf32>
    %494 = tpu.matmul %493, %301, %cst_126 {dimension_numbers = #tpu.dot_dimension_numbers<[1], [0], [0], [1], [0, 0, 1, 1], [], []>} : vector<8x128xbf16>, vector<128x512xbf16>, vector<8x512xf32> -> vector<8x512xf32>
    %495 = arith.addf %492, %494 : vector<8x512xf32>
    %496 = vector.extract_strided_slice %495 {offsets = [0, 0], sizes = [8, 128], strides = [1, 1]} : vector<8x512xf32> to vector<8x128xf32>
    %497 = arith.negf %496 : vector<8x128xf32>
    %498 = math.exp %497 : vector<8x128xf32>
    %cst_127 = arith.constant 1.000000e+00 : f32
    %499 = vector.broadcast %cst_127 : f32 to vector<8x128xf32>
    %500 = arith.addf %499, %498 : vector<8x128xf32>
    %501 = arith.divf %499, %500 : vector<8x128xf32>
    %502 = vector.extract_strided_slice %495 {offsets = [0, 128], sizes = [8, 128], strides = [1, 1]} : vector<8x512xf32> to vector<8x128xf32>
    %503 = arith.negf %502 : vector<8x128xf32>
    %504 = math.exp %503 : vector<8x128xf32>
    %cst_128 = arith.constant 1.000000e+00 : f32
    %505 = vector.broadcast %cst_128 : f32 to vector<8x128xf32>
    %506 = arith.addf %505, %504 : vector<8x128xf32>
    %507 = arith.divf %505, %506 : vector<8x128xf32>
    %508 = vector.extract_strided_slice %495 {offsets = [0, 256], sizes = [8, 128], strides = [1, 1]} : vector<8x512xf32> to vector<8x128xf32>
    %509 = math.tanh %508 : vector<8x128xf32>
    %510 = vector.extract_strided_slice %495 {offsets = [0, 384], sizes = [8, 128], strides = [1, 1]} : vector<8x512xf32> to vector<8x128xf32>
    %511 = arith.negf %510 : vector<8x128xf32>
    %512 = math.exp %511 : vector<8x128xf32>
    %cst_129 = arith.constant 1.000000e+00 : f32
    %513 = vector.broadcast %cst_129 : f32 to vector<8x128xf32>
    %514 = arith.addf %513, %512 : vector<8x128xf32>
    %515 = arith.divf %513, %514 : vector<8x128xf32>
    %516 = arith.mulf %507, %487 : vector<8x128xf32>
    %517 = arith.mulf %501, %509 : vector<8x128xf32>
    %518 = arith.addf %516, %517 : vector<8x128xf32>
    %519 = math.tanh %518 : vector<8x128xf32>
    %520 = arith.mulf %515, %519 : vector<8x128xf32>
    %c7_i32_130 = arith.constant 7 : i32
    %521 = arith.index_cast %c7_i32_130 : i32 to index
    %c0_131 = arith.constant 0 : index
    %c0_132 = arith.constant 0 : index
    %522 = vector.load %arg10[%521, %c0_131, %c0_132] : memref<8x8x512xf32, #tpu.memory_space<vmem>>, vector<1x8x512xf32>
    %523 = vector.shape_cast %522 : vector<1x8x512xf32> to vector<8x512xf32>
    %524 = arith.truncf %520 : vector<8x128xf32> to vector<8x128xbf16>
    %cst_133 = arith.constant dense<0.000000e+00> : vector<8x512xf32>
    %525 = tpu.matmul %524, %301, %cst_133 {dimension_numbers = #tpu.dot_dimension_numbers<[1], [0], [0], [1], [0, 0, 1, 1], [], []>} : vector<8x128xbf16>, vector<128x512xbf16>, vector<8x512xf32> -> vector<8x512xf32>
    %526 = arith.addf %523, %525 : vector<8x512xf32>
    %527 = vector.extract_strided_slice %526 {offsets = [0, 0], sizes = [8, 128], strides = [1, 1]} : vector<8x512xf32> to vector<8x128xf32>
    %528 = arith.negf %527 : vector<8x128xf32>
    %529 = math.exp %528 : vector<8x128xf32>
    %cst_134 = arith.constant 1.000000e+00 : f32
    %530 = vector.broadcast %cst_134 : f32 to vector<8x128xf32>
    %531 = arith.addf %530, %529 : vector<8x128xf32>
    %532 = arith.divf %530, %531 : vector<8x128xf32>
    %533 = vector.extract_strided_slice %526 {offsets = [0, 128], sizes = [8, 128], strides = [1, 1]} : vector<8x512xf32> to vector<8x128xf32>
    %534 = arith.negf %533 : vector<8x128xf32>
    %535 = math.exp %534 : vector<8x128xf32>
    %cst_135 = arith.constant 1.000000e+00 : f32
    %536 = vector.broadcast %cst_135 : f32 to vector<8x128xf32>
    %537 = arith.addf %536, %535 : vector<8x128xf32>
    %538 = arith.divf %536, %537 : vector<8x128xf32>
    %539 = vector.extract_strided_slice %526 {offsets = [0, 256], sizes = [8, 128], strides = [1, 1]} : vector<8x512xf32> to vector<8x128xf32>
    %540 = math.tanh %539 : vector<8x128xf32>
    %541 = vector.extract_strided_slice %526 {offsets = [0, 384], sizes = [8, 128], strides = [1, 1]} : vector<8x512xf32> to vector<8x128xf32>
    %542 = arith.negf %541 : vector<8x128xf32>
    %543 = math.exp %542 : vector<8x128xf32>
    %cst_136 = arith.constant 1.000000e+00 : f32
    %544 = vector.broadcast %cst_136 : f32 to vector<8x128xf32>
    %545 = arith.addf %544, %543 : vector<8x128xf32>
    %546 = arith.divf %544, %545 : vector<8x128xf32>
    %547 = arith.mulf %538, %518 : vector<8x128xf32>
    %548 = arith.mulf %532, %540 : vector<8x128xf32>
    %549 = arith.addf %547, %548 : vector<8x128xf32>
    %550 = math.tanh %549 : vector<8x128xf32>
    %551 = arith.mulf %546, %550 : vector<8x128xf32>
    %c8_i32_137 = arith.constant 8 : i32
    %c0_138 = arith.constant 0 : index
    %c0_139 = arith.constant 0 : index
    %552 = vector.load %arg6[%c0_138, %c0_139] : memref<128x128xf32, #tpu.memory_space<vmem>>, vector<128x128xf32>
    %cst_140 = arith.constant dense<0.000000e+00> : vector<8x128xf32>
    %553 = tpu.matmul %551, %552, %cst_140 {dimension_numbers = #tpu.dot_dimension_numbers<[1], [0], [0], [1], [0, 0, 1, 1], [], []>} : vector<8x128xf32>, vector<128x128xf32>, vector<8x128xf32> -> vector<8x128xf32>
    %c0_141 = arith.constant 0 : index
    %c0_142 = arith.constant 0 : index
    %554 = vector.load %arg7[%c0_141, %c0_142] : memref<1x128xf32, #tpu.memory_space<vmem>>, vector<1x128xf32>
    %555 = vector.broadcast %554 : vector<1x128xf32> to vector<8x128xf32>
    %556 = arith.addf %553, %555 : vector<8x128xf32>
    %557 = arith.negf %556 : vector<8x128xf32>
    %558 = math.exp %557 : vector<8x128xf32>
    %cst_143 = arith.constant 1.000000e+00 : f32
    %559 = vector.broadcast %cst_143 : f32 to vector<8x128xf32>
    %560 = arith.addf %559, %558 : vector<8x128xf32>
    %561 = arith.divf %559, %560 : vector<8x128xf32>
    %c0_144 = arith.constant 0 : index
    %c0_145 = arith.constant 0 : index
    %562 = vector.load %arg8[%c0_144, %c0_145] : memref<8x128xf32, #tpu.memory_space<vmem>>, vector<8x128xf32>
    tpu.vector_store %arg8[%c0_144, %c0_145], %561 {strides = array<i32>} : memref<8x128xf32, #tpu.memory_space<vmem>>, vector<8x128xf32>,
    return
  }
  func.func @transform_0(%arg0: i32) -> (i32, i32, i32) {
    %c0_i32 = arith.constant 0 : i32
    %c0_i32_0 = arith.constant 0 : i32
    %c0_i32_1 = arith.constant 0 : i32
    return %c0_i32, %arg0, %c0_i32_0 : i32, i32, i32
  }
  func.func @transform_1(%arg0: i32) -> (i32, i32) {
    %c0_i32 = arith.constant 0 : i32
    %c0_i32_0 = arith.constant 0 : i32
    %c0_i32_1 = arith.constant 0 : i32
    return %c0_i32, %c0_i32_0 : i32, i32
  }
  func.func @transform_2(%arg0: i32) -> (i32, i32) {
    %c0_i32 = arith.constant 0 : i32
    %c0_i32_0 = arith.constant 0 : i32
    %c0_i32_1 = arith.constant 0 : i32
    return %c0_i32, %c0_i32_0 : i32, i32
  }
  func.func @transform_3(%arg0: i32) -> (i32, i32) {
    %c0_i32 = arith.constant 0 : i32
    %c0_i32_0 = arith.constant 0 : i32
    %c0_i32_1 = arith.constant 0 : i32
    return %c0_i32, %c0_i32_0 : i32, i32
  }
  func.func @transform_4(%arg0: i32) -> (i32, i32) {
    %c0_i32 = arith.constant 0 : i32
    %c0_i32_0 = arith.constant 0 : i32
    %c0_i32_1 = arith.constant 0 : i32
    return %c0_i32, %c0_i32_0 : i32, i32
  }
  func.func @transform_5(%arg0: i32) -> (i32, i32) {
    %c0_i32 = arith.constant 0 : i32
    %c0_i32_0 = arith.constant 0 : i32
    %c0_i32_1 = arith.constant 0 : i32
    return %c0_i32, %c0_i32_0 : i32, i32
  }
  func.func @transform_6(%arg0: i32) -> (i32, i32) {
    %c0_i32 = arith.constant 0 : i32
    %c0_i32_0 = arith.constant 0 : i32
    %c0_i32_1 = arith.constant 0 : i32
    return %c0_i32, %c0_i32_0 : i32, i32
  }
  func.func @transform_7(%arg0: i32) -> (i32, i32) {
    %c0_i32 = arith.constant 0 : i32
    %c0_i32_0 = arith.constant 0 : i32
    return %arg0, %c0_i32 : i32, i32
  }
}

</mosaic_0001>

<bundles_post_ra>
// kernel: sentiment_lstm_forward.1
= control target key start
LH: loop header
LB: loop body
LE: loop exit
PB: predicated region body
PF: predicated region fallthrough
CT: control target
= control target key end

     0   :  { %v5162_v1 = vmov 0   ;;  %vm3571_vm0 = vmmov 0   ;;  %s5154_s1 = inlined_call_operand.vmem [shape: bf16[128,512], index: 1, kind: input, shape index: {}]   ;;  %s5155_s0 = inlined_call_operand.vmem [shape: f32[8,8,512], index: 0, kind: input, shape index: {}]   ;;  %s5156_s2 = inlined_call_operand.vmem [shape: bf16[128,512], index: 2, kind: input, shape index: {}]   ;;  %s5157_s4 = inlined_call_operand.vmem [shape: bf16[128,512], index: 4, kind: input, shape index: {}]   ;;  %s5158_s3 = inlined_call_operand.vmem [shape: f32[1,512], index: 3, kind: input, shape index: {}]   ;;  %s5159_s5 = inlined_call_operand.vmem [shape: f32[128,128], index: 5, kind: input, shape index: {}]   ;;  %s5160_s6 = inlined_call_operand.vmem [shape: f32[1,128], index: 6, kind: input, shape index: {}]   ;;  %s5161_s7 = inlined_call_operand.vmem [shape: f32[8,128], index: 7, kind: output, shape index: {}]  }
   0x1   :  { %v3616_v0 = vld [vmem:[%s5154_s1 + $0x4] ss:$16 sps:$4 sm:$0xff]   ;;  %255 = vmatprep.mubr.bf16.mxu0 %v5162_v1  ;;  %296 = vmatprep.mubr.bf16.mxu1 %v5162_v1  ;;  %v3623_v2 = vld [vmem:[%s5154_s1] ss:$16 sps:$4 sm:$0xff]   ;;  %v3646_v6 = vld [vmem:[%s5154_s1 + $0xc] ss:$16 sps:$4 sm:$0xff]  }
   0x2   :  { %223 = vmatprep.subr.bf16.mxu0 %v3616_v0  ;;  %v3629_v3 = vld [vmem:[%s5154_s1 + $0x24] ss:$16 sps:$4 sm:$0xff]   ;;  %v3635_v4 = vld [vmem:[%s5154_s1 + $0x20] ss:$16 sps:$4 sm:$0xff]   ;;  %v3651_v7 = vld [vmem:[%s5154_s1 + $0x8] ss:$16 sps:$4 sm:$0xff]   ;;  %264 = vmatprep.subr.bf16.mxu1 %v3646_v6 }
   0x3   :  { %224 = vmatpush1.bf16.msra.mxu0 %v3623_v2  ;;  %v3641_v5 = vld [vmem:[%s5154_s1 + $0x44] ss:$16 sps:$4 sm:$0xff]   ;;  %v3657_v8 = vld [vmem:[%s5154_s1 + $0x40] ss:$16 sps:$4 sm:$0xff]   ;;  %265 = vmatpush1.bf16.msra.mxu1 %v3651_v7  ;;  %v3670_v10 = vld [vmem:[%s5154_s1 + $0x2c] ss:$16 sps:$4 sm:$0xff]  }
   0x4   :  { %225 = vmatprep.subr.bf16.mxu0 %v3629_v3  ;;  %v3664_v9 = vld [vmem:[%s5154_s1 + $0x64] ss:$16 sps:$4 sm:$0xff]   ;;  %v3675_v11 = vld [vmem:[%s5154_s1 + $0x28] ss:$16 sps:$4 sm:$0xff]   ;;  %266 = vmatprep.subr.bf16.mxu1 %v3670_v10  ;;  %v3682_v12 = vld [vmem:[%s5154_s1 + $0x60] ss:$16 sps:$4 sm:$0xff]  }
   0x5   :  { %v3687_v13 = vld [vmem:[%s5154_s1 + $0x84] ss:$16 sps:$4 sm:$0xff]   ;;  %v3692_v14 = vld [vmem:[%s5154_s1 + $0x4c] ss:$16 sps:$4 sm:$0xff]   ;;  %v3699_v15 = vld [vmem:[%s5154_s1 + $0x48] ss:$16 sps:$4 sm:$0xff]  }
   0x6   :  { %v3705_v16 = vld [vmem:[%s5154_s1 + $0x6c] ss:$16 sps:$4 sm:$0xff]   ;;  %v3711_v17 = vld [vmem:[%s5154_s1 + $0x80] ss:$16 sps:$4 sm:$0xff]   ;;  %v3717_v18 = vld [vmem:[%s5154_s1 + $0xa4] ss:$16 sps:$4 sm:$0xff]  }
   0x7   :  { %226 = vmatpush1.bf16.msra.mxu0 %v3635_v4  ;;  %267 = vmatpush1.bf16.msra.mxu1 %v3675_v11  ;;  %v3723_v19 = vld [vmem:[%s5154_s1 + $0x68] ss:$16 sps:$4 sm:$0xff]   ;;  %v3729_v20 = vld [vmem:[%s5154_s1 + $0x8c] ss:$16 sps:$4 sm:$0xff]   ;;  %v3735_v21 = vld [vmem:[%s5154_s1 + $0xa0] ss:$16 sps:$4 sm:$0xff]  }
   0x8   :  { %227 = vmatprep.subr.bf16.mxu0 %v3641_v5  ;;  %268 = vmatprep.subr.bf16.mxu1 %v3692_v14  ;;  %v3740_v22 = vld [vmem:[%s5154_s1 + $0xc4] ss:$16 sps:$4 sm:$0xff]   ;;  %v3747_v23 = vld [vmem:[%s5154_s1 + $0x88] ss:$16 sps:$4 sm:$0xff]   ;;  %v3753_v24 = vld [vmem:[%s5154_s1 + $0xac] ss:$16 sps:$4 sm:$0xff]  }
   0x9   :  { %v3759_v25 = vld [vmem:[%s5154_s1 + $0xc0] ss:$16 sps:$4 sm:$0xff]   ;;  %v3765_v26 = vld [vmem:[%s5154_s1 + $0xe4] ss:$16 sps:$4 sm:$0xff]   ;;  %v3771_v27 = vld [vmem:[%s5154_s1 + $0xa8] ss:$16 sps:$4 sm:$0xff]  }
   0xa   :  { %v3777_v28 = vld [vmem:[%s5154_s1 + $0xcc] ss:$16 sps:$4 sm:$0xff]   ;;  %v3783_v29 = vld [vmem:[%s5154_s1 + $0xe0] ss:$16 sps:$4 sm:$0xff]   ;;  %v3790_v30 = vld [vmem:[%s5154_s1 + $0xc8] ss:$16 sps:$4 sm:$0xff]  }
   0xb   :  { %228 = vmatpush1.bf16.msra.mxu0 %v3657_v8  ;;  %269 = vmatpush1.bf16.msra.mxu1 %v3699_v15  ;;  %v3796_v31 = vld [vmem:[%s5154_s1 + $0xec] ss:$16 sps:$4 sm:$0xff]   ;;  %v3803_v32 = vld [vmem:[%s5154_s1 + $0xe8] ss:$16 sps:$4 sm:$0xff]   ;;  %v59_v33 = vld [vmem:[%s5155_s0] sm:$0xff] }
   0xc   :  { %229 = vmatprep.subr.bf16.mxu0 %v3664_v9  ;;  %270 = vmatprep.subr.bf16.mxu1 %v3705_v16  ;;  %v60_v34 = vld [vmem:[%s5155_s0 + $0x8] sm:$0xff]  ;;  %v62_v43 = vld [vmem:[%s5155_s0 + $0x18] sm:$0xff]  ;;  %v61_v49 = vld [vmem:[%s5155_s0 + $0x10] sm:$0xff] }
   0xf   :  { %230 = vmatpush1.bf16.msra.mxu0 %v3682_v12  ;;  %271 = vmatpush1.bf16.msra.mxu1 %v3723_v19 }
  0x10   :  { %231 = vmatprep.subr.bf16.mxu0 %v3687_v13  ;;  %272 = vmatprep.subr.bf16.mxu1 %v3729_v20 }
  0x13   :  { %232 = vmatpush1.bf16.msra.mxu0 %v3711_v17  ;;  %273 = vmatpush1.bf16.msra.mxu1 %v3747_v23 }
  0x14   :  { %233 = vmatprep.subr.bf16.mxu0 %v3717_v18  ;;  %274 = vmatprep.subr.bf16.mxu1 %v3753_v24 }
  0x17   :  { %234 = vmatpush1.bf16.msra.mxu0 %v3735_v21  ;;  %275 = vmatpush1.bf16.msra.mxu1 %v3771_v27 }
  0x18   :  { %235 = vmatprep.subr.bf16.mxu0 %v3740_v22  ;;  %276 = vmatprep.subr.bf16.mxu1 %v3777_v28 }
  0x1b   :  { %236 = vmatpush1.bf16.msra.mxu0 %v3759_v25  ;;  %277 = vmatpush1.bf16.msra.mxu1 %v3790_v30 }
  0x1c   :  { %237 = vmatprep.subr.bf16.mxu0 %v3765_v26  ;;  %278 = vmatprep.subr.bf16.mxu1 %v3796_v31 }
  0x1f   :  { %238 = vmatpush1.bf16.msra.mxu0 %v3783_v29  ;;  %279 = vmatpush1.bf16.msra.mxu1 %v3803_v32 }
  0x20   :  { %340 = vmatprep.subr.bf16.mxu0 %v3616_v0  ;;  %381 = vmatprep.subr.bf16.mxu1 %v3646_v6 }
  0x22   :  { %256 = vmatmul.mubr.bf16.vlgmr.msra.gmra.mrb[0].mxu0 %v5162_v1  ;;  %297 = vmatmul.mubr.bf16.vlgmr.msra.gmra.mrb[0].mxu1 %v5162_v1 }
  0x23   :  { %341 = vmatpush1.bf16.msra.mxu0 %v3623_v2  ;;  %372 = vmatprep.mubr.bf16.mxu0 %v5162_v1 }
  0x24   :  { %342 = vmatprep.subr.bf16.mxu0 %v3629_v3  ;;  %382 = vmatpush1.bf16.msra.mxu1 %v3651_v7 }
  0x25   :  { %383 = vmatprep.subr.bf16.mxu1 %v3670_v10  ;;  %413 = vmatprep.mubr.bf16.mxu1 %v5162_v1 }
  0x27   :  { %343 = vmatpush1.bf16.msra.mxu0 %v3635_v4 }
  0x28   :  { %344 = vmatprep.subr.bf16.mxu0 %v3641_v5  ;;  %384 = vmatpush1.bf16.msra.mxu1 %v3675_v11 }
  0x29   :  { %385 = vmatprep.subr.bf16.mxu1 %v3692_v14 }
  0x2b   :  { %345 = vmatpush1.bf16.msra.mxu0 %v3657_v8 }
  0x2c   :  { %346 = vmatprep.subr.bf16.mxu0 %v3664_v9  ;;  %386 = vmatpush1.bf16.msra.mxu1 %v3699_v15 }
  0x2d   :  { %387 = vmatprep.subr.bf16.mxu1 %v3705_v16 }
  0x2f   :  { %347 = vmatpush1.bf16.msra.mxu0 %v3682_v12 }
  0x30   :  { %348 = vmatprep.subr.bf16.mxu0 %v3687_v13  ;;  %388 = vmatpush1.bf16.msra.mxu1 %v3723_v19 }
  0x31   :  { %389 = vmatprep.subr.bf16.mxu1 %v3729_v20 }
  0x33   :  { %349 = vmatpush1.bf16.msra.mxu0 %v3711_v17 }
  0x34   :  { %350 = vmatprep.subr.bf16.mxu0 %v3717_v18  ;;  %390 = vmatpush1.bf16.msra.mxu1 %v3747_v23 }
  0x35   :  { %391 = vmatprep.subr.bf16.mxu1 %v3753_v24 }
  0x37   :  { %351 = vmatpush1.bf16.msra.mxu0 %v3735_v21 }
  0x38   :  { %352 = vmatprep.subr.bf16.mxu0 %v3740_v22  ;;  %392 = vmatpush1.bf16.msra.mxu1 %v3771_v27 }
  0x39   :  { %393 = vmatprep.subr.bf16.mxu1 %v3777_v28 }
  0x3b   :  { %353 = vmatpush1.bf16.msra.mxu0 %v3759_v25 }
  0x3c   :  { %354 = vmatprep.subr.bf16.mxu0 %v3765_v26  ;;  %394 = vmatpush1.bf16.msra.mxu1 %v3790_v30 }
  0x3d   :  { %395 = vmatprep.subr.bf16.mxu1 %v3796_v31 }
  0x3f   :  { %355 = vmatpush1.bf16.msra.mxu0 %v3783_v29 }
  0x40   :  { %458 = vmatprep.subr.bf16.mxu0 %v3616_v0  ;;  %396 = vmatpush1.bf16.msra.mxu1 %v3803_v32 }
  0x41   :  { %499 = vmatprep.subr.bf16.mxu1 %v3646_v6 }
  0xf5   :  { %v257_v35 = vpop.f32.mrb[0].mxu0  ;;  %v298_v44 = vpop.f32.mrb[0].mxu1 }
  0xf6   :  { %v305_v36 = vadd.f32 %v257_v35, %v59_v33  ;;  %v259_v37 = vpop.f32.mrb[1].mxu0  ;;  %v300_v45 = vpop.f32.mrb[1].mxu1  ;;  %v307_v51 = vadd.f32 %v298_v44, %v61_v49 }
  0xf7   :  { %v306_v38 = vadd.f32 %v259_v37, %v60_v34  ;;  %v261_v39 = vpop.f32.mrb[2].mxu0  ;;  %v308_v46 = vadd.f32 %v300_v45, %v62_v43  ;;  %v302_v47 = vpop.f32.mrb[2].mxu1  ;;  %v2874_v37 = vld [vmem:[%s5155_s0 + $0x20] sm:$0xff] }
  0xf8   :  { %v2871_v40 = vmul.f32 -1.442695, %v305_v36  ;;  %v262_v41 = vpop.f32.mrb[3].mxu0  ;;  %v303_v48 = vpop.f32.mrb[3].mxu1 }
  0xf9   :  { %v2872_v42 = vmul.f32 -1.442695, %v306_v38  ;;  %v2873_v50 = vmul.f32 -1.442695, %v308_v46  ;;  %v2875_v38 = vld [vmem:[%s5155_s0 + $0x28] sm:$0xff] }
  0xfa   :  { %3245 = vpow2.f32 %v2871_v40 }
  0xfb   :  { %3247 = vpow2.f32 %v2872_v42 }
  0xfc   :  { %3249 = vpow2.f32 %v2873_v50 }
  0xfd   :  { %3251 = vtanh.f32 %v307_v51  ;;  %v2877_v51 = vld [vmem:[%s5155_s0 + $0x38] sm:$0xff] }
 0x104   :  { %v3246_v52 = vpop.eup %3245 }
 0x105   :  { %v3248_v53 = vpop.eup %3247  ;;  %v312_v54 = vadd.f32 1.0, %v3246_v52 }
 0x106   :  { %v318_v55 = vadd.f32 1.0, %v3248_v53  ;;  %v3250_v56 = vpop.eup %3249  ;;  %v2876_v53 = vld [vmem:[%s5155_s0 + $0x30] sm:$0xff] }
 0x107   :  { %3253 = vrcp.f32 %v312_v54  ;;  %v3252_v57 = vpop.eup %3251  ;;  %v325_v59 = vadd.f32 1.0, %v3250_v56 }
 0x108   :  { %3255 = vrcp.f32 %v318_v55 }
 0x109   :  { %3257 = vrcp.f32 %v325_v59 }
 0x111   :  { %v3254_v58 = vpop.eup %3253 }
 0x112   :  { %v3256_v60 = vpop.eup %3255  ;;  %v329_v61 = vmul.f32 %v3254_v58, %v3252_v57 }
 0x113   :  { %v328_v62 = vmul.f32 0.0, %v3256_v60  ;;  %v3258_v33 = vpop.eup %3257 }
 0x115   :  { %v3857_v63 = vadd.f32 %v329_v61, %v328_v62 }
 0x117   :  { %3259 = vtanh.f32 %v3857_v63 }
 0x121   :  { %v3260_v34 = vpop.eup %3259 }
 0x122   :  { %v332_v35 = vmul.f32 %v3260_v34, %v3258_v33 }
 0x124   :  { %v333_v36 = vpack.c.bf16 %v332_v35, %v332_v35 }
 0x126   :  { %334 = vst [vmem:[#allocation2] sm:$0xf] %v333_v36  ;;  %373 = vmatmul.mubr.bf16.vlgmr.msra.gmra.mrb[4].mxu0 %v333_v36  ;;  %414 = vmatmul.mubr.bf16.vlgmr.msra.gmra.mrb[4].mxu1 %v333_v36 }
 0x127   :  { %459 = vmatpush1.bf16.msra.mxu0 %v3623_v2  ;;  %500 = vmatpush1.bf16.msra.mxu1 %v3651_v7 }
 0x128   :  { %460 = vmatprep.subr.bf16.mxu0 %v3629_v3  ;;  %501 = vmatprep.subr.bf16.mxu1 %v3670_v10 }
 0x129   :  { %490 = vmatprep.mubr.bf16.mxu0 %v5162_v1  ;;  %531 = vmatprep.mubr.bf16.mxu1 %v5162_v1 }
 0x12b   :  { %461 = vmatpush1.bf16.msra.mxu0 %v3635_v4  ;;  %502 = vmatpush1.bf16.msra.mxu1 %v3675_v11 }
 0x12c   :  { %462 = vmatprep.subr.bf16.mxu0 %v3641_v5  ;;  %503 = vmatprep.subr.bf16.mxu1 %v3692_v14 }
 0x12f   :  { %463 = vmatpush1.bf16.msra.mxu0 %v3657_v8  ;;  %504 = vmatpush1.bf16.msra.mxu1 %v3699_v15 }
 0x130   :  { %464 = vmatprep.subr.bf16.mxu0 %v3664_v9  ;;  %505 = vmatprep.subr.bf16.mxu1 %v3705_v16 }
 0x133   :  { %465 = vmatpush1.bf16.msra.mxu0 %v3682_v12  ;;  %506 = vmatpush1.bf16.msra.mxu1 %v3723_v19 }
 0x134   :  { %466 = vmatprep.subr.bf16.mxu0 %v3687_v13  ;;  %507 = vmatprep.subr.bf16.mxu1 %v3729_v20 }
 0x137   :  { %467 = vmatpush1.bf16.msra.mxu0 %v3711_v17  ;;  %508 = vmatpush1.bf16.msra.mxu1 %v3747_v23 }
 0x138   :  { %468 = vmatprep.subr.bf16.mxu0 %v3717_v18  ;;  %509 = vmatprep.subr.bf16.mxu1 %v3753_v24 }
 0x13b   :  { %469 = vmatpush1.bf16.msra.mxu0 %v3735_v21  ;;  %510 = vmatpush1.bf16.msra.mxu1 %v3771_v27 }
 0x13c   :  { %470 = vmatprep.subr.bf16.mxu0 %v3740_v22  ;;  %511 = vmatprep.subr.bf16.mxu1 %v3777_v28 }
 0x13f   :  { %471 = vmatpush1.bf16.msra.mxu0 %v3759_v25  ;;  %512 = vmatpush1.bf16.msra.mxu1 %v3790_v30 }
 0x140   :  { %472 = vmatprep.subr.bf16.mxu0 %v3765_v26  ;;  %513 = vmatprep.subr.bf16.mxu1 %v3796_v31 }
 0x143   :  { %473 = vmatpush1.bf16.msra.mxu0 %v3783_v29  ;;  %514 = vmatpush1.bf16.msra.mxu1 %v3803_v32 }
 0x144   :  { %576 = vmatprep.subr.bf16.mxu0 %v3616_v0  ;;  %617 = vmatprep.subr.bf16.mxu1 %v3646_v6 }
 0x1f9   :  { %v374_v39 = vpop.f32.mrb[4].mxu0  ;;  %v415_v40 = vpop.f32.mrb[4].mxu1 }
 0x1fa   :  { %v422_v41 = vadd.f32 %v2874_v37, %v374_v39  ;;  %v376_v42 = vpop.f32.mrb[5].mxu0  ;;  %v417_v43 = vpop.f32.mrb[5].mxu1  ;;  %v424_v55 = vadd.f32 %v2876_v53, %v415_v40 }
 0x1fb   :  { %v423_v44 = vadd.f32 %v2875_v38, %v376_v42  ;;  %v378_v45 = vpop.f32.mrb[6].mxu0  ;;  %v419_v46 = vpop.f32.mrb[6].mxu1  ;;  %v425_v52 = vadd.f32 %v2877_v51, %v417_v43  ;;  %v2882_v42 = vld [vmem:[%s5155_s0 + $0x48] sm:$0xff] }
 0x1fc   :  { %v2878_v47 = vmul.f32 -1.442695, %v422_v41  ;;  %v379_v48 = vpop.f32.mrb[7].mxu0  ;;  %v420_v49 = vpop.f32.mrb[7].mxu1 }
 0x1fd   :  { %v2879_v50 = vmul.f32 -1.442695, %v423_v44  ;;  %v2880_v54 = vmul.f32 -1.442695, %v425_v52 }
 0x1fe   :  { %3261 = vpow2.f32 %v2878_v47 }
 0x1ff   :  { %3263 = vpow2.f32 %v2879_v50 }
 0x200   :  { %3265 = vpow2.f32 %v2880_v54 }
 0x201   :  { %3267 = vtanh.f32 %v424_v55  ;;  %v2884_v55 = vld [vmem:[%s5155_s0 + $0x58] sm:$0xff] }
 0x208   :  { %v3262_v56 = vpop.eup %3261 }
 0x209   :  { %v3264_v57 = vpop.eup %3263  ;;  %v429_v58 = vadd.f32 1.0, %v3262_v56 }
 0x20a   :  { %v435_v59 = vadd.f32 1.0, %v3264_v57  ;;  %v3266_v60 = vpop.eup %3265  ;;  %v2883_v57 = vld [vmem:[%s5155_s0 + $0x50] sm:$0xff] }
 0x20b   :  { %3269 = vrcp.f32 %v429_v58  ;;  %v3268_v61 = vpop.eup %3267  ;;  %v442_v35 = vadd.f32 1.0, %v3266_v60 }
 0x20c   :  { %3271 = vrcp.f32 %v435_v59 }
 0x20d   :  { %3273 = vrcp.f32 %v442_v35 }
 0x215   :  { %v3270_v62 = vpop.eup %3269 }
 0x216   :  { %v3272_v33 = vpop.eup %3271  ;;  %v446_v34 = vmul.f32 %v3270_v62, %v3268_v61 }
 0x217   :  { %v445_v36 = vmul.f32 %v3272_v33, %v3857_v63  ;;  %v3274_v38 = vpop.eup %3273  ;;  %v2881_v63 = vld [vmem:[%s5155_s0 + $0x40] sm:$0xff] }
 0x219   :  { %v3907_v37 = vadd.f32 %v446_v34, %v445_v36 }
 0x21b   :  { %3275 = vtanh.f32 %v3907_v37 }
 0x225   :  { %v3276_v39 = vpop.eup %3275 }
 0x226   :  { %v449_v40 = vmul.f32 %v3276_v39, %v3274_v38 }
 0x228   :  { %v450_v41 = vpack.c.bf16 %v449_v40, %v449_v40 }
 0x22a   :  { %452 = vst [vmem:[#allocation2 + $0x4] sm:$0xf] %v450_v41  ;;  %491 = vmatmul.mubr.bf16.vlgmr.msra.gmra.mrb[8].mxu0 %v450_v41  ;;  %532 = vmatmul.mubr.bf16.vlgmr.msra.gmra.mrb[8].mxu1 %v450_v41 }
 0x22b   :  { %577 = vmatpush1.bf16.msra.mxu0 %v3623_v2  ;;  %618 = vmatpush1.bf16.msra.mxu1 %v3651_v7 }
 0x22c   :  { %578 = vmatprep.subr.bf16.mxu0 %v3629_v3  ;;  %619 = vmatprep.subr.bf16.mxu1 %v3670_v10 }
 0x22d   :  { %608 = vmatprep.mubr.bf16.mxu0 %v5162_v1  ;;  %649 = vmatprep.mubr.bf16.mxu1 %v5162_v1 }
 0x22f   :  { %579 = vmatpush1.bf16.msra.mxu0 %v3635_v4  ;;  %620 = vmatpush1.bf16.msra.mxu1 %v3675_v11 }
 0x230   :  { %580 = vmatprep.subr.bf16.mxu0 %v3641_v5  ;;  %621 = vmatprep.subr.bf16.mxu1 %v3692_v14 }
 0x233   :  { %581 = vmatpush1.bf16.msra.mxu0 %v3657_v8  ;;  %622 = vmatpush1.bf16.msra.mxu1 %v3699_v15 }
 0x234   :  { %582 = vmatprep.subr.bf16.mxu0 %v3664_v9  ;;  %623 = vmatprep.subr.bf16.mxu1 %v3705_v16 }
 0x237   :  { %583 = vmatpush1.bf16.msra.mxu0 %v3682_v12  ;;  %624 = vmatpush1.bf16.msra.mxu1 %v3723_v19 }
 0x238   :  { %584 = vmatprep.subr.bf16.mxu0 %v3687_v13  ;;  %625 = vmatprep.subr.bf16.mxu1 %v3729_v20 }
 0x23b   :  { %585 = vmatpush1.bf16.msra.mxu0 %v3711_v17  ;;  %626 = vmatpush1.bf16.msra.mxu1 %v3747_v23 }
 0x23c   :  { %586 = vmatprep.subr.bf16.mxu0 %v3717_v18  ;;  %627 = vmatprep.subr.bf16.mxu1 %v3753_v24 }
 0x23f   :  { %587 = vmatpush1.bf16.msra.mxu0 %v3735_v21  ;;  %628 = vmatpush1.bf16.msra.mxu1 %v3771_v27 }
 0x240   :  { %588 = vmatprep.subr.bf16.mxu0 %v3740_v22  ;;  %629 = vmatprep.subr.bf16.mxu1 %v3777_v28 }
 0x243   :  { %589 = vmatpush1.bf16.msra.mxu0 %v3759_v25  ;;  %630 = vmatpush1.bf16.msra.mxu1 %v3790_v30 }
 0x244   :  { %590 = vmatprep.subr.bf16.mxu0 %v3765_v26  ;;  %631 = vmatprep.subr.bf16.mxu1 %v3796_v31 }
 0x247   :  { %591 = vmatpush1.bf16.msra.mxu0 %v3783_v29  ;;  %632 = vmatpush1.bf16.msra.mxu1 %v3803_v32 }
 0x248   :  { %694 = vmatprep.subr.bf16.mxu0 %v3616_v0  ;;  %735 = vmatprep.subr.bf16.mxu1 %v3646_v6 }
 0x2fd   :  { %v492_v43 = vpop.f32.mrb[8].mxu0  ;;  %v533_v44 = vpop.f32.mrb[8].mxu1 }
 0x2fe   :  { %v540_v45 = vadd.f32 %v2881_v63, %v492_v43  ;;  %v494_v46 = vpop.f32.mrb[9].mxu0  ;;  %v535_v47 = vpop.f32.mrb[9].mxu1  ;;  %v542_v59 = vadd.f32 %v2883_v57, %v533_v44 }
 0x2ff   :  { %v541_v48 = vadd.f32 %v2882_v42, %v494_v46  ;;  %v496_v49 = vpop.f32.mrb[10].mxu0  ;;  %v537_v50 = vpop.f32.mrb[10].mxu1  ;;  %v543_v56 = vadd.f32 %v2884_v55, %v535_v47  ;;  %v2889_v46 = vld [vmem:[%s5155_s0 + $0x68] sm:$0xff] }
 0x300   :  { %v2885_v51 = vmul.f32 -1.442695, %v540_v45  ;;  %v497_v52 = vpop.f32.mrb[11].mxu0  ;;  %v538_v53 = vpop.f32.mrb[11].mxu1 }
 0x301   :  { %v2886_v54 = vmul.f32 -1.442695, %v541_v48  ;;  %v2887_v58 = vmul.f32 -1.442695, %v543_v56 }
 0x302   :  { %3277 = vpow2.f32 %v2885_v51 }
 0x303   :  { %3279 = vpow2.f32 %v2886_v54 }
 0x304   :  { %3281 = vpow2.f32 %v2887_v58 }
 0x305   :  { %3283 = vtanh.f32 %v542_v59  ;;  %v2891_v59 = vld [vmem:[%s5155_s0 + $0x78] sm:$0xff] }
 0x30c   :  { %v3278_v60 = vpop.eup %3277 }
 0x30d   :  { %v3280_v61 = vpop.eup %3279  ;;  %v547_v62 = vadd.f32 1.0, %v3278_v60 }
 0x30e   :  { %v553_v33 = vadd.f32 1.0, %v3280_v61  ;;  %v3282_v34 = vpop.eup %3281  ;;  %v2890_v61 = vld [vmem:[%s5155_s0 + $0x70] sm:$0xff] }
 0x30f   :  { %3285 = vrcp.f32 %v547_v62  ;;  %v3284_v35 = vpop.eup %3283  ;;  %v560_v40 = vadd.f32 1.0, %v3282_v34 }
 0x310   :  { %3287 = vrcp.f32 %v553_v33 }
 0x311   :  { %3289 = vrcp.f32 %v560_v40 }
 0x319   :  { %v3286_v36 = vpop.eup %3285 }
 0x31a   :  { %v3288_v38 = vpop.eup %3287  ;;  %v564_v39 = vmul.f32 %v3286_v36, %v3284_v35 }
 0x31b   :  { %v563_v41 = vmul.f32 %v3288_v38, %v3907_v37  ;;  %v3290_v42 = vpop.eup %3289  ;;  %v2888_v37 = vld [vmem:[%s5155_s0 + $0x60] sm:$0xff] }
 0x31d   :  { %v3957_v63 = vadd.f32 %v564_v39, %v563_v41 }
 0x31f   :  { %3291 = vtanh.f32 %v3957_v63 }
 0x329   :  { %v3292_v43 = vpop.eup %3291 }
 0x32a   :  { %v567_v44 = vmul.f32 %v3292_v43, %v3290_v42 }
 0x32c   :  { %v568_v45 = vpack.c.bf16 %v567_v44, %v567_v44 }
 0x32e   :  { %570 = vst [vmem:[#allocation2 + $0x8] sm:$0xf] %v568_v45  ;;  %609 = vmatmul.mubr.bf16.vlgmr.msra.gmra.mrb[12].mxu0 %v568_v45  ;;  %650 = vmatmul.mubr.bf16.vlgmr.msra.gmra.mrb[12].mxu1 %v568_v45 }
 0x32f   :  { %695 = vmatpush1.bf16.msra.mxu0 %v3623_v2  ;;  %736 = vmatpush1.bf16.msra.mxu1 %v3651_v7 }
 0x330   :  { %696 = vmatprep.subr.bf16.mxu0 %v3629_v3  ;;  %737 = vmatprep.subr.bf16.mxu1 %v3670_v10 }
 0x331   :  { %726 = vmatprep.mubr.bf16.mxu0 %v5162_v1  ;;  %767 = vmatprep.mubr.bf16.mxu1 %v5162_v1 }
 0x333   :  { %697 = vmatpush1.bf16.msra.mxu0 %v3635_v4  ;;  %738 = vmatpush1.bf16.msra.mxu1 %v3675_v11 }
 0x334   :  { %698 = vmatprep.subr.bf16.mxu0 %v3641_v5  ;;  %739 = vmatprep.subr.bf16.mxu1 %v3692_v14 }
 0x337   :  { %699 = vmatpush1.bf16.msra.mxu0 %v3657_v8  ;;  %740 = vmatpush1.bf16.msra.mxu1 %v3699_v15 }
 0x338   :  { %700 = vmatprep.subr.bf16.mxu0 %v3664_v9  ;;  %741 = vmatprep.subr.bf16.mxu1 %v3705_v16 }
 0x33b   :  { %701 = vmatpush1.bf16.msra.mxu0 %v3682_v12  ;;  %742 = vmatpush1.bf16.msra.mxu1 %v3723_v19 }
 0x33c   :  { %702 = vmatprep.subr.bf16.mxu0 %v3687_v13  ;;  %743 = vmatprep.subr.bf16.mxu1 %v3729_v20 }
 0x33f   :  { %703 = vmatpush1.bf16.msra.mxu0 %v3711_v17  ;;  %744 = vmatpush1.bf16.msra.mxu1 %v3747_v23 }
 0x340   :  { %704 = vmatprep.subr.bf16.mxu0 %v3717_v18  ;;  %745 = vmatprep.subr.bf16.mxu1 %v3753_v24 }
 0x343   :  { %705 = vmatpush1.bf16.msra.mxu0 %v3735_v21  ;;  %746 = vmatpush1.bf16.msra.mxu1 %v3771_v27 }
 0x344   :  { %706 = vmatprep.subr.bf16.mxu0 %v3740_v22  ;;  %747 = vmatprep.subr.bf16.mxu1 %v3777_v28 }
 0x347   :  { %707 = vmatpush1.bf16.msra.mxu0 %v3759_v25  ;;  %748 = vmatpush1.bf16.msra.mxu1 %v3790_v30 }
 0x348   :  { %708 = vmatprep.subr.bf16.mxu0 %v3765_v26  ;;  %749 = vmatprep.subr.bf16.mxu1 %v3796_v31 }
 0x34b   :  { %709 = vmatpush1.bf16.msra.mxu0 %v3783_v29  ;;  %750 = vmatpush1.bf16.msra.mxu1 %v3803_v32 }
 0x34c   :  { %812 = vmatprep.subr.bf16.mxu0 %v3616_v0  ;;  %853 = vmatprep.subr.bf16.mxu1 %v3646_v6 }
 0x401   :  { %v610_v47 = vpop.f32.mrb[12].mxu0  ;;  %v651_v48 = vpop.f32.mrb[12].mxu1 }
 0x402   :  { %v658_v49 = vadd.f32 %v2888_v37, %v610_v47  ;;  %v612_v50 = vpop.f32.mrb[13].mxu0  ;;  %v653_v51 = vpop.f32.mrb[13].mxu1  ;;  %v660_v33 = vadd.f32 %v2890_v61, %v651_v48  ;;  %v2898_v61 = vld [vmem:[%s5155_s0 + $0x98] sm:$0xff] }
 0x403   :  { %v659_v52 = vadd.f32 %v2889_v46, %v612_v50  ;;  %v614_v53 = vpop.f32.mrb[14].mxu0  ;;  %v655_v54 = vpop.f32.mrb[14].mxu1  ;;  %v661_v60 = vadd.f32 %v2891_v59, %v653_v51  ;;  %v2896_v50 = vld [vmem:[%s5155_s0 + $0x88] sm:$0xff] }
 0x404   :  { %v2892_v55 = vmul.f32 -1.442695, %v658_v49  ;;  %v615_v56 = vpop.f32.mrb[15].mxu0  ;;  %v656_v57 = vpop.f32.mrb[15].mxu1 }
 0x405   :  { %v2893_v58 = vmul.f32 -1.442695, %v659_v52  ;;  %v2894_v62 = vmul.f32 -1.442695, %v661_v60 }
 0x406   :  { %3293 = vpow2.f32 %v2892_v55 }
 0x407   :  { %3295 = vpow2.f32 %v2893_v58 }
 0x408   :  { %3297 = vpow2.f32 %v2894_v62 }
 0x409   :  { %3299 = vtanh.f32 %v660_v33  ;;  %v2897_v33 = vld [vmem:[%s5155_s0 + $0x90] sm:$0xff] }
 0x410   :  { %v3294_v34 = vpop.eup %3293 }
 0x411   :  { %v3296_v35 = vpop.eup %3295  ;;  %v665_v36 = vadd.f32 1.0, %v3294_v34 }
 0x412   :  { %v671_v38 = vadd.f32 1.0, %v3296_v35  ;;  %v3298_v39 = vpop.eup %3297 }
 0x413   :  { %3301 = vrcp.f32 %v665_v36  ;;  %v3300_v40 = vpop.eup %3299  ;;  %v678_v44 = vadd.f32 1.0, %v3298_v39 }
 0x414   :  { %3303 = vrcp.f32 %v671_v38 }
 0x415   :  { %3305 = vrcp.f32 %v678_v44 }
 0x41d   :  { %v3302_v41 = vpop.eup %3301 }
 0x41e   :  { %v3304_v42 = vpop.eup %3303  ;;  %v682_v43 = vmul.f32 %v3302_v41, %v3300_v40 }
 0x41f   :  { %v681_v45 = vmul.f32 %v3304_v42, %v3957_v63  ;;  %v3306_v46 = vpop.eup %3305  ;;  %v2895_v63 = vld [vmem:[%s5155_s0 + $0x80] sm:$0xff] }
 0x421   :  { %v4007_v37 = vadd.f32 %v682_v43, %v681_v45 }
 0x423   :  { %3307 = vtanh.f32 %v4007_v37 }
 0x42d   :  { %v3308_v47 = vpop.eup %3307 }
 0x42e   :  { %v685_v48 = vmul.f32 %v3308_v47, %v3306_v46 }
 0x430   :  { %v686_v49 = vpack.c.bf16 %v685_v48, %v685_v48 }
 0x432   :  { %688 = vst [vmem:[#allocation2 + $0xc] sm:$0xf] %v686_v49  ;;  %727 = vmatmul.mubr.bf16.vlgmr.msra.gmra.mrb[16].mxu0 %v686_v49  ;;  %768 = vmatmul.mubr.bf16.vlgmr.msra.gmra.mrb[16].mxu1 %v686_v49 }
 0x433   :  { %813 = vmatpush1.bf16.msra.mxu0 %v3623_v2  ;;  %854 = vmatpush1.bf16.msra.mxu1 %v3651_v7 }
 0x434   :  { %814 = vmatprep.subr.bf16.mxu0 %v3629_v3  ;;  %855 = vmatprep.subr.bf16.mxu1 %v3670_v10 }
 0x435   :  { %844 = vmatprep.mubr.bf16.mxu0 %v5162_v1  ;;  %885 = vmatprep.mubr.bf16.mxu1 %v5162_v1 }
 0x437   :  { %815 = vmatpush1.bf16.msra.mxu0 %v3635_v4  ;;  %856 = vmatpush1.bf16.msra.mxu1 %v3675_v11 }
 0x438   :  { %816 = vmatprep.subr.bf16.mxu0 %v3641_v5  ;;  %857 = vmatprep.subr.bf16.mxu1 %v3692_v14 }
 0x43b   :  { %817 = vmatpush1.bf16.msra.mxu0 %v3657_v8  ;;  %858 = vmatpush1.bf16.msra.mxu1 %v3699_v15 }
 0x43c   :  { %818 = vmatprep.subr.bf16.mxu0 %v3664_v9  ;;  %859 = vmatprep.subr.bf16.mxu1 %v3705_v16 }
 0x43f   :  { %819 = vmatpush1.bf16.msra.mxu0 %v3682_v12  ;;  %860 = vmatpush1.bf16.msra.mxu1 %v3723_v19 }
 0x440   :  { %820 = vmatprep.subr.bf16.mxu0 %v3687_v13  ;;  %861 = vmatprep.subr.bf16.mxu1 %v3729_v20 }
 0x443   :  { %821 = vmatpush1.bf16.msra.mxu0 %v3711_v17  ;;  %862 = vmatpush1.bf16.msra.mxu1 %v3747_v23 }
 0x444   :  { %822 = vmatprep.subr.bf16.mxu0 %v3717_v18  ;;  %863 = vmatprep.subr.bf16.mxu1 %v3753_v24 }
 0x447   :  { %823 = vmatpush1.bf16.msra.mxu0 %v3735_v21  ;;  %864 = vmatpush1.bf16.msra.mxu1 %v3771_v27 }
 0x448   :  { %824 = vmatprep.subr.bf16.mxu0 %v3740_v22  ;;  %865 = vmatprep.subr.bf16.mxu1 %v3777_v28 }
 0x44b   :  { %825 = vmatpush1.bf16.msra.mxu0 %v3759_v25  ;;  %866 = vmatpush1.bf16.msra.mxu1 %v3790_v30 }
 0x44c   :  { %826 = vmatprep.subr.bf16.mxu0 %v3765_v26  ;;  %867 = vmatprep.subr.bf16.mxu1 %v3796_v31 }
 0x44f   :  { %827 = vmatpush1.bf16.msra.mxu0 %v3783_v29  ;;  %868 = vmatpush1.bf16.msra.mxu1 %v3803_v32 }
 0x450   :  { %930 = vmatprep.subr.bf16.mxu0 %v3616_v0  ;;  %971 = vmatprep.subr.bf16.mxu1 %v3646_v6 }
 0x505   :  { %v728_v51 = vpop.f32.mrb[16].mxu0  ;;  %v769_v52 = vpop.f32.mrb[16].mxu1 }
 0x506   :  { %v776_v53 = vadd.f32 %v2895_v63, %v728_v51  ;;  %v730_v54 = vpop.f32.mrb[17].mxu0  ;;  %v771_v55 = vpop.f32.mrb[17].mxu1  ;;  %v778_v35 = vadd.f32 %v2897_v33, %v769_v52  ;;  %v3514_v33 = vld [vmem:[%s5154_s1 + $0x4c] ss:$16 sps:$4 sm:$0xff]  }
 0x507   :  { %v777_v56 = vadd.f32 %v2896_v50, %v730_v54  ;;  %v732_v57 = vpop.f32.mrb[18].mxu0  ;;  %v773_v58 = vpop.f32.mrb[18].mxu1  ;;  %v779_v62 = vadd.f32 %v2898_v61, %v771_v55  ;;  %v3512_v61 = vld [vmem:[%s5154_s1 + $0x28] ss:$16 sps:$4 sm:$0xff]  }
 0x508   :  { %v2899_v59 = vmul.f32 -1.442695, %v776_v53  ;;  %v733_v0 = vpop.f32.mrb[19].mxu0  ;;  %v774_v60 = vpop.f32.mrb[19].mxu1  ;;  %v3507_v58 = vld [vmem:[%s5154_s1] ss:$16 sps:$4 sm:$0xff]  }
 0x509   :  { %v2900_v6 = vmul.f32 -1.442695, %v777_v56  ;;  %v2901_v34 = vmul.f32 -1.442695, %v779_v62  ;;  %v3509_v0 = vld [vmem:[%s5154_s1 + $0x24] ss:$16 sps:$4 sm:$0xff]  }
 0x50a   :  { %3309 = vpow2.f32 %v2899_v59  ;;  %v3508_v59 = vld [vmem:[%s5154_s1 + $0x8] ss:$16 sps:$4 sm:$0xff]   ;;  %v3510_v60 = vld [vmem:[%s5154_s1 + $0x2c] ss:$16 sps:$4 sm:$0xff]   ;;  %v3513_v62 = vld [vmem:[%s5154_s1 + $0x44] ss:$16 sps:$4 sm:$0xff]  }
 0x50b   :  { %3311 = vpow2.f32 %v2900_v6  ;;  %v3511_v6 = vld [vmem:[%s5154_s1 + $0x20] ss:$16 sps:$4 sm:$0xff]  }
 0x50c   :  { %3313 = vpow2.f32 %v2901_v34  ;;  %v3515_v34 = vld [vmem:[%s5154_s1 + $0x40] ss:$16 sps:$4 sm:$0xff]  }
 0x50d   :  { %3315 = vtanh.f32 %v778_v35  ;;  %v3516_v35 = vld [vmem:[%s5154_s1 + $0x48] ss:$16 sps:$4 sm:$0xff]  }
 0x514   :  { %v3310_v36 = vpop.eup %3309 }
 0x515   :  { %v3312_v38 = vpop.eup %3311  ;;  %v783_v39 = vadd.f32 1.0, %v3310_v36  ;;  %v3517_v36 = vld [vmem:[%s5154_s1 + $0x64] ss:$16 sps:$4 sm:$0xff]  }
 0x516   :  { %v789_v40 = vadd.f32 1.0, %v3312_v38  ;;  %v3314_v41 = vpop.eup %3313  ;;  %v3518_v38 = vld [vmem:[%s5154_s1 + $0x6c] ss:$16 sps:$4 sm:$0xff]  }
 0x517   :  { %3317 = vrcp.f32 %v783_v39  ;;  %v3316_v42 = vpop.eup %3315  ;;  %v796_v46 = vadd.f32 1.0, %v3314_v41  ;;  %v3519_v39 = vld [vmem:[%s5154_s1 + $0x60] ss:$16 sps:$4 sm:$0xff]   ;;  %v3521_v41 = vld [vmem:[%s5154_s1 + $0x84] ss:$16 sps:$4 sm:$0xff]  }
 0x518   :  { %3319 = vrcp.f32 %v789_v40  ;;  %v3520_v40 = vld [vmem:[%s5154_s1 + $0x68] ss:$16 sps:$4 sm:$0xff]  }
 0x519   :  { %3321 = vrcp.f32 %v796_v46  ;;  %v3526_v46 = vld [vmem:[%s5154_s1 + $0xac] ss:$16 sps:$4 sm:$0xff]  }
 0x521   :  { %v3318_v43 = vpop.eup %3317 }
 0x522   :  { %v3320_v44 = vpop.eup %3319  ;;  %v800_v45 = vmul.f32 %v3318_v43, %v3316_v42  ;;  %v3522_v42 = vld [vmem:[%s5154_s1 + $0x8c] ss:$16 sps:$4 sm:$0xff]   ;;  %v3523_v43 = vld [vmem:[%s5154_s1 + $0x80] ss:$16 sps:$4 sm:$0xff]  }
 0x523   :  { %v799_v47 = vmul.f32 %v3320_v44, %v4007_v37  ;;  %v3322_v49 = vpop.eup %3321  ;;  %v3524_v44 = vld [vmem:[%s5154_s1 + $0x88] ss:$16 sps:$4 sm:$0xff]  }
 0x525   :  { %v4057_v48 = vadd.f32 %v800_v45, %v799_v47  ;;  %v3525_v45 = vld [vmem:[%s5154_s1 + $0xa4] ss:$16 sps:$4 sm:$0xff]   ;;  %v3527_v47 = vld [vmem:[%s5154_s1 + $0xa0] ss:$16 sps:$4 sm:$0xff]  }
 0x527   :  { %3323 = vtanh.f32 %v4057_v48 }
 0x531   :  { %v3324_v63 = vpop.eup %3323 }
 0x532   :  { %v803_v50 = vmul.f32 %v3324_v63, %v3322_v49  ;;  %v3529_v49 = vld [vmem:[%s5154_s1 + $0xc4] ss:$16 sps:$4 sm:$0xff]   ;;  %v3530_v63 = vld [vmem:[%s5154_s1 + $0xcc] ss:$16 sps:$4 sm:$0xff]  }
 0x534   :  { %v804_v51 = vpack.c.bf16 %v803_v50, %v803_v50  ;;  %v3531_v50 = vld [vmem:[%s5154_s1 + $0xc0] ss:$16 sps:$4 sm:$0xff]  }
 0x536   :  { %806 = vst [vmem:[#allocation2 + $0x10] sm:$0xf] %v804_v51  ;;  %845 = vmatmul.mubr.bf16.vlgmr.msra.gmra.mrb[20].mxu0 %v804_v51  ;;  %886 = vmatmul.mubr.bf16.vlgmr.msra.gmra.mrb[20].mxu1 %v804_v51  ;;  %v3532_v51 = vld [vmem:[%s5154_s1 + $0xc8] ss:$16 sps:$4 sm:$0xff]  }
 0x537   :  { %931 = vmatpush1.bf16.msra.mxu0 %v3623_v2  ;;  %972 = vmatpush1.bf16.msra.mxu1 %v3651_v7  ;;  %v3505_v2 = vld [vmem:[%s5154_s1 + $0x4] ss:$16 sps:$4 sm:$0xff]  }
 0x538   :  { %932 = vmatprep.subr.bf16.mxu0 %v3629_v3  ;;  %973 = vmatprep.subr.bf16.mxu1 %v3670_v10  ;;  %v3506_v3 = vld [vmem:[%s5154_s1 + $0xc] ss:$16 sps:$4 sm:$0xff]  }
 0x539   :  { %962 = vmatprep.mubr.bf16.mxu0 %v5162_v1  ;;  %1003 = vmatprep.mubr.bf16.mxu1 %v5162_v1 }
 0x53b   :  { %933 = vmatpush1.bf16.msra.mxu0 %v3635_v4  ;;  %974 = vmatpush1.bf16.msra.mxu1 %v3675_v11  ;;  %v2902_v4 = vld [vmem:[%s5155_s0 + $0xa0] sm:$0xff] }
 0x53c   :  { %934 = vmatprep.subr.bf16.mxu0 %v3641_v5  ;;  %975 = vmatprep.subr.bf16.mxu1 %v3692_v14  ;;  %v2903_v5 = vld [vmem:[%s5155_s0 + $0xa8] sm:$0xff] }
 0x53f   :  { %935 = vmatpush1.bf16.msra.mxu0 %v3657_v8  ;;  %976 = vmatpush1.bf16.msra.mxu1 %v3699_v15 }
 0x540   :  { %936 = vmatprep.subr.bf16.mxu0 %v3664_v9  ;;  %977 = vmatprep.subr.bf16.mxu1 %v3705_v16 }
 0x543   :  { %937 = vmatpush1.bf16.msra.mxu0 %v3682_v12  ;;  %978 = vmatpush1.bf16.msra.mxu1 %v3723_v19  ;;  %v2905_v19 = vld [vmem:[%s5155_s0 + $0xb8] sm:$0xff] }
 0x544   :  { %938 = vmatprep.subr.bf16.mxu0 %v3687_v13  ;;  %979 = vmatprep.subr.bf16.mxu1 %v3729_v20 }
 0x547   :  { %939 = vmatpush1.bf16.msra.mxu0 %v3711_v17  ;;  %980 = vmatpush1.bf16.msra.mxu1 %v3747_v23 }
 0x548   :  { %940 = vmatprep.subr.bf16.mxu0 %v3717_v18  ;;  %981 = vmatprep.subr.bf16.mxu1 %v3753_v24 }
 0x54b   :  { %941 = vmatpush1.bf16.msra.mxu0 %v3735_v21  ;;  %982 = vmatpush1.bf16.msra.mxu1 %v3771_v27  ;;  %v2904_v21 = vld [vmem:[%s5155_s0 + $0xb0] sm:$0xff] }
 0x54c   :  { %942 = vmatprep.subr.bf16.mxu0 %v3740_v22  ;;  %983 = vmatprep.subr.bf16.mxu1 %v3777_v28 }
 0x54f   :  { %943 = vmatpush1.bf16.msra.mxu0 %v3759_v25  ;;  %984 = vmatpush1.bf16.msra.mxu1 %v3790_v30 }
 0x550   :  { %944 = vmatprep.subr.bf16.mxu0 %v3765_v26  ;;  %985 = vmatprep.subr.bf16.mxu1 %v3796_v31 }
 0x553   :  { %945 = vmatpush1.bf16.msra.mxu0 %v3783_v29  ;;  %986 = vmatpush1.bf16.msra.mxu1 %v3803_v32 }
 0x554   :  { %1048 = vmatprep.subr.bf16.mxu0 %v3505_v2  ;;  %1089 = vmatprep.subr.bf16.mxu1 %v3506_v3  ;;  %v3533_v2 = vld [vmem:[%s5154_s1 + $0xe4] ss:$16 sps:$4 sm:$0xff]   ;;  %v3534_v3 = vld [vmem:[%s5154_s1 + $0xec] ss:$16 sps:$4 sm:$0xff]  }
 0x609   :  { %v846_v7 = vpop.f32.mrb[20].mxu0  ;;  %v887_v8 = vpop.f32.mrb[20].mxu1 }
 0x60a   :  { %v894_v9 = vadd.f32 %v2902_v4, %v846_v7  ;;  %v848_v10 = vpop.f32.mrb[21].mxu0  ;;  %v889_v11 = vpop.f32.mrb[21].mxu1  ;;  %v896_v23 = vadd.f32 %v2904_v21, %v887_v8  ;;  %v3535_v4 = vld [vmem:[%s5154_s1 + $0xe0] ss:$16 sps:$4 sm:$0xff]   ;;  %v3147_v7 = vld [vmem:[%s5156_s2 + $0x4] ss:$16 sps:$4 sm:$0xff]  }
 0x60b   :  { %v895_v12 = vadd.f32 %v2903_v5, %v848_v10  ;;  %v850_v13 = vpop.f32.mrb[22].mxu0  ;;  %v891_v14 = vpop.f32.mrb[22].mxu1  ;;  %v897_v20 = vadd.f32 %v2905_v19, %v889_v11  ;;  %v3536_v5 = vld [vmem:[%s5154_s1 + $0xe8] ss:$16 sps:$4 sm:$0xff]   ;;  %v3150_v8 = vld [vmem:[%s5156_s2 + $0xc] ss:$16 sps:$4 sm:$0xff]  }
 0x60c   :  { %v2906_v15 = vmul.f32 -1.442695, %v894_v9  ;;  %v851_v16 = vpop.f32.mrb[23].mxu0  ;;  %v892_v17 = vpop.f32.mrb[23].mxu1  ;;  %v2909_v9 = vld [vmem:[%s5155_s0 + $0xc0] sm:$0xff]  ;;  %v2910_v10 = vld [vmem:[%s5155_s0 + $0xc8] sm:$0xff] }
 0x60d   :  { %v2907_v18 = vmul.f32 -1.442695, %v895_v12  ;;  %v2908_v22 = vmul.f32 -1.442695, %v897_v20 }
 0x60e   :  { %3325 = vpow2.f32 %v2906_v15 }
 0x60f   :  { %3327 = vpow2.f32 %v2907_v18 }
 0x610   :  { %3329 = vpow2.f32 %v2908_v22 }
 0x611   :  { %3331 = vtanh.f32 %v896_v23  ;;  %v2912_v23 = vld [vmem:[%s5155_s0 + $0xd8] sm:$0xff] }
 0x618   :  { %v3326_v24 = vpop.eup %3325 }
 0x619   :  { %v3328_v25 = vpop.eup %3327  ;;  %v901_v26 = vadd.f32 1.0, %v3326_v24 }
 0x61a   :  { %v907_v27 = vadd.f32 1.0, %v3328_v25  ;;  %v3330_v28 = vpop.eup %3329  ;;  %v2911_v25 = vld [vmem:[%s5155_s0 + $0xd0] sm:$0xff] }
 0x61b   :  { %3333 = vrcp.f32 %v901_v26  ;;  %v3332_v29 = vpop.eup %3331  ;;  %v914_v37 = vadd.f32 1.0, %v3330_v28 }
 0x61c   :  { %3335 = vrcp.f32 %v907_v27 }
 0x61d   :  { %3337 = vrcp.f32 %v914_v37 }
 0x625   :  { %v3334_v30 = vpop.eup %3333 }
 0x626   :  { %v3336_v31 = vpop.eup %3335  ;;  %v918_v32 = vmul.f32 %v3334_v30, %v3332_v29 }
 0x627   :  { %v917_v52 = vmul.f32 %v3336_v31, %v4057_v48  ;;  %v3338_v54 = vpop.eup %3337  ;;  %v3528_v48 = vld [vmem:[%s5154_s1 + $0xa8] ss:$16 sps:$4 sm:$0xff]  }
 0x629   :  { %v4111_v53 = vadd.f32 %v918_v32, %v917_v52 }
 0x62b   :  { %3339 = vtanh.f32 %v4111_v53 }
 0x635   :  { %v3340_v55 = vpop.eup %3339 }
 0x636   :  { %v921_v56 = vmul.f32 %v3340_v55, %v3338_v54 }
 0x638   :  { %v922_v57 = vpack.c.bf16 %v921_v56, %v921_v56 }
 0x63a   :  { %924 = vst [vmem:[#allocation2 + $0x14] sm:$0xf] %v922_v57  ;;  %963 = vmatmul.mubr.bf16.vlgmr.msra.gmra.mrb[24].mxu0 %v922_v57  ;;  %1004 = vmatmul.mubr.bf16.vlgmr.msra.gmra.mrb[24].mxu1 %v922_v57 }
 0x63b   :  { %1049 = vmatpush1.bf16.msra.mxu0 %v3507_v58  ;;  %1090 = vmatpush1.bf16.msra.mxu1 %v3508_v59 }
 0x63c   :  { %1050 = vmatprep.subr.bf16.mxu0 %v3509_v0  ;;  %1091 = vmatprep.subr.bf16.mxu1 %v3510_v60 }
 0x63d   :  { %1080 = vmatprep.mubr.bf16.mxu0 %v5162_v1  ;;  %1121 = vmatprep.mubr.bf16.mxu1 %v5162_v1 }
 0x63f   :  { %1051 = vmatpush1.bf16.msra.mxu0 %v3511_v6  ;;  %1092 = vmatpush1.bf16.msra.mxu1 %v3512_v61  ;;  %v3145_v6 = vld [vmem:[%s5156_s2] ss:$16 sps:$4 sm:$0xff]   ;;  %v3148_v61 = vld [vmem:[%s5156_s2 + $0x8] ss:$16 sps:$4 sm:$0xff]  }
 0x640   :  { %1052 = vmatprep.subr.bf16.mxu0 %v3513_v62  ;;  %1093 = vmatprep.subr.bf16.mxu1 %v3514_v33  ;;  %v3156_v33 = vld [vmem:[%s5156_s2 + $0x2c] ss:$16 sps:$4 sm:$0xff]  }
 0x643   :  { %1053 = vmatpush1.bf16.msra.mxu0 %v3515_v34  ;;  %1094 = vmatpush1.bf16.msra.mxu1 %v3516_v35  ;;  %v3151_v34 = vld [vmem:[%s5156_s2 + $0x20] ss:$16 sps:$4 sm:$0xff]   ;;  %v3154_v35 = vld [vmem:[%s5156_s2 + $0x28] ss:$16 sps:$4 sm:$0xff]  }
 0x644   :  { %1054 = vmatprep.subr.bf16.mxu0 %v3517_v36  ;;  %1095 = vmatprep.subr.bf16.mxu1 %v3518_v38  ;;  %v3159_v36 = vld [vmem:[%s5156_s2 + $0x44] ss:$16 sps:$4 sm:$0xff]   ;;  %v3162_v38 = vld [vmem:[%s5156_s2 + $0x4c] ss:$16 sps:$4 sm:$0xff]  }
 0x647   :  { %1055 = vmatpush1.bf16.msra.mxu0 %v3519_v39  ;;  %1096 = vmatpush1.bf16.msra.mxu1 %v3520_v40  ;;  %v3157_v39 = vld [vmem:[%s5156_s2 + $0x40] ss:$16 sps:$4 sm:$0xff]   ;;  %v3160_v40 = vld [vmem:[%s5156_s2 + $0x48] ss:$16 sps:$4 sm:$0xff]  }
 0x648   :  { %1056 = vmatprep.subr.bf16.mxu0 %v3521_v41  ;;  %1097 = vmatprep.subr.bf16.mxu1 %v3522_v42  ;;  %v3165_v41 = vld [vmem:[%s5156_s2 + $0x64] ss:$16 sps:$4 sm:$0xff]   ;;  %v3168_v42 = vld [vmem:[%s5156_s2 + $0x6c] ss:$16 sps:$4 sm:$0xff]  }
 0x64b   :  { %1057 = vmatpush1.bf16.msra.mxu0 %v3523_v43  ;;  %1098 = vmatpush1.bf16.msra.mxu1 %v3524_v44  ;;  %v3163_v43 = vld [vmem:[%s5156_s2 + $0x60] ss:$16 sps:$4 sm:$0xff]   ;;  %v3166_v44 = vld [vmem:[%s5156_s2 + $0x68] ss:$16 sps:$4 sm:$0xff]  }
 0x64c   :  { %1058 = vmatprep.subr.bf16.mxu0 %v3525_v45  ;;  %1099 = vmatprep.subr.bf16.mxu1 %v3526_v46  ;;  %v3171_v45 = vld [vmem:[%s5156_s2 + $0x84] ss:$16 sps:$4 sm:$0xff]   ;;  %v3174_v46 = vld [vmem:[%s5156_s2 + $0x8c] ss:$16 sps:$4 sm:$0xff]  }
 0x64f   :  { %1059 = vmatpush1.bf16.msra.mxu0 %v3527_v47  ;;  %1100 = vmatpush1.bf16.msra.mxu1 %v3528_v48  ;;  %v3169_v47 = vld [vmem:[%s5156_s2 + $0x80] ss:$16 sps:$4 sm:$0xff]   ;;  %v3172_v48 = vld [vmem:[%s5156_s2 + $0x88] ss:$16 sps:$4 sm:$0xff]  }
 0x650   :  { %1060 = vmatprep.subr.bf16.mxu0 %v3529_v49  ;;  %1101 = vmatprep.subr.bf16.mxu1 %v3530_v63  ;;  %v3177_v49 = vld [vmem:[%s5156_s2 + $0xa4] ss:$16 sps:$4 sm:$0xff]   ;;  %v3180_v63 = vld [vmem:[%s5156_s2 + $0xac] ss:$16 sps:$4 sm:$0xff]  }
 0x653   :  { %1061 = vmatpush1.bf16.msra.mxu0 %v3531_v50  ;;  %1102 = vmatpush1.bf16.msra.mxu1 %v3532_v51  ;;  %v3175_v50 = vld [vmem:[%s5156_s2 + $0xa0] ss:$16 sps:$4 sm:$0xff]   ;;  %v3178_v51 = vld [vmem:[%s5156_s2 + $0xa8] ss:$16 sps:$4 sm:$0xff]  }
 0x654   :  { %1062 = vmatprep.subr.bf16.mxu0 %v3533_v2  ;;  %1103 = vmatprep.subr.bf16.mxu1 %v3534_v3  ;;  %v3183_v2 = vld [vmem:[%s5156_s2 + $0xc4] ss:$16 sps:$4 sm:$0xff]   ;;  %v3186_v3 = vld [vmem:[%s5156_s2 + $0xcc] ss:$16 sps:$4 sm:$0xff]  }
 0x657   :  { %1063 = vmatpush1.bf16.msra.mxu0 %v3535_v4  ;;  %1104 = vmatpush1.bf16.msra.mxu1 %v3536_v5  ;;  %v3181_v4 = vld [vmem:[%s5156_s2 + $0xc0] ss:$16 sps:$4 sm:$0xff]   ;;  %v3184_v5 = vld [vmem:[%s5156_s2 + $0xc8] ss:$16 sps:$4 sm:$0xff]  }
 0x658   :  { %1385 = vmatprep.subr.bf16.mxu0 %v3147_v7  ;;  %1458 = vmatprep.subr.bf16.mxu1 %v3150_v8  ;;  %v3189_v7 = vld [vmem:[%s5156_s2 + $0xe4] ss:$16 sps:$4 sm:$0xff]   ;;  %v3192_v8 = vld [vmem:[%s5156_s2 + $0xec] ss:$16 sps:$4 sm:$0xff]  }
 0x70d   :  { %v964_v11 = vpop.f32.mrb[24].mxu0  ;;  %v1005_v12 = vpop.f32.mrb[24].mxu1 }
 0x70e   :  { %v1012_v13 = vadd.f32 %v2909_v9, %v964_v11  ;;  %v966_v14 = vpop.f32.mrb[25].mxu0  ;;  %v1007_v15 = vpop.f32.mrb[25].mxu1  ;;  %v1014_v27 = vadd.f32 %v2911_v25, %v1005_v12  ;;  %v3187_v9 = vld [vmem:[%s5156_s2 + $0xe0] ss:$16 sps:$4 sm:$0xff]   ;;  %v3194_v12 = vld [vmem:[#allocation2 + $0x8] sm:$0xff]  }
 0x70f   :  { %v1013_v16 = vadd.f32 %v2910_v10, %v966_v14  ;;  %v968_v17 = vpop.f32.mrb[26].mxu0  ;;  %v1009_v18 = vpop.f32.mrb[26].mxu1  ;;  %v1015_v24 = vadd.f32 %v2912_v23, %v1007_v15  ;;  %v3190_v10 = vld [vmem:[%s5156_s2 + $0xe8] ss:$16 sps:$4 sm:$0xff]   ;;  %v3193_v11 = vld [vmem:[#allocation2] sm:$0xff]  }
 0x710   :  { %v2913_v19 = vmul.f32 -1.442695, %v1012_v13  ;;  %v969_v20 = vpop.f32.mrb[27].mxu0  ;;  %v1010_v21 = vpop.f32.mrb[27].mxu1  ;;  %v3195_v13 = vld [vmem:[#allocation2 + $0x10] sm:$0xff]  }
 0x711   :  { %v2914_v22 = vmul.f32 -1.442695, %v1013_v16  ;;  %v2915_v26 = vmul.f32 -1.442695, %v1015_v24  ;;  %v4329_v14 = vld [vmem:[%s5157_s4 + $0x4] ss:$16 sps:$4 sm:$0xff]  }
 0x712   :  { %3341 = vpow2.f32 %v2913_v19  ;;  %v4334_v15 = vld [vmem:[%s5157_s4] ss:$16 sps:$4 sm:$0xff]   ;;  %v4340_v16 = vld [vmem:[%s5157_s4 + $0xc] ss:$16 sps:$4 sm:$0xff]   ;;  %v4345_v17 = vld [vmem:[%s5157_s4 + $0x8] ss:$16 sps:$4 sm:$0xff]  }
 0x713   :  { %3343 = vpow2.f32 %v2914_v22  ;;  %v4352_v18 = vld [vmem:[%s5157_s4 + $0x24] ss:$16 sps:$4 sm:$0xff]   ;;  %v4357_v19 = vld [vmem:[%s5157_s4 + $0x2c] ss:$16 sps:$4 sm:$0xff]   ;;  %v4363_v20 = vld [vmem:[%s5157_s4 + $0x20] ss:$16 sps:$4 sm:$0xff]  }
 0x714   :  { %3345 = vpow2.f32 %v2915_v26  ;;  %v4368_v21 = vld [vmem:[%s5157_s4 + $0x28] ss:$16 sps:$4 sm:$0xff]   ;;  %v4376_v22 = vld [vmem:[%s5157_s4 + $0x44] ss:$16 sps:$4 sm:$0xff]   ;;  %v4381_v23 = vld [vmem:[%s5157_s4 + $0x4c] ss:$16 sps:$4 sm:$0xff]  }
 0x715   :  { %3347 = vtanh.f32 %v1014_v27  ;;  %v4387_v24 = vld [vmem:[%s5157_s4 + $0x40] ss:$16 sps:$4 sm:$0xff]   ;;  %v4392_v25 = vld [vmem:[%s5157_s4 + $0x48] ss:$16 sps:$4 sm:$0xff]   ;;  %v4400_v26 = vld [vmem:[%s5157_s4 + $0x64] ss:$16 sps:$4 sm:$0xff]  }
 0x716   :  { %v4405_v27 = vld [vmem:[%s5157_s4 + $0x6c] ss:$16 sps:$4 sm:$0xff]  }
 0x71c   :  { %v3342_v28 = vpop.eup %3341 }
 0x71d   :  { %v3344_v29 = vpop.eup %3343  ;;  %v1019_v30 = vadd.f32 1.0, %v3342_v28  ;;  %v4411_v28 = vld [vmem:[%s5157_s4 + $0x60] ss:$16 sps:$4 sm:$0xff]  }
 0x71e   :  { %v1025_v31 = vadd.f32 1.0, %v3344_v29  ;;  %v3346_v32 = vpop.eup %3345  ;;  %v4416_v29 = vld [vmem:[%s5157_s4 + $0x68] ss:$16 sps:$4 sm:$0xff]  }
 0x71f   :  { %3349 = vrcp.f32 %v1019_v30  ;;  %v3348_v37 = vpop.eup %3347  ;;  %v1032_v56 = vadd.f32 1.0, %v3346_v32  ;;  %v4424_v30 = vld [vmem:[%s5157_s4 + $0x84] ss:$16 sps:$4 sm:$0xff]   ;;  %v4435_v32 = vld [vmem:[%s5157_s4 + $0x80] ss:$16 sps:$4 sm:$0xff]  }
 0x720   :  { %3351 = vrcp.f32 %v1025_v31  ;;  %v4429_v31 = vld [vmem:[%s5157_s4 + $0x8c] ss:$16 sps:$4 sm:$0xff]  }
 0x721   :  { %3353 = vrcp.f32 %v1032_v56  ;;  %v4463_v56 = vld [vmem:[%s5157_s4 + $0xc4] ss:$16 sps:$4 sm:$0xff]  }
 0x729   :  { %v3350_v52 = vpop.eup %3349 }
 0x72a   :  { %v3352_v54 = vpop.eup %3351  ;;  %v1036_v55 = vmul.f32 %v3350_v52, %v3348_v37  ;;  %v4440_v37 = vld [vmem:[%s5157_s4 + $0x88] ss:$16 sps:$4 sm:$0xff]   ;;  %v4448_v52 = vld [vmem:[%s5157_s4 + $0xa4] ss:$16 sps:$4 sm:$0xff]  }
 0x72b   :  { %v1035_v57 = vmul.f32 %v3352_v54, %v4111_v53  ;;  %v3354_v59 = vpop.eup %3353  ;;  %v3153_v53 = vld [vmem:[%s5156_s2 + $0x24] ss:$16 sps:$4 sm:$0xff]   ;;  %v4453_v54 = vld [vmem:[%s5157_s4 + $0xa0] ss:$16 sps:$4 sm:$0xff]  }
 0x72d   :  { %v4225_v58 = vadd.f32 %v1036_v55, %v1035_v57  ;;  %v4458_v55 = vld [vmem:[%s5157_s4 + $0xac] ss:$16 sps:$4 sm:$0xff]   ;;  %v4470_v57 = vld [vmem:[%s5157_s4 + $0xa8] ss:$16 sps:$4 sm:$0xff]  }
 0x72f   :  { %3355 = vtanh.f32 %v4225_v58 }
 0x739   :  { %v3356_v0 = vpop.eup %3355 }
 0x73a   :  { %v1039_v60 = vmul.f32 %v3356_v0, %v3354_v59  ;;  %v4478_v59 = vld [vmem:[%s5157_s4 + $0xcc] ss:$16 sps:$4 sm:$0xff]   ;;  %v4484_v0 = vld [vmem:[%s5157_s4 + $0xc0] ss:$16 sps:$4 sm:$0xff]  }
 0x73c   :  { %v1040_v62 = vpack.c.bf16 %v1039_v60, %v1039_v60  ;;  %v4489_v60 = vld [vmem:[%s5157_s4 + $0xc8] ss:$16 sps:$4 sm:$0xff]  }
 0x73e   :  { %1042 = vst [vmem:[#allocation2 + $0x18] sm:$0xf] %v1040_v62  ;;  %1081 = vmatmul.mubr.bf16.vlgmr.msra.gmra.mrb[28].mxu0 %v1040_v62  ;;  %1122 = vmatmul.mubr.bf16.vlgmr.msra.gmra.mrb[28].mxu1 %v1040_v62  ;;  %v4506_v62 = vld [vmem:[%s5157_s4 + $0xe0] ss:$16 sps:$4 sm:$0xff]  }
 0x73f   :  { %1386 = vmatpush1.bf16.msra.mxu0 %v3145_v6  ;;  %1459 = vmatpush1.bf16.msra.mxu1 %v3148_v61  ;;  %v4494_v6 = vld [vmem:[%s5157_s4 + $0xe4] ss:$16 sps:$4 sm:$0xff]   ;;  %v4500_v61 = vld [vmem:[%s5157_s4 + $0xec] ss:$16 sps:$4 sm:$0xff]  }
 0x740   :  { %1387 = vmatprep.subr.bf16.mxu0 %v3153_v53  ;;  %1460 = vmatprep.subr.bf16.mxu1 %v3156_v33  ;;  %v4513_v53 = vld [vmem:[%s5157_s4 + $0xe8] ss:$16 sps:$4 sm:$0xff]   ;;  %v2916_v33 = vld [vmem:[%s5155_s0 + $0xe0] sm:$0xff] }
 0x741   :  { %1417 = vmatprep.mubr.bf16.mxu0 %v5162_v1  ;;  %1490 = vmatprep.mubr.bf16.mxu1 %v5162_v1 }
 0x743   :  { %1388 = vmatpush1.bf16.msra.mxu0 %v3151_v34  ;;  %1461 = vmatpush1.bf16.msra.mxu1 %v3154_v35  ;;  %v2917_v34 = vld [vmem:[%s5155_s0 + $0xe8] sm:$0xff] }
 0x744   :  { %1389 = vmatprep.subr.bf16.mxu0 %v3159_v36  ;;  %1462 = vmatprep.subr.bf16.mxu1 %v3162_v38 }
 0x747   :  { %1390 = vmatpush1.bf16.msra.mxu0 %v3157_v39  ;;  %1463 = vmatpush1.bf16.msra.mxu1 %v3160_v40 }
 0x748   :  { %1391 = vmatprep.subr.bf16.mxu0 %v3165_v41  ;;  %1464 = vmatprep.subr.bf16.mxu1 %v3168_v42 }
 0x74b   :  { %1392 = vmatpush1.bf16.msra.mxu0 %v3163_v43  ;;  %1465 = vmatpush1.bf16.msra.mxu1 %v3166_v44 }
 0x74c   :  { %1393 = vmatprep.subr.bf16.mxu0 %v3171_v45  ;;  %1466 = vmatprep.subr.bf16.mxu1 %v3174_v46 }
 0x74f   :  { %1394 = vmatpush1.bf16.msra.mxu0 %v3169_v47  ;;  %1467 = vmatpush1.bf16.msra.mxu1 %v3172_v48  ;;  %v2919_v48 = vld [vmem:[%s5155_s0 + $0xf8] sm:$0xff] }
 0x750   :  { %1395 = vmatprep.subr.bf16.mxu0 %v3177_v49  ;;  %1468 = vmatprep.subr.bf16.mxu1 %v3180_v63  ;;  %v2918_v63 = vld [vmem:[%s5155_s0 + $0xf0] sm:$0xff] }
 0x753   :  { %1396 = vmatpush1.bf16.msra.mxu0 %v3175_v50  ;;  %1469 = vmatpush1.bf16.msra.mxu1 %v3178_v51 }
 0x754   :  { %1397 = vmatprep.subr.bf16.mxu0 %v3183_v2  ;;  %1470 = vmatprep.subr.bf16.mxu1 %v3186_v3 }
 0x757   :  { %1398 = vmatpush1.bf16.msra.mxu0 %v3181_v4  ;;  %1471 = vmatpush1.bf16.msra.mxu1 %v3184_v5 }
 0x758   :  { %1399 = vmatprep.subr.bf16.mxu0 %v3189_v7  ;;  %1472 = vmatprep.subr.bf16.mxu1 %v3192_v8 }
 0x75b   :  { %1400 = vmatpush1.bf16.msra.mxu0 %v3187_v9  ;;  %1473 = vmatpush1.bf16.msra.mxu1 %v3190_v10 }
 0x75c   :  { %1813 = vmatprep.subr.bf16.mxu0 %v4329_v14  ;;  %1854 = vmatprep.subr.bf16.mxu1 %v4340_v16 }
 0x75e   :  { %1418 = vmatmul.mubr.bf16.vlgmr.msra.gmra.mrb[32].mxu0 %v3193_v11  ;;  %1491 = vmatmul.mubr.bf16.vlgmr.msra.gmra.mrb[32].mxu1 %v3193_v11 }
 0x75f   :  { %1427 = vmatprep.mubr.bf16.mxu0 %v5162_v1  ;;  %1500 = vmatprep.mubr.bf16.mxu1 %v5162_v1 }
 0x760   :  { %1814 = vmatpush1.bf16.msra.mxu0 %v4334_v15  ;;  %1855 = vmatpush1.bf16.msra.mxu1 %v4345_v17 }
 0x761   :  { %1815 = vmatprep.subr.bf16.mxu0 %v4352_v18  ;;  %1856 = vmatprep.subr.bf16.mxu1 %v4357_v19 }
 0x764   :  { %1816 = vmatpush1.bf16.msra.mxu0 %v4363_v20  ;;  %1857 = vmatpush1.bf16.msra.mxu1 %v4368_v21 }
 0x765   :  { %1817 = vmatprep.subr.bf16.mxu0 %v4376_v22  ;;  %1858 = vmatprep.subr.bf16.mxu1 %v4381_v23 }
 0x766   :  { %1428 = vmatmul.mubr.bf16.gmra.mrb[36].mxu0 %v3194_v12  ;;  %1501 = vmatmul.mubr.bf16.gmra.mrb[36].mxu1 %v3194_v12 }
 0x767   :  { %1437 = vmatprep.mubr.bf16.mxu0 %v5162_v1  ;;  %1510 = vmatprep.mubr.bf16.mxu1 %v5162_v1 }
 0x768   :  { %1818 = vmatpush1.bf16.msra.mxu0 %v4387_v24  ;;  %1859 = vmatpush1.bf16.msra.mxu1 %v4392_v25 }
 0x769   :  { %1819 = vmatprep.subr.bf16.mxu0 %v4400_v26  ;;  %1860 = vmatprep.subr.bf16.mxu1 %v4405_v27 }
 0x76c   :  { %1820 = vmatpush1.bf16.msra.mxu0 %v4411_v28  ;;  %1861 = vmatpush1.bf16.msra.mxu1 %v4416_v29 }
 0x76d   :  { %1821 = vmatprep.subr.bf16.mxu0 %v4424_v30  ;;  %1862 = vmatprep.subr.bf16.mxu1 %v4429_v31 }
 0x76e   :  { %1438 = vmatmul.mubr.bf16.gmra.mrb[40].mxu0 %v3195_v13  ;;  %1511 = vmatmul.mubr.bf16.gmra.mrb[40].mxu1 %v3195_v13 }
 0x76f   :  { %1447 = vmatprep.mubr.bf16.mxu0 %v5162_v1  ;;  %1520 = vmatprep.mubr.bf16.mxu1 %v5162_v1 }
 0x770   :  { %1822 = vmatpush1.bf16.msra.mxu0 %v4435_v32  ;;  %1863 = vmatpush1.bf16.msra.mxu1 %v4440_v37 }
 0x771   :  { %1823 = vmatprep.subr.bf16.mxu0 %v4448_v52  ;;  %1864 = vmatprep.subr.bf16.mxu1 %v4458_v55 }
 0x774   :  { %1824 = vmatpush1.bf16.msra.mxu0 %v4453_v54  ;;  %1865 = vmatpush1.bf16.msra.mxu1 %v4470_v57 }
 0x775   :  { %1825 = vmatprep.subr.bf16.mxu0 %v4463_v56  ;;  %1866 = vmatprep.subr.bf16.mxu1 %v4478_v59 }
 0x778   :  { %1826 = vmatpush1.bf16.msra.mxu0 %v4484_v0  ;;  %1867 = vmatpush1.bf16.msra.mxu1 %v4489_v60 }
 0x779   :  { %1827 = vmatprep.subr.bf16.mxu0 %v4494_v6  ;;  %1868 = vmatprep.subr.bf16.mxu1 %v4500_v61 }
 0x77c   :  { %1828 = vmatpush1.bf16.msra.mxu0 %v4506_v62  ;;  %1869 = vmatpush1.bf16.msra.mxu1 %v4513_v53 }
 0x77d   :  { %1929 = vmatprep.subr.bf16.mxu0 %v4329_v14  ;;  %1970 = vmatprep.subr.bf16.mxu1 %v4340_v16 }
 0x811   :  { %v1082_v35 = vpop.f32.mrb[28].mxu0  ;;  %v1123_v36 = vpop.f32.mrb[28].mxu1 }
 0x812   :  { %v1130_v38 = vadd.f32 %v2916_v33, %v1082_v35  ;;  %v1084_v39 = vpop.f32.mrb[29].mxu0  ;;  %v1125_v40 = vpop.f32.mrb[29].mxu1  ;;  %v1132_v51 = vadd.f32 %v2918_v63, %v1123_v36 }
 0x813   :  { %v1131_v41 = vadd.f32 %v2917_v34, %v1084_v39  ;;  %v1086_v42 = vpop.f32.mrb[30].mxu0  ;;  %v1127_v43 = vpop.f32.mrb[30].mxu1  ;;  %v1133_v49 = vadd.f32 %v2919_v48, %v1125_v40 }
 0x814   :  { %v2920_v44 = vmul.f32 -1.442695, %v1130_v38  ;;  %v1087_v45 = vpop.f32.mrb[31].mxu0  ;;  %v1128_v46 = vpop.f32.mrb[31].mxu1 }
 0x815   :  { %v2921_v47 = vmul.f32 -1.442695, %v1131_v41  ;;  %v2922_v50 = vmul.f32 -1.442695, %v1133_v49 }
 0x816   :  { %3357 = vpow2.f32 %v2920_v44 }
 0x817   :  { %3359 = vpow2.f32 %v2921_v47 }
 0x818   :  { %3361 = vpow2.f32 %v2922_v50 }
 0x819   :  { %3363 = vtanh.f32 %v1132_v51 }
 0x820   :  { %v3358_v2 = vpop.eup %3357 }
 0x821   :  { %v3360_v3 = vpop.eup %3359  ;;  %v1137_v4 = vadd.f32 1.0, %v3358_v2 }
 0x822   :  { %v1143_v5 = vadd.f32 1.0, %v3360_v3  ;;  %v3362_v7 = vpop.eup %3361 }
 0x823   :  { %3365 = vrcp.f32 %v1137_v4  ;;  %v3364_v8 = vpop.eup %3363  ;;  %v1150_v12 = vadd.f32 1.0, %v3362_v7 }
 0x824   :  { %3367 = vrcp.f32 %v1143_v5 }
 0x825   :  { %3369 = vrcp.f32 %v1150_v12 }
 0x82d   :  { %v3366_v9 = vpop.eup %3365 }
 0x82e   :  { %v3368_v10 = vpop.eup %3367  ;;  %v1154_v11 = vmul.f32 %v3366_v9, %v3364_v8 }
 0x82f   :  { %v1153_v13 = vmul.f32 %v3368_v10, %v4225_v58  ;;  %v3370_v48 = vpop.eup %3369 }
 0x831   :  { %v1155_v33 = vadd.f32 %v1154_v11, %v1153_v13  ;;  %v4533_v34 = vpop.f32.mrb[32].mxu0  ;;  %v4535_v35 = vpop.f32.mrb[32].mxu1  ;;  %v1533_v13 = vlaneseq }
 0x832   :  { %v4537_v36 = vpop.f32.mrb[33].mxu0  ;;  %v4539_v38 = vpop.f32.mrb[33].mxu1 }
 0x833   :  { %3371 = vtanh.f32 %v1155_v33  ;;  %v4541_v39 = vpop.f32.mrb[34].mxu0  ;;  %v4543_v40 = vpop.f32.mrb[34].mxu1  ;;  %v1534_v33 = vshrl.u32 %v1533_v13, 7 }
 0x834   :  { %v4545_v41 = vpop.f32.mrb[35].mxu0  ;;  %v4547_v42 = vpop.f32.mrb[35].mxu1 }
 0x839   :  { %v4549_v58 = vpop.f32.mrb[36].mxu0  ;;  %v4551_v43 = vpop.f32.mrb[36].mxu1 }
 0x83a   :  { %v4553_v44 = vpop.f32.mrb[37].mxu0  ;;  %v4555_v45 = vpop.f32.mrb[37].mxu1 }
 0x83b   :  { %5164 = vst [vmem:[#allocation4_spill] sm:$0xff] %v4553_v44  ;;  %5165 = vst [vmem:[#allocation5_spill] sm:$0xff] %v4555_v45  ;;  %v4557_v46 = vpop.f32.mrb[38].mxu0  ;;  %v4559_v47 = vpop.f32.mrb[38].mxu1 }
 0x83c   :  { %5166 = vst [vmem:[#allocation6_spill] sm:$0xff] %v4557_v46  ;;  %5167 = vst [vmem:[#allocation7_spill] sm:$0xff] %v4559_v47  ;;  %v4561_v49 = vpop.f32.mrb[39].mxu0  ;;  %v4563_v63 = vpop.f32.mrb[39].mxu1 }
 0x83d   :  { %5168 = vst [vmem:[#allocation8_spill] sm:$0xff] %v4561_v49  ;;  %5169 = vst [vmem:[#allocation9_spill] sm:$0xff] %v4563_v63  ;;  %v3372_v50 = vpop.eup %3371 }
 0x83e   :  { %v1157_v51 = vmul.f32 %v3372_v50, %v3370_v48  ;;  %v1535_v48 = vsub.s32 0, %v1534_v33  ;;  %v1543_v50 = vsub.s32 2, %v1534_v33 }
 0x840   :  { %v1158_v2 = vpack.c.bf16 %v1157_v51, %v1157_v51  ;;  %v1531_v51 = vld [vmem:[%s5158_s3] sm:$0xf] }
 0x841   :  { %v4565_v3 = vpop.f32.mrb[40].mxu0  ;;  %v4567_v4 = vpop.f32.mrb[40].mxu1  ;;  %v4634_v13 = vrot.slane %v1531_v51, %v1535_v48 }
 0x842   :  { %5170 = vst [vmem:[#allocation10_spill] sm:$0xff] %v4565_v3  ;;  %5171 = vst [vmem:[#allocation11_spill] sm:$0xff] %v4567_v4  ;;  %v4569_v5 = vpop.f32.mrb[41].mxu0  ;;  %v4571_v7 = vpop.f32.mrb[41].mxu1 }
 0x843   :  { %1160 = vst [vmem:[#allocation2 + $0x1c] sm:$0xf] %v1158_v2  ;;  %5172 = vst [vmem:[#allocation12_spill] sm:$0xff] %v4569_v5  ;;  %v4573_v8 = vpop.f32.mrb[42].mxu0  ;;  %v4575_v9 = vpop.f32.mrb[42].mxu1  ;;  %v1539_v2 = vsub.s32 1, %v1534_v33  ;;  %v4636_v5 = vrot.slane %v1531_v51, %v1543_v50 }
 0x844   :  { %5173 = vst [vmem:[#allocation13_spill] sm:$0xff] %v4571_v7  ;;  %5174 = vst [vmem:[#allocation14_spill] sm:$0xff] %v4573_v8  ;;  %v4577_v10 = vpop.f32.mrb[43].mxu0  ;;  %v4579_v11 = vpop.f32.mrb[43].mxu1 }
 0x845   :  { %5175 = vst [vmem:[#allocation15_spill] sm:$0xff] %v4575_v9  ;;  %5176 = vst [vmem:[#allocation16_spill] sm:$0xff] %v4577_v10 }
 0x846   :  { %5177 = vst [vmem:[#allocation17_spill] sm:$0xff] %v4579_v11 }
 0x84a   :  { %v3234_v12 = vld [vmem:[#allocation2 + $0x18] sm:$0xff]  }
 0x84b   :  { %1448 = vmatmul.mubr.bf16.gmra.mrb[44].mxu0 %v3234_v12  ;;  %1521 = vmatmul.mubr.bf16.gmra.mrb[44].mxu1 %v3234_v12  ;;  %v1547_v12 = vsub.s32 3, %v1534_v33  ;;  %v4642_v33 = vrot.slane %v1531_v51, %v1539_v2 }
 0x84c   :  { %1845 = vmatprep.mubr.bf16.mxu0 %v5162_v1  ;;  %1886 = vmatprep.mubr.bf16.mxu1 %v5162_v1 }
 0x84d   :  { %v1554_v48 = vadd.f32 %v4642_v33, %v4537_v36 }
 0x853   :  { %1846 = vmatmul.mubr.bf16.vlgmr.msra.gmra.mrb[48].mxu0 %v5162_v1  ;;  %1887 = vmatmul.mubr.bf16.vlgmr.msra.gmra.mrb[48].mxu1 %v5162_v1 }
 0x854   :  { %1930 = vmatpush1.bf16.msra.mxu0 %v4334_v15  ;;  %1971 = vmatpush1.bf16.msra.mxu1 %v4345_v17 }
 0x855   :  { %1931 = vmatprep.subr.bf16.mxu0 %v4352_v18  ;;  %1972 = vmatprep.subr.bf16.mxu1 %v4357_v19 }
 0x856   :  { %1961 = vmatprep.mubr.bf16.mxu0 %v5162_v1  ;;  %2002 = vmatprep.mubr.bf16.mxu1 %v5162_v1 }
 0x858   :  { %1932 = vmatpush1.bf16.msra.mxu0 %v4363_v20  ;;  %1973 = vmatpush1.bf16.msra.mxu1 %v4368_v21 }
 0x859   :  { %1933 = vmatprep.subr.bf16.mxu0 %v4376_v22  ;;  %1974 = vmatprep.subr.bf16.mxu1 %v4381_v23 }
 0x85c   :  { %1934 = vmatpush1.bf16.msra.mxu0 %v4387_v24  ;;  %1975 = vmatpush1.bf16.msra.mxu1 %v4392_v25 }
 0x85d   :  { %1935 = vmatprep.subr.bf16.mxu0 %v4400_v26  ;;  %1976 = vmatprep.subr.bf16.mxu1 %v4405_v27 }
 0x860   :  { %1936 = vmatpush1.bf16.msra.mxu0 %v4411_v28  ;;  %1977 = vmatpush1.bf16.msra.mxu1 %v4416_v29 }
 0x861   :  { %1937 = vmatprep.subr.bf16.mxu0 %v4424_v30  ;;  %1978 = vmatprep.subr.bf16.mxu1 %v4429_v31 }
 0x864   :  { %1938 = vmatpush1.bf16.msra.mxu0 %v4435_v32  ;;  %1979 = vmatpush1.bf16.msra.mxu1 %v4440_v37 }
 0x865   :  { %1939 = vmatprep.subr.bf16.mxu0 %v4448_v52  ;;  %1980 = vmatprep.subr.bf16.mxu1 %v4458_v55 }
 0x868   :  { %1940 = vmatpush1.bf16.msra.mxu0 %v4453_v54  ;;  %1981 = vmatpush1.bf16.msra.mxu1 %v4470_v57 }
 0x869   :  { %1941 = vmatprep.subr.bf16.mxu0 %v4463_v56  ;;  %1982 = vmatprep.subr.bf16.mxu1 %v4478_v59 }
 0x86c   :  { %1942 = vmatpush1.bf16.msra.mxu0 %v4484_v0  ;;  %1983 = vmatpush1.bf16.msra.mxu1 %v4489_v60 }
 0x86d   :  { %1943 = vmatprep.subr.bf16.mxu0 %v4494_v6  ;;  %1984 = vmatprep.subr.bf16.mxu1 %v4500_v61 }
 0x870   :  { %1944 = vmatpush1.bf16.msra.mxu0 %v4506_v62  ;;  %1985 = vmatpush1.bf16.msra.mxu1 %v4513_v53 }
 0x871   :  { %2045 = vmatprep.subr.bf16.mxu0 %v4329_v14  ;;  %2086 = vmatprep.subr.bf16.mxu1 %v4340_v16 }
 0x91e   :  { %v4622_v1 = vpop.f32.mrb[44].mxu0  ;;  %v4624_v11 = vpop.f32.mrb[44].mxu1 }
 0x91f   :  { %5178 = vst [vmem:[#allocation18_spill] sm:$0xff] %v4622_v1  ;;  %5179 = vst [vmem:[#allocation19_spill] sm:$0xff] %v4624_v11  ;;  %v4626_v10 = vpop.f32.mrb[45].mxu0  ;;  %v4628_v9 = vpop.f32.mrb[45].mxu1  ;;  %v4644_v1 = vrot.slane %v1531_v51, %v1547_v12 }
 0x920   :  { %5180 = vst [vmem:[#allocation20_spill] sm:$0xff] %v4626_v10  ;;  %5181 = vst [vmem:[#allocation21_spill] sm:$0xff] %v4628_v9  ;;  %v4630_v8 = vpop.f32.mrb[46].mxu0  ;;  %v4632_v7 = vpop.f32.mrb[46].mxu1  ;;  %v1553_v10 = vadd.f32 %v4634_v13, %v4533_v34 }
 0x921   :  { %5182 = vst [vmem:[#allocation22_spill] sm:$0xff] %v4630_v8  ;;  %5183 = vst [vmem:[#allocation23_spill] sm:$0xff] %v4632_v7  ;;  %v4638_v4 = vpop.f32.mrb[47].mxu0  ;;  %v4640_v3 = vpop.f32.mrb[47].mxu1  ;;  %v1555_v8 = vadd.f32 %v4636_v5, %v4535_v35  ;;  %v1556_v50 = vadd.f32 %v4644_v1, %v4539_v38 }
 0x922   :  { %5184 = vst [vmem:[#allocation24_spill] sm:$0xff] %v4638_v4  ;;  %5185 = vst [vmem:[#allocation25_spill] sm:$0xff] %v4640_v3 }
 0x926   :  { %v1847_v7 = vpop.f32.mrb[48].mxu0  ;;  %v1888_v4 = vpop.f32.mrb[48].mxu1 }
 0x927   :  { %v1895_v9 = vadd.f32 %v1847_v7, %v1553_v10  ;;  %v1897_v3 = vadd.f32 %v1888_v4, %v1555_v8  ;;  %v1849_v2 = vpop.f32.mrb[49].mxu0  ;;  %v1890_v11 = vpop.f32.mrb[49].mxu1 }
 0x928   :  { %v1896_v51 = vadd.f32 %v1849_v2, %v1554_v48  ;;  %v1898_v12 = vadd.f32 %v1890_v11, %v1556_v50  ;;  %v1851_v63 = vpop.f32.mrb[50].mxu0  ;;  %v1892_v49 = vpop.f32.mrb[50].mxu1  ;;  %v1559_v2 = vadd.f32 %v4636_v5, %v4543_v40 }
 0x929   :  { %v2991_v34 = vmul.f32 -1.442695, %v1895_v9  ;;  %v1852_v47 = vpop.f32.mrb[51].mxu0  ;;  %v1893_v46 = vpop.f32.mrb[51].mxu1 }
 0x92a   :  { %v2992_v35 = vmul.f32 -1.442695, %v1896_v51  ;;  %v2993_v36 = vmul.f32 -1.442695, %v1898_v12  ;;  %v1558_v51 = vadd.f32 %v4642_v33, %v4545_v41  ;;  %v1560_v12 = vadd.f32 %v4644_v1, %v4547_v42 }
 0x92b   :  { %3373 = vpow2.f32 %v2991_v34 }
 0x92c   :  { %3375 = vpow2.f32 %v2992_v35 }
 0x92d   :  { %3377 = vpow2.f32 %v2993_v36 }
 0x92e   :  { %3379 = vtanh.f32 %v1897_v3  ;;  %v1557_v3 = vadd.f32 %v4634_v13, %v4541_v39 }
 0x935   :  { %v3374_v45 = vpop.eup %3373 }
 0x936   :  { %v3376_v44 = vpop.eup %3375  ;;  %v1902_v38 = vadd.f32 1.0, %v3374_v45 }
 0x937   :  { %v1908_v7 = vadd.f32 1.0, %v3376_v44  ;;  %v3378_v4 = vpop.eup %3377  ;;  %v5186_v44 = vmov 0  }
 0x938   :  { %3381 = vrcp.f32 %v1902_v38  ;;  %v3380_v8 = vpop.eup %3379  ;;  %v1915_v9 = vadd.f32 1.0, %v3378_v4 }
 0x939   :  { %3383 = vrcp.f32 %v1908_v7 }
 0x93a   :  { %3385 = vrcp.f32 %v1915_v9 }
 0x942   :  { %v3382_v10 = vpop.eup %3381 }
 0x943   :  { %v3384_v63 = vpop.eup %3383  ;;  %v1919_v49 = vmul.f32 %v3382_v10, %v3380_v8 }
 0x944   :  { %v1918_v47 = vmul.f32 0.0, %v3384_v63  ;;  %v3386_v11 = vpop.eup %3385 }
 0x946   :  { %v4654_v46 = vadd.f32 %v1919_v49, %v1918_v47 }
 0x948   :  { %3387 = vtanh.f32 %v4654_v46 }
 0x952   :  { %v3388_v48 = vpop.eup %3387 }
 0x953   :  { %v1922_v45 = vmul.f32 %v3388_v48, %v3386_v11 }
 0x955   :  { %v1928_v50 = vpack.c.bf16 %v1922_v45, %v1922_v45 }
 0x957   :  { %1962 = vmatmul.mubr.bf16.vlgmr.msra.gmra.mrb[52].mxu0 %v1928_v50  ;;  %2003 = vmatmul.mubr.bf16.vlgmr.msra.gmra.mrb[52].mxu1 %v1928_v50 }
 0x958   :  { %2046 = vmatpush1.bf16.msra.mxu0 %v4334_v15  ;;  %2087 = vmatpush1.bf16.msra.mxu1 %v4345_v17 }
 0x959   :  { %2047 = vmatprep.subr.bf16.mxu0 %v4352_v18  ;;  %2088 = vmatprep.subr.bf16.mxu1 %v4357_v19 }
 0x95a   :  { %2077 = vmatprep.mubr.bf16.mxu0 %v5186_v44  ;;  %2118 = vmatprep.mubr.bf16.mxu1 %v5186_v44 }
 0x95c   :  { %2048 = vmatpush1.bf16.msra.mxu0 %v4363_v20  ;;  %2089 = vmatpush1.bf16.msra.mxu1 %v4368_v21 }
 0x95d   :  { %2049 = vmatprep.subr.bf16.mxu0 %v4376_v22  ;;  %2090 = vmatprep.subr.bf16.mxu1 %v4381_v23 }
 0x960   :  { %2050 = vmatpush1.bf16.msra.mxu0 %v4387_v24  ;;  %2091 = vmatpush1.bf16.msra.mxu1 %v4392_v25 }
 0x961   :  { %2051 = vmatprep.subr.bf16.mxu0 %v4400_v26  ;;  %2092 = vmatprep.subr.bf16.mxu1 %v4405_v27 }
 0x964   :  { %2052 = vmatpush1.bf16.msra.mxu0 %v4411_v28  ;;  %2093 = vmatpush1.bf16.msra.mxu1 %v4416_v29 }
 0x965   :  { %2053 = vmatprep.subr.bf16.mxu0 %v4424_v30  ;;  %2094 = vmatprep.subr.bf16.mxu1 %v4429_v31 }
 0x968   :  { %2054 = vmatpush1.bf16.msra.mxu0 %v4435_v32  ;;  %2095 = vmatpush1.bf16.msra.mxu1 %v4440_v37 }
 0x969   :  { %2055 = vmatprep.subr.bf16.mxu0 %v4448_v52  ;;  %2096 = vmatprep.subr.bf16.mxu1 %v4458_v55 }
 0x96c   :  { %2056 = vmatpush1.bf16.msra.mxu0 %v4453_v54  ;;  %2097 = vmatpush1.bf16.msra.mxu1 %v4470_v57 }
 0x96d   :  { %2057 = vmatprep.subr.bf16.mxu0 %v4463_v56  ;;  %2098 = vmatprep.subr.bf16.mxu1 %v4478_v59 }
 0x970   :  { %2058 = vmatpush1.bf16.msra.mxu0 %v4484_v0  ;;  %2099 = vmatpush1.bf16.msra.mxu1 %v4489_v60 }
 0x971   :  { %2059 = vmatprep.subr.bf16.mxu0 %v4494_v6  ;;  %2100 = vmatprep.subr.bf16.mxu1 %v4500_v61 }
 0x974   :  { %2060 = vmatpush1.bf16.msra.mxu0 %v4506_v62  ;;  %2101 = vmatpush1.bf16.msra.mxu1 %v4513_v53 }
 0x975   :  { %2161 = vmatprep.subr.bf16.mxu0 %v4329_v14  ;;  %2202 = vmatprep.subr.bf16.mxu1 %v4340_v16 }
 0xa2a   :  { %v1963_v34 = vpop.f32.mrb[52].mxu0  ;;  %v2004_v35 = vpop.f32.mrb[52].mxu1 }
 0xa2b   :  { %v2011_v36 = vadd.f32 %v1963_v34, %v1557_v3  ;;  %v2013_v38 = vadd.f32 %v2004_v35, %v1559_v2  ;;  %v1965_v7 = vpop.f32.mrb[53].mxu0  ;;  %v2006_v4 = vpop.f32.mrb[53].mxu1 }
 0xa2c   :  { %v2012_v8 = vadd.f32 %v1965_v7, %v1558_v51  ;;  %v2014_v10 = vadd.f32 %v2006_v4, %v1560_v12  ;;  %v1967_v63 = vpop.f32.mrb[54].mxu0  ;;  %v2008_v49 = vpop.f32.mrb[54].mxu1 }
 0xa2d   :  { %v2994_v39 = vmul.f32 -1.442695, %v2011_v36  ;;  %v1968_v9 = vpop.f32.mrb[55].mxu0  ;;  %v2009_v47 = vpop.f32.mrb[55].mxu1  ;;  %v5187_v63 = vld [vmem:[#allocation4_spill] sm:$0xff] }
 0xa2e   :  { %v2995_v40 = vmul.f32 -1.442695, %v2012_v8  ;;  %v2996_v41 = vmul.f32 -1.442695, %v2014_v10  ;;  %v1563_v10 = vadd.f32 %v4636_v5, %v4551_v43  ;;  %v1562_v49 = vadd.f32 %v4642_v33, %v5187_v63 }
 0xa2f   :  { %3389 = vpow2.f32 %v2994_v39  ;;  %v5188_v39 = vld [vmem:[#allocation5_spill] sm:$0xff] }
 0xa30   :  { %3391 = vpow2.f32 %v2995_v40  ;;  %v1564_v9 = vadd.f32 %v4644_v1, %v5188_v39 }
 0xa31   :  { %3393 = vpow2.f32 %v2996_v41 }
 0xa32   :  { %3395 = vtanh.f32 %v2013_v38 }
 0xa39   :  { %v3390_v11 = vpop.eup %3389 }
 0xa3a   :  { %v3392_v48 = vpop.eup %3391  ;;  %v2018_v42 = vadd.f32 1.0, %v3390_v11 }
 0xa3b   :  { %v2024_v45 = vadd.f32 1.0, %v3392_v48  ;;  %v3394_v50 = vpop.eup %3393 }
 0xa3c   :  { %3397 = vrcp.f32 %v2018_v42  ;;  %v3396_v3 = vpop.eup %3395  ;;  %v2031_v34 = vadd.f32 1.0, %v3394_v50 }
 0xa3d   :  { %3399 = vrcp.f32 %v2024_v45 }
 0xa3e   :  { %3401 = vrcp.f32 %v2031_v34 }
 0xa46   :  { %v3398_v2 = vpop.eup %3397 }
 0xa47   :  { %v3400_v51 = vpop.eup %3399  ;;  %v2035_v12 = vmul.f32 %v3398_v2, %v3396_v3 }
 0xa48   :  { %v2034_v35 = vmul.f32 %v3400_v51, %v4654_v46  ;;  %v3402_v7 = vpop.eup %3401  ;;  %v1561_v46 = vadd.f32 %v4634_v13, %v4549_v58 }
 0xa4a   :  { %v4700_v36 = vadd.f32 %v2035_v12, %v2034_v35 }
 0xa4c   :  { %3403 = vtanh.f32 %v4700_v36 }
 0xa56   :  { %v3404_v4 = vpop.eup %3403 }
 0xa57   :  { %v2038_v8 = vmul.f32 %v3404_v4, %v3402_v7 }
 0xa59   :  { %v2044_v38 = vpack.c.bf16 %v2038_v8, %v2038_v8 }
 0xa5b   :  { %2078 = vmatmul.mubr.bf16.vlgmr.msra.gmra.mrb[56].mxu0 %v2044_v38  ;;  %2119 = vmatmul.mubr.bf16.vlgmr.msra.gmra.mrb[56].mxu1 %v2044_v38 }
 0xa5c   :  { %2162 = vmatpush1.bf16.msra.mxu0 %v4334_v15  ;;  %2203 = vmatpush1.bf16.msra.mxu1 %v4345_v17 }
 0xa5d   :  { %2163 = vmatprep.subr.bf16.mxu0 %v4352_v18  ;;  %2204 = vmatprep.subr.bf16.mxu1 %v4357_v19 }
 0xa5e   :  { %2193 = vmatprep.mubr.bf16.mxu0 %v5186_v44  ;;  %2234 = vmatprep.mubr.bf16.mxu1 %v5186_v44 }
 0xa60   :  { %2164 = vmatpush1.bf16.msra.mxu0 %v4363_v20  ;;  %2205 = vmatpush1.bf16.msra.mxu1 %v4368_v21 }
 0xa61   :  { %2165 = vmatprep.subr.bf16.mxu0 %v4376_v22  ;;  %2206 = vmatprep.subr.bf16.mxu1 %v4381_v23 }
 0xa64   :  { %2166 = vmatpush1.bf16.msra.mxu0 %v4387_v24  ;;  %2207 = vmatpush1.bf16.msra.mxu1 %v4392_v25 }
 0xa65   :  { %2167 = vmatprep.subr.bf16.mxu0 %v4400_v26  ;;  %2208 = vmatprep.subr.bf16.mxu1 %v4405_v27 }
 0xa68   :  { %2168 = vmatpush1.bf16.msra.mxu0 %v4411_v28  ;;  %2209 = vmatpush1.bf16.msra.mxu1 %v4416_v29 }
 0xa69   :  { %2169 = vmatprep.subr.bf16.mxu0 %v4424_v30  ;;  %2210 = vmatprep.subr.bf16.mxu1 %v4429_v31 }
 0xa6c   :  { %2170 = vmatpush1.bf16.msra.mxu0 %v4435_v32  ;;  %2211 = vmatpush1.bf16.msra.mxu1 %v4440_v37 }
 0xa6d   :  { %2171 = vmatprep.subr.bf16.mxu0 %v4448_v52  ;;  %2212 = vmatprep.subr.bf16.mxu1 %v4458_v55 }
 0xa70   :  { %2172 = vmatpush1.bf16.msra.mxu0 %v4453_v54  ;;  %2213 = vmatpush1.bf16.msra.mxu1 %v4470_v57 }
 0xa71   :  { %2173 = vmatprep.subr.bf16.mxu0 %v4463_v56  ;;  %2214 = vmatprep.subr.bf16.mxu1 %v4478_v59 }
 0xa74   :  { %2174 = vmatpush1.bf16.msra.mxu0 %v4484_v0  ;;  %2215 = vmatpush1.bf16.msra.mxu1 %v4489_v60 }
 0xa75   :  { %2175 = vmatprep.subr.bf16.mxu0 %v4494_v6  ;;  %2216 = vmatprep.subr.bf16.mxu1 %v4500_v61 }
 0xa78   :  { %2176 = vmatpush1.bf16.msra.mxu0 %v4506_v62  ;;  %2217 = vmatpush1.bf16.msra.mxu1 %v4513_v53 }
 0xa79   :  { %2277 = vmatprep.subr.bf16.mxu0 %v4329_v14  ;;  %2318 = vmatprep.subr.bf16.mxu1 %v4340_v16 }
 0xb2e   :  { %v2079_v47 = vpop.f32.mrb[56].mxu0  ;;  %v2120_v40 = vpop.f32.mrb[56].mxu1 }
 0xb2f   :  { %v2127_v41 = vadd.f32 %v2079_v47, %v1561_v46  ;;  %v2129_v11 = vadd.f32 %v2120_v40, %v1563_v10  ;;  %v2081_v48 = vpop.f32.mrb[57].mxu0  ;;  %v2122_v42 = vpop.f32.mrb[57].mxu1 }
 0xb30   :  { %v2128_v45 = vadd.f32 %v2081_v48, %v1562_v49  ;;  %v2130_v50 = vadd.f32 %v2122_v42, %v1564_v9  ;;  %v2083_v3 = vpop.f32.mrb[58].mxu0  ;;  %v2124_v2 = vpop.f32.mrb[58].mxu1 }
 0xb31   :  { %v2997_v58 = vmul.f32 -1.442695, %v2127_v41  ;;  %v2084_v51 = vpop.f32.mrb[59].mxu0  ;;  %v2125_v12 = vpop.f32.mrb[59].mxu1  ;;  %v5191_v3 = vld [vmem:[#allocation8_spill] sm:$0xff] }
 0xb32   :  { %v2998_v43 = vmul.f32 -1.442695, %v2128_v45  ;;  %v2999_v34 = vmul.f32 -1.442695, %v2130_v50  ;;  %v5190_v45 = vld [vmem:[#allocation7_spill] sm:$0xff]  ;;  %v1566_v2 = vadd.f32 %v4642_v33, %v5191_v3 }
 0xb33   :  { %3405 = vpow2.f32 %v2997_v58  ;;  %v1567_v50 = vadd.f32 %v4636_v5, %v5190_v45  ;;  %v5192_v58 = vld [vmem:[#allocation9_spill] sm:$0xff] }
 0xb34   :  { %3407 = vpow2.f32 %v2998_v43  ;;  %v1568_v51 = vadd.f32 %v4644_v1, %v5192_v58 }
 0xb35   :  { %3409 = vpow2.f32 %v2999_v34 }
 0xb36   :  { %3411 = vtanh.f32 %v2129_v11 }
 0xb3d   :  { %v3406_v35 = vpop.eup %3405 }
 0xb3e   :  { %v3408_v7 = vpop.eup %3407  ;;  %v2134_v4 = vadd.f32 1.0, %v3406_v35 }
 0xb3f   :  { %v2140_v8 = vadd.f32 1.0, %v3408_v7  ;;  %v3410_v38 = vpop.eup %3409 }
 0xb40   :  { %3413 = vrcp.f32 %v2134_v4  ;;  %v3412_v46 = vpop.eup %3411  ;;  %v2147_v39 = vadd.f32 1.0, %v3410_v38 }
 0xb41   :  { %3415 = vrcp.f32 %v2140_v8 }
 0xb42   :  { %3417 = vrcp.f32 %v2147_v39 }
 0xb4a   :  { %v3414_v10 = vpop.eup %3413 }
 0xb4b   :  { %v3416_v63 = vpop.eup %3415  ;;  %v2151_v49 = vmul.f32 %v3414_v10, %v3412_v46 }
 0xb4c   :  { %v2150_v9 = vmul.f32 %v3416_v63, %v4700_v36  ;;  %v3418_v40 = vpop.eup %3417  ;;  %v5189_v36 = vld [vmem:[#allocation6_spill] sm:$0xff] }
 0xb4d   :  { %v1565_v42 = vadd.f32 %v4634_v13, %v5189_v36 }
 0xb4e   :  { %v4746_v47 = vadd.f32 %v2151_v49, %v2150_v9 }
 0xb50   :  { %3419 = vtanh.f32 %v4746_v47 }
 0xb5a   :  { %v3420_v41 = vpop.eup %3419 }
 0xb5b   :  { %v2154_v48 = vmul.f32 %v3420_v41, %v3418_v40 }
 0xb5d   :  { %v2160_v11 = vpack.c.bf16 %v2154_v48, %v2154_v48 }
 0xb5f   :  { %2194 = vmatmul.mubr.bf16.vlgmr.msra.gmra.mrb[60].mxu0 %v2160_v11  ;;  %2235 = vmatmul.mubr.bf16.vlgmr.msra.gmra.mrb[60].mxu1 %v2160_v11 }
 0xb60   :  { %2278 = vmatpush1.bf16.msra.mxu0 %v4334_v15  ;;  %2319 = vmatpush1.bf16.msra.mxu1 %v4345_v17 }
 0xb61   :  { %2279 = vmatprep.subr.bf16.mxu0 %v4352_v18  ;;  %2320 = vmatprep.subr.bf16.mxu1 %v4357_v19 }
 0xb62   :  { %2309 = vmatprep.mubr.bf16.mxu0 %v5186_v44  ;;  %2350 = vmatprep.mubr.bf16.mxu1 %v5186_v44 }
 0xb64   :  { %2280 = vmatpush1.bf16.msra.mxu0 %v4363_v20  ;;  %2321 = vmatpush1.bf16.msra.mxu1 %v4368_v21 }
 0xb65   :  { %2281 = vmatprep.subr.bf16.mxu0 %v4376_v22  ;;  %2322 = vmatprep.subr.bf16.mxu1 %v4381_v23 }
 0xb68   :  { %2282 = vmatpush1.bf16.msra.mxu0 %v4387_v24  ;;  %2323 = vmatpush1.bf16.msra.mxu1 %v4392_v25 }
 0xb69   :  { %2283 = vmatprep.subr.bf16.mxu0 %v4400_v26  ;;  %2324 = vmatprep.subr.bf16.mxu1 %v4405_v27 }
 0xb6c   :  { %2284 = vmatpush1.bf16.msra.mxu0 %v4411_v28  ;;  %2325 = vmatpush1.bf16.msra.mxu1 %v4416_v29 }
 0xb6d   :  { %2285 = vmatprep.subr.bf16.mxu0 %v4424_v30  ;;  %2326 = vmatprep.subr.bf16.mxu1 %v4429_v31 }
 0xb70   :  { %2286 = vmatpush1.bf16.msra.mxu0 %v4435_v32  ;;  %2327 = vmatpush1.bf16.msra.mxu1 %v4440_v37 }
 0xb71   :  { %2287 = vmatprep.subr.bf16.mxu0 %v4448_v52  ;;  %2328 = vmatprep.subr.bf16.mxu1 %v4458_v55 }
 0xb74   :  { %2288 = vmatpush1.bf16.msra.mxu0 %v4453_v54  ;;  %2329 = vmatpush1.bf16.msra.mxu1 %v4470_v57 }
 0xb75   :  { %2289 = vmatprep.subr.bf16.mxu0 %v4463_v56  ;;  %2330 = vmatprep.subr.bf16.mxu1 %v4478_v59 }
 0xb78   :  { %2290 = vmatpush1.bf16.msra.mxu0 %v4484_v0  ;;  %2331 = vmatpush1.bf16.msra.mxu1 %v4489_v60 }
 0xb79   :  { %2291 = vmatprep.subr.bf16.mxu0 %v4494_v6  ;;  %2332 = vmatprep.subr.bf16.mxu1 %v4500_v61 }
 0xb7c   :  { %2292 = vmatpush1.bf16.msra.mxu0 %v4506_v62  ;;  %2333 = vmatpush1.bf16.msra.mxu1 %v4513_v53 }
 0xb7d   :  { %2393 = vmatprep.subr.bf16.mxu0 %v4329_v14  ;;  %2434 = vmatprep.subr.bf16.mxu1 %v4340_v16 }
 0xc32   :  { %v2195_v12 = vpop.f32.mrb[60].mxu0  ;;  %v2236_v43 = vpop.f32.mrb[60].mxu1 }
 0xc33   :  { %v2243_v34 = vadd.f32 %v2195_v12, %v1565_v42  ;;  %v2245_v35 = vadd.f32 %v2236_v43, %v1567_v50  ;;  %v2197_v7 = vpop.f32.mrb[61].mxu0  ;;  %v2238_v14 = vpop.f32.mrb[61].mxu1 }
 0xc34   :  { %v2244_v4 = vadd.f32 %v2197_v7, %v1566_v2  ;;  %v2246_v16 = vadd.f32 %v2238_v14, %v1568_v51  ;;  %v2199_v8 = vpop.f32.mrb[62].mxu0  ;;  %v2240_v38 = vpop.f32.mrb[62].mxu1 }
 0xc35   :  { %v3000_v46 = vmul.f32 -1.442695, %v2243_v34  ;;  %v2200_v10 = vpop.f32.mrb[63].mxu0  ;;  %v2241_v63 = vpop.f32.mrb[63].mxu1 }
 0xc36   :  { %v3001_v49 = vmul.f32 -1.442695, %v2244_v4  ;;  %v3002_v39 = vmul.f32 -1.442695, %v2246_v16 }
 0xc37   :  { %3421 = vpow2.f32 %v3000_v46 }
 0xc38   :  { %3423 = vpow2.f32 %v3001_v49  ;;  %v4854_v49 = vld [vmem:[%s5157_s4] ss:$16 sps:$4 sm:$0xff]  }
 0xc39   :  { %3425 = vpow2.f32 %v3002_v39  ;;  %v4860_v39 = vld [vmem:[%s5157_s4 + $0x8] ss:$16 sps:$4 sm:$0xff]  }
 0xc3a   :  { %3427 = vtanh.f32 %v2245_v35 }
 0xc41   :  { %v3422_v9 = vpop.eup %3421 }
 0xc42   :  { %v3424_v40 = vpop.eup %3423  ;;  %v2250_v41 = vadd.f32 1.0, %v3422_v9  ;;  %v4866_v9 = vld [vmem:[%s5157_s4 + $0x24] ss:$16 sps:$4 sm:$0xff]  }
 0xc43   :  { %v2256_v48 = vadd.f32 1.0, %v3424_v40  ;;  %v3426_v11 = vpop.eup %3425  ;;  %v4872_v40 = vld [vmem:[%s5157_s4 + $0x2c] ss:$16 sps:$4 sm:$0xff]  }
 0xc44   :  { %3429 = vrcp.f32 %v2250_v41  ;;  %v3428_v36 = vpop.eup %3427  ;;  %v2263_v3 = vadd.f32 1.0, %v3426_v11  ;;  %v4880_v41 = vld [vmem:[%s5157_s4 + $0x20] ss:$16 sps:$4 sm:$0xff]   ;;  %v4892_v11 = vld [vmem:[%s5157_s4 + $0x44] ss:$16 sps:$4 sm:$0xff]  }
 0xc45   :  { %3431 = vrcp.f32 %v2256_v48  ;;  %v4886_v48 = vld [vmem:[%s5157_s4 + $0x28] ss:$16 sps:$4 sm:$0xff]  }
 0xc46   :  { %3433 = vrcp.f32 %v2263_v3  ;;  %v4922_v3 = vld [vmem:[%s5157_s4 + $0x6c] ss:$16 sps:$4 sm:$0xff]  }
 0xc4e   :  { %v3430_v42 = vpop.eup %3429 }
 0xc4f   :  { %v3432_v45 = vpop.eup %3431  ;;  %v2267_v50 = vmul.f32 %v3430_v42, %v3428_v36  ;;  %v4898_v36 = vld [vmem:[%s5157_s4 + $0x4c] ss:$16 sps:$4 sm:$0xff]   ;;  %v4904_v42 = vld [vmem:[%s5157_s4 + $0x40] ss:$16 sps:$4 sm:$0xff]  }
 0xc50   :  { %v2266_v2 = vmul.f32 %v3432_v45, %v4746_v47  ;;  %v3434_v51 = vpop.eup %3433  ;;  %v4910_v45 = vld [vmem:[%s5157_s4 + $0x48] ss:$16 sps:$4 sm:$0xff]  }
 0xc52   :  { %v4792_v58 = vadd.f32 %v2267_v50, %v2266_v2  ;;  %v4916_v50 = vld [vmem:[%s5157_s4 + $0x64] ss:$16 sps:$4 sm:$0xff]   ;;  %v4928_v2 = vld [vmem:[%s5157_s4 + $0x60] ss:$16 sps:$4 sm:$0xff]  }
 0xc54   :  { %3435 = vtanh.f32 %v4792_v58 }
 0xc5e   :  { %v3436_v12 = vpop.eup %3435 }
 0xc5f   :  { %v2270_v43 = vmul.f32 %v3436_v12, %v3434_v51  ;;  %v4940_v51 = vld [vmem:[%s5157_s4 + $0x84] ss:$16 sps:$4 sm:$0xff]   ;;  %v4946_v12 = vld [vmem:[%s5157_s4 + $0x8c] ss:$16 sps:$4 sm:$0xff]  }
 0xc61   :  { %v2276_v34 = vpack.c.bf16 %v2270_v43, %v2270_v43  ;;  %v4952_v43 = vld [vmem:[%s5157_s4 + $0x80] ss:$16 sps:$4 sm:$0xff]  }
 0xc63   :  { %2310 = vmatmul.mubr.bf16.vlgmr.msra.gmra.mrb[64].mxu0 %v2276_v34  ;;  %2351 = vmatmul.mubr.bf16.vlgmr.msra.gmra.mrb[64].mxu1 %v2276_v34  ;;  %v4958_v34 = vld [vmem:[%s5157_s4 + $0x88] ss:$16 sps:$4 sm:$0xff]  }
 0xc64   :  { %2394 = vmatpush1.bf16.msra.mxu0 %v4334_v15  ;;  %2435 = vmatpush1.bf16.msra.mxu1 %v4345_v17  ;;  %v4830_v15 = vld [vmem:[%s5157_s4 + $0x4] ss:$16 sps:$4 sm:$0xff]   ;;  %v4836_v17 = vld [vmem:[%s5157_s4 + $0xc] ss:$16 sps:$4 sm:$0xff]  }
 0xc65   :  { %2395 = vmatprep.subr.bf16.mxu0 %v4352_v18  ;;  %2436 = vmatprep.subr.bf16.mxu1 %v4357_v19  ;;  %v5193_v18 = vld [vmem:[#allocation10_spill] sm:$0xff] }
 0xc66   :  { %2425 = vmatprep.mubr.bf16.mxu0 %v5186_v44  ;;  %2466 = vmatprep.mubr.bf16.mxu1 %v5186_v44  ;;  %v1569_v19 = vadd.f32 %v4634_v13, %v5193_v18  ;;  %v4964_v18 = vld [vmem:[%s5157_s4 + $0xa4] ss:$16 sps:$4 sm:$0xff]  }
 0xc68   :  { %2396 = vmatpush1.bf16.msra.mxu0 %v4363_v20  ;;  %2437 = vmatpush1.bf16.msra.mxu1 %v4368_v21  ;;  %v5194_v20 = vld [vmem:[#allocation11_spill] sm:$0xff] }
 0xc69   :  { %2397 = vmatprep.subr.bf16.mxu0 %v4376_v22  ;;  %2438 = vmatprep.subr.bf16.mxu1 %v4381_v23  ;;  %v1571_v21 = vadd.f32 %v4636_v5, %v5194_v20  ;;  %v5195_v22 = vld [vmem:[#allocation12_spill] sm:$0xff] }
 0xc6a   :  { %v1570_v23 = vadd.f32 %v4642_v33, %v5195_v22  ;;  %v4976_v20 = vld [vmem:[%s5157_s4 + $0xa0] ss:$16 sps:$4 sm:$0xff]   ;;  %v4988_v22 = vld [vmem:[%s5157_s4 + $0xc4] ss:$16 sps:$4 sm:$0xff]  }
 0xc6c   :  { %2398 = vmatpush1.bf16.msra.mxu0 %v4387_v24  ;;  %2439 = vmatpush1.bf16.msra.mxu1 %v4392_v25  ;;  %v5196_v24 = vld [vmem:[#allocation13_spill] sm:$0xff] }
 0xc6d   :  { %2399 = vmatprep.subr.bf16.mxu0 %v4400_v26  ;;  %2440 = vmatprep.subr.bf16.mxu1 %v4405_v27  ;;  %v1572_v25 = vadd.f32 %v4644_v1, %v5196_v24  ;;  %v5000_v24 = vld [vmem:[%s5157_s4 + $0xc0] ss:$16 sps:$4 sm:$0xff]  }
 0xc70   :  { %2400 = vmatpush1.bf16.msra.mxu0 %v4411_v28  ;;  %2441 = vmatpush1.bf16.msra.mxu1 %v4416_v29 }
 0xc71   :  { %2401 = vmatprep.subr.bf16.mxu0 %v4424_v30  ;;  %2442 = vmatprep.subr.bf16.mxu1 %v4429_v31 }
 0xc74   :  { %2402 = vmatpush1.bf16.msra.mxu0 %v4435_v32  ;;  %2443 = vmatpush1.bf16.msra.mxu1 %v4440_v37 }
 0xc75   :  { %2403 = vmatprep.subr.bf16.mxu0 %v4448_v52  ;;  %2444 = vmatprep.subr.bf16.mxu1 %v4458_v55 }
 0xc78   :  { %2404 = vmatpush1.bf16.msra.mxu0 %v4453_v54  ;;  %2445 = vmatpush1.bf16.msra.mxu1 %v4470_v57 }
 0xc79   :  { %2405 = vmatprep.subr.bf16.mxu0 %v4463_v56  ;;  %2446 = vmatprep.subr.bf16.mxu1 %v4478_v59 }
 0xc7c   :  { %2406 = vmatpush1.bf16.msra.mxu0 %v4484_v0  ;;  %2447 = vmatpush1.bf16.msra.mxu1 %v4489_v60 }
 0xc7d   :  { %2407 = vmatprep.subr.bf16.mxu0 %v4494_v6  ;;  %2448 = vmatprep.subr.bf16.mxu1 %v4500_v61 }
 0xc80   :  { %2408 = vmatpush1.bf16.msra.mxu0 %v4506_v62  ;;  %2449 = vmatpush1.bf16.msra.mxu1 %v4513_v53 }
 0xc81   :  { %2509 = vmatprep.subr.bf16.mxu0 %v4830_v15  ;;  %2550 = vmatprep.subr.bf16.mxu1 %v4836_v17 }
 0xd36   :  { %v2311_v26 = vpop.f32.mrb[64].mxu0  ;;  %v2352_v27 = vpop.f32.mrb[64].mxu1 }
 0xd37   :  { %v2359_v28 = vadd.f32 %v2311_v26, %v1569_v19  ;;  %v2361_v29 = vadd.f32 %v2352_v27, %v1571_v21  ;;  %v2313_v30 = vpop.f32.mrb[65].mxu0  ;;  %v2354_v31 = vpop.f32.mrb[65].mxu1  ;;  %v4970_v19 = vld [vmem:[%s5157_s4 + $0xac] ss:$16 sps:$4 sm:$0xff]   ;;  %v4982_v21 = vld [vmem:[%s5157_s4 + $0xa8] ss:$16 sps:$4 sm:$0xff]  }
 0xd38   :  { %v2360_v32 = vadd.f32 %v2313_v30, %v1570_v23  ;;  %v2362_v37 = vadd.f32 %v2354_v31, %v1572_v25  ;;  %v2315_v52 = vpop.f32.mrb[66].mxu0  ;;  %v2356_v54 = vpop.f32.mrb[66].mxu1  ;;  %v4994_v23 = vld [vmem:[%s5157_s4 + $0xcc] ss:$16 sps:$4 sm:$0xff]   ;;  %v5006_v25 = vld [vmem:[%s5157_s4 + $0xc8] ss:$16 sps:$4 sm:$0xff]  }
 0xd39   :  { %v3003_v55 = vmul.f32 -1.442695, %v2359_v28  ;;  %v2316_v56 = vpop.f32.mrb[67].mxu0  ;;  %v2357_v57 = vpop.f32.mrb[67].mxu1  ;;  %v5012_v26 = vld [vmem:[%s5157_s4 + $0xe4] ss:$16 sps:$4 sm:$0xff]  }
 0xd3a   :  { %v3004_v59 = vmul.f32 -1.442695, %v2360_v32  ;;  %v3005_v0 = vmul.f32 -1.442695, %v2362_v37  ;;  %v5018_v27 = vld [vmem:[%s5157_s4 + $0xec] ss:$16 sps:$4 sm:$0xff]  }
 0xd3b   :  { %3437 = vpow2.f32 %v3003_v55  ;;  %v5024_v28 = vld [vmem:[%s5157_s4 + $0xe0] ss:$16 sps:$4 sm:$0xff]   ;;  %v5198_v32 = vld [vmem:[#allocation15_spill] sm:$0xff]  ;;  %v5200_v55 = vld [vmem:[#allocation17_spill] sm:$0xff] }
 0xd3c   :  { %3439 = vpow2.f32 %v3004_v59  ;;  %v5197_v30 = vld [vmem:[#allocation14_spill] sm:$0xff]  ;;  %v1575_v37 = vadd.f32 %v4636_v5, %v5198_v32  ;;  %v5199_v52 = vld [vmem:[#allocation16_spill] sm:$0xff]  ;;  %v1576_v56 = vadd.f32 %v4644_v1, %v5200_v55 }
 0xd3d   :  { %3441 = vpow2.f32 %v3005_v0  ;;  %v1573_v31 = vadd.f32 %v4634_v13, %v5197_v30  ;;  %v1574_v54 = vadd.f32 %v4642_v33, %v5199_v52 }
 0xd3e   :  { %3443 = vtanh.f32 %v2361_v29  ;;  %v5030_v29 = vld [vmem:[%s5157_s4 + $0xe8] ss:$16 sps:$4 sm:$0xff]  }
 0xd45   :  { %v3438_v60 = vpop.eup %3437 }
 0xd46   :  { %v3440_v6 = vpop.eup %3439  ;;  %v2366_v61 = vadd.f32 1.0, %v3438_v60 }
 0xd47   :  { %v2372_v62 = vadd.f32 1.0, %v3440_v6  ;;  %v3442_v53 = vpop.eup %3441 }
 0xd48   :  { %3445 = vrcp.f32 %v2366_v61  ;;  %v3444_v47 = vpop.eup %3443  ;;  %v2379_v4 = vadd.f32 1.0, %v3442_v53 }
 0xd49   :  { %3447 = vrcp.f32 %v2372_v62 }
 0xd4a   :  { %3449 = vrcp.f32 %v2379_v4 }
 0xd52   :  { %v3446_v35 = vpop.eup %3445 }
 0xd53   :  { %v3448_v7 = vpop.eup %3447  ;;  %v2383_v14 = vmul.f32 %v3446_v35, %v3444_v47 }
 0xd54   :  { %v2382_v16 = vmul.f32 %v3448_v7, %v4792_v58  ;;  %v3450_v38 = vpop.eup %3449  ;;  %v4934_v58 = vld [vmem:[%s5157_s4 + $0x68] ss:$16 sps:$4 sm:$0xff]  }
 0xd56   :  { %v4848_v8 = vadd.f32 %v2383_v14, %v2382_v16 }
 0xd58   :  { %3451 = vtanh.f32 %v4848_v8 }
 0xd62   :  { %v3452_v46 = vpop.eup %3451 }
 0xd63   :  { %v2386_v10 = vmul.f32 %v3452_v46, %v3450_v38 }
 0xd65   :  { %v2392_v63 = vpack.c.bf16 %v2386_v10, %v2386_v10 }
 0xd67   :  { %2426 = vmatmul.mubr.bf16.vlgmr.msra.gmra.mrb[68].mxu0 %v2392_v63  ;;  %2467 = vmatmul.mubr.bf16.vlgmr.msra.gmra.mrb[68].mxu1 %v2392_v63 }
 0xd68   :  { %2510 = vmatpush1.bf16.msra.mxu0 %v4854_v49  ;;  %2551 = vmatpush1.bf16.msra.mxu1 %v4860_v39 }
 0xd69   :  { %2511 = vmatprep.subr.bf16.mxu0 %v4866_v9  ;;  %2552 = vmatprep.subr.bf16.mxu1 %v4872_v40 }
 0xd6a   :  { %2541 = vmatprep.mubr.bf16.mxu0 %v5186_v44  ;;  %2582 = vmatprep.mubr.bf16.mxu1 %v5186_v44 }
 0xd6c   :  { %2512 = vmatpush1.bf16.msra.mxu0 %v4880_v41  ;;  %2553 = vmatpush1.bf16.msra.mxu1 %v4886_v48 }
 0xd6d   :  { %2513 = vmatprep.subr.bf16.mxu0 %v4892_v11  ;;  %2554 = vmatprep.subr.bf16.mxu1 %v4898_v36 }
 0xd70   :  { %2514 = vmatpush1.bf16.msra.mxu0 %v4904_v42  ;;  %2555 = vmatpush1.bf16.msra.mxu1 %v4910_v45 }
 0xd71   :  { %2515 = vmatprep.subr.bf16.mxu0 %v4916_v50  ;;  %2556 = vmatprep.subr.bf16.mxu1 %v4922_v3 }
 0xd74   :  { %2516 = vmatpush1.bf16.msra.mxu0 %v4928_v2  ;;  %2557 = vmatpush1.bf16.msra.mxu1 %v4934_v58 }
 0xd75   :  { %2517 = vmatprep.subr.bf16.mxu0 %v4940_v51  ;;  %2558 = vmatprep.subr.bf16.mxu1 %v4946_v12 }
 0xd78   :  { %2518 = vmatpush1.bf16.msra.mxu0 %v4952_v43  ;;  %2559 = vmatpush1.bf16.msra.mxu1 %v4958_v34 }
 0xd79   :  { %2519 = vmatprep.subr.bf16.mxu0 %v4964_v18  ;;  %2560 = vmatprep.subr.bf16.mxu1 %v4970_v19 }
 0xd7c   :  { %2520 = vmatpush1.bf16.msra.mxu0 %v4976_v20  ;;  %2561 = vmatpush1.bf16.msra.mxu1 %v4982_v21 }
 0xd7d   :  { %2521 = vmatprep.subr.bf16.mxu0 %v4988_v22  ;;  %2562 = vmatprep.subr.bf16.mxu1 %v4994_v23 }
 0xd80   :  { %2522 = vmatpush1.bf16.msra.mxu0 %v5000_v24  ;;  %2563 = vmatpush1.bf16.msra.mxu1 %v5006_v25 }
 0xd81   :  { %2523 = vmatprep.subr.bf16.mxu0 %v5012_v26  ;;  %2564 = vmatprep.subr.bf16.mxu1 %v5018_v27 }
 0xd84   :  { %2524 = vmatpush1.bf16.msra.mxu0 %v5024_v28  ;;  %2565 = vmatpush1.bf16.msra.mxu1 %v5030_v29 }
 0xd85   :  { %2625 = vmatprep.subr.bf16.mxu0 %v4830_v15  ;;  %2666 = vmatprep.subr.bf16.mxu1 %v4836_v17 }
 0xe3a   :  { %v2427_v57 = vpop.f32.mrb[68].mxu0  ;;  %v2468_v59 = vpop.f32.mrb[68].mxu1 }
 0xe3b   :  { %v2475_v0 = vadd.f32 %v2427_v57, %v1573_v31  ;;  %v2477_v60 = vadd.f32 %v2468_v59, %v1575_v37  ;;  %v2429_v6 = vpop.f32.mrb[69].mxu0  ;;  %v2470_v15 = vpop.f32.mrb[69].mxu1 }
 0xe3c   :  { %v2476_v61 = vadd.f32 %v2429_v6, %v1574_v54  ;;  %v2478_v17 = vadd.f32 %v2470_v15, %v1576_v56  ;;  %v2431_v62 = vpop.f32.mrb[70].mxu0  ;;  %v2472_v53 = vpop.f32.mrb[70].mxu1 }
 0xe3d   :  { %v3006_v47 = vmul.f32 -1.442695, %v2475_v0  ;;  %v2432_v35 = vpop.f32.mrb[71].mxu0  ;;  %v2473_v7 = vpop.f32.mrb[71].mxu1 }
 0xe3e   :  { %v3007_v14 = vmul.f32 -1.442695, %v2476_v61  ;;  %v3008_v4 = vmul.f32 -1.442695, %v2478_v17  ;;  %v2736_v35 = vld [vmem:[%s5159_s5 + $0x8] sm:$0xff] }
 0xe3f   :  { %3453 = vpow2.f32 %v3006_v47  ;;  %v2735_v47 = vld [vmem:[%s5159_s5] sm:$0xff] }
 0xe40   :  { %3455 = vpow2.f32 %v3007_v14  ;;  %v3070_v7 = vpack.c.bf16 %v2736_v35, %v2735_v47  ;;  %v3570_v14 = vmov 0.0|0.0   ;;  %v3015_v35 = vld [vmem:[%s5160_s6] ss:$0 sm:$0xff] }
 0xe41   :  { %3457 = vpow2.f32 %v3008_v4  ;;  %v2737_v4 = vld [vmem:[%s5159_s5 + $0x10] sm:$0xff] }
 0xe42   :  { %3459 = vtanh.f32 %v2477_v60 }
 0xe49   :  { %v3454_v16 = vpop.eup %3453 }
 0xe4a   :  { %v3456_v38 = vpop.eup %3455  ;;  %v2482_v46 = vadd.f32 1.0, %v3454_v16  ;;  %v2738_v16 = vld [vmem:[%s5159_s5 + $0x18] sm:$0xff] }
 0xe4b   :  { %v2488_v10 = vadd.f32 1.0, %v3456_v38  ;;  %v3458_v63 = vpop.eup %3457  ;;  %v3073_v38 = vpack.c.bf16 %v2738_v16, %v2737_v4 }
 0xe4c   :  { %3461 = vrcp.f32 %v2482_v46  ;;  %v3460_v30 = vpop.eup %3459  ;;  %v2495_v52 = vadd.f32 1.0, %v3458_v63  ;;  %v2739_v46 = vld [vmem:[%s5159_s5 + $0x20] sm:$0xff] }
 0xe4d   :  { %3463 = vrcp.f32 %v2488_v10  ;;  %v2740_v10 = vld [vmem:[%s5159_s5 + $0x28] sm:$0xff] }
 0xe4e   :  { %3465 = vrcp.f32 %v2495_v52  ;;  %v3076_v63 = vpack.c.bf16 %v2740_v10, %v2739_v46  ;;  %v2744_v52 = vld [vmem:[%s5159_s5 + $0x48] sm:$0xff] }
 0xe56   :  { %v3462_v31 = vpop.eup %3461 }
 0xe57   :  { %v3464_v32 = vpop.eup %3463  ;;  %v2499_v37 = vmul.f32 %v3462_v31, %v3460_v30  ;;  %v2741_v30 = vld [vmem:[%s5159_s5 + $0x30] sm:$0xff]  ;;  %v2742_v31 = vld [vmem:[%s5159_s5 + $0x38] sm:$0xff] }
 0xe58   :  { %v2498_v54 = vmul.f32 %v3464_v32, %v4848_v8  ;;  %v3466_v56 = vpop.eup %3465  ;;  %v3079_v32 = vpack.c.bf16 %v2742_v31, %v2741_v30 }
 0xe5a   :  { %v5044_v55 = vadd.f32 %v2499_v37, %v2498_v54  ;;  %v2743_v37 = vld [vmem:[%s5159_s5 + $0x40] sm:$0xff] }
 0xe5b   :  { %v3082_v54 = vpack.c.bf16 %v2744_v52, %v2743_v37 }
 0xe5c   :  { %3467 = vtanh.f32 %v5044_v55 }
 0xe66   :  { %v3468_v57 = vpop.eup %3467 }
 0xe67   :  { %v2502_v59 = vmul.f32 %v3468_v57, %v3466_v56  ;;  %v2746_v56 = vld [vmem:[%s5159_s5 + $0x58] sm:$0xff]  ;;  %v2747_v57 = vld [vmem:[%s5159_s5 + $0x60] sm:$0xff] }
 0xe69   :  { %v2508_v0 = vpack.c.bf16 %v2502_v59, %v2502_v59 }
 0xe6b   :  { %2542 = vmatmul.mubr.bf16.vlgmr.msra.gmra.mrb[72].mxu0 %v2508_v0  ;;  %2583 = vmatmul.mubr.bf16.vlgmr.msra.gmra.mrb[72].mxu1 %v2508_v0  ;;  %v2748_v0 = vld [vmem:[%s5159_s5 + $0x68] sm:$0xff] }
 0xe6c   :  { %2626 = vmatpush1.bf16.msra.mxu0 %v4854_v49  ;;  %2667 = vmatpush1.bf16.msra.mxu1 %v4860_v39  ;;  %v5202_v49 = vld [vmem:[#allocation19_spill] sm:$0xff] }
 0xe6d   :  { %2627 = vmatprep.subr.bf16.mxu0 %v4866_v9  ;;  %2668 = vmatprep.subr.bf16.mxu1 %v4872_v40  ;;  %v1579_v39 = vadd.f32 %v4636_v5, %v5202_v49  ;;  %v5203_v9 = vld [vmem:[#allocation20_spill] sm:$0xff]  ;;  %v2749_v49 = vld [vmem:[%s5159_s5 + $0x70] sm:$0xff] }
 0xe6e   :  { %2657 = vmatprep.mubr.bf16.mxu0 %v5186_v44  ;;  %2698 = vmatprep.mubr.bf16.mxu1 %v5186_v44  ;;  %v5201_v44 = vld [vmem:[#allocation18_spill] sm:$0xff]  ;;  %v1578_v40 = vadd.f32 %v4642_v33, %v5203_v9 }
 0xe6f   :  { %v1577_v8 = vadd.f32 %v4634_v13, %v5201_v44  ;;  %v3572_v44 = vmov 0.0  }
 0xe70   :  { %2628 = vmatpush1.bf16.msra.mxu0 %v4880_v41  ;;  %2669 = vmatpush1.bf16.msra.mxu1 %v4886_v48  ;;  %v5204_v41 = vld [vmem:[#allocation21_spill] sm:$0xff] }
 0xe71   :  { %2629 = vmatprep.subr.bf16.mxu0 %v4892_v11  ;;  %2670 = vmatprep.subr.bf16.mxu1 %v4898_v36  ;;  %v1580_v48 = vadd.f32 %v4644_v1, %v5204_v41 }
 0xe74   :  { %2630 = vmatpush1.bf16.msra.mxu0 %v4904_v42  ;;  %2671 = vmatpush1.bf16.msra.mxu1 %v4910_v45 }
 0xe75   :  { %2631 = vmatprep.subr.bf16.mxu0 %v4916_v50  ;;  %2672 = vmatprep.subr.bf16.mxu1 %v4922_v3 }
 0xe78   :  { %2632 = vmatpush1.bf16.msra.mxu0 %v4928_v2  ;;  %2673 = vmatpush1.bf16.msra.mxu1 %v4934_v58 }
 0xe79   :  { %2633 = vmatprep.subr.bf16.mxu0 %v4940_v51  ;;  %2674 = vmatprep.subr.bf16.mxu1 %v4946_v12 }
 0xe7c   :  { %2634 = vmatpush1.bf16.msra.mxu0 %v4952_v43  ;;  %2675 = vmatpush1.bf16.msra.mxu1 %v4958_v34 }
 0xe7d   :  { %2635 = vmatprep.subr.bf16.mxu0 %v4964_v18  ;;  %2676 = vmatprep.subr.bf16.mxu1 %v4970_v19 }
 0xe80   :  { %2636 = vmatpush1.bf16.msra.mxu0 %v4976_v20  ;;  %2677 = vmatpush1.bf16.msra.mxu1 %v4982_v21 }
 0xe81   :  { %2637 = vmatprep.subr.bf16.mxu0 %v4988_v22  ;;  %2678 = vmatprep.subr.bf16.mxu1 %v4994_v23 }
 0xe84   :  { %2638 = vmatpush1.bf16.msra.mxu0 %v5000_v24  ;;  %2679 = vmatpush1.bf16.msra.mxu1 %v5006_v25 }
 0xe85   :  { %2639 = vmatprep.subr.bf16.mxu0 %v5012_v26  ;;  %2680 = vmatprep.subr.bf16.mxu1 %v5018_v27 }
 0xe88   :  { %2640 = vmatpush1.bf16.msra.mxu0 %v5024_v28  ;;  %2681 = vmatpush1.bf16.msra.mxu1 %v5030_v29 }
 0xe89   :  { %3069 = vmatprep.subr.bf16.mxu0 %v3570_v14 }
 0xf3e   :  { %v2543_v11 = vpop.f32.mrb[72].mxu0  ;;  %v2584_v36 = vpop.f32.mrb[72].mxu1 }
 0xf3f   :  { %v2591_v42 = vadd.f32 %v2543_v11, %v1577_v8  ;;  %v2593_v45 = vadd.f32 %v2584_v36, %v1579_v39  ;;  %v2545_v50 = vpop.f32.mrb[73].mxu0  ;;  %v2586_v3 = vpop.f32.mrb[73].mxu1  ;;  %v3088_v8 = vpack.c.bf16 %v2748_v0, %v2747_v57  ;;  %v2750_v39 = vld [vmem:[%s5159_s5 + $0x78] sm:$0xff]  ;;  %v5207_v36 = vld [vmem:[#allocation24_spill] sm:$0xff] }
 0xf40   :  { %v2592_v2 = vadd.f32 %v2545_v50, %v1578_v40  ;;  %v2594_v58 = vadd.f32 %v2586_v3, %v1580_v48  ;;  %v2547_v51 = vpop.f32.mrb[74].mxu0  ;;  %v2588_v12 = vpop.f32.mrb[74].mxu1  ;;  %v3091_v9 = vpack.c.bf16 %v2750_v39, %v2749_v49  ;;  %v5205_v40 = vld [vmem:[#allocation22_spill] sm:$0xff]  ;;  %v5206_v48 = vld [vmem:[#allocation23_spill] sm:$0xff] }
 0xf41   :  { %v3009_v43 = vmul.f32 -1.442695, %v2591_v42  ;;  %v2548_v34 = vpop.f32.mrb[75].mxu0  ;;  %v2589_v18 = vpop.f32.mrb[75].mxu1  ;;  %v1581_v41 = vadd.f32 %v4634_v13, %v5205_v40  ;;  %v1583_v11 = vadd.f32 %v4636_v5, %v5206_v48  ;;  %v1582_v42 = vadd.f32 %v4642_v33, %v5207_v36 }
 0xf42   :  { %v3010_v19 = vmul.f32 -1.442695, %v2592_v2  ;;  %v3011_v20 = vmul.f32 -1.442695, %v2594_v58 }
 0xf43   :  { %3469 = vpow2.f32 %v3009_v43 }
 0xf44   :  { %3471 = vpow2.f32 %v3010_v19 }
 0xf45   :  { %3473 = vpow2.f32 %v3011_v20 }
 0xf46   :  { %3475 = vtanh.f32 %v2593_v45  ;;  %v5208_v45 = vld [vmem:[#allocation25_spill] sm:$0xff] }
 0xf47   :  { %v1584_v50 = vadd.f32 %v4644_v1, %v5208_v45 }
 0xf4d   :  { %v3470_v21 = vpop.eup %3469 }
 0xf4e   :  { %v3472_v22 = vpop.eup %3471  ;;  %v2598_v23 = vadd.f32 1.0, %v3470_v21 }
 0xf4f   :  { %v2604_v24 = vadd.f32 1.0, %v3472_v22  ;;  %v3474_v25 = vpop.eup %3473 }
 0xf50   :  { %3477 = vrcp.f32 %v2598_v23  ;;  %v3476_v26 = vpop.eup %3475  ;;  %v2611_v60 = vadd.f32 1.0, %v3474_v25 }
 0xf51   :  { %3479 = vrcp.f32 %v2604_v24 }
 0xf52   :  { %3481 = vrcp.f32 %v2611_v60 }
 0xf5a   :  { %v3478_v27 = vpop.eup %3477 }
 0xf5b   :  { %v3480_v28 = vpop.eup %3479  ;;  %v2615_v29 = vmul.f32 %v3478_v27, %v3476_v26 }
 0xf5c   :  { %v2614_v6 = vmul.f32 %v3480_v28, %v5044_v55  ;;  %v3482_v61 = vpop.eup %3481  ;;  %v2745_v55 = vld [vmem:[%s5159_s5 + $0x50] sm:$0xff] }
 0xf5d   :  { %v3085_v59 = vpack.c.bf16 %v2746_v56, %v2745_v55 }
 0xf5e   :  { %v5088_v15 = vadd.f32 %v2615_v29, %v2614_v6 }
 0xf60   :  { %3483 = vtanh.f32 %v5088_v15 }
 0xf6a   :  { %v3484_v17 = vpop.eup %3483 }
 0xf6b   :  { %v2618_v62 = vmul.f32 %v3484_v17, %v3482_v61 }
 0xf6d   :  { %v2624_v53 = vpack.c.bf16 %v2618_v62, %v2618_v62 }
 0xf6f   :  { %2658 = vmatmul.mubr.bf16.vlgmr.msra.gmra.mrb[76].mxu0 %v2624_v53  ;;  %2699 = vmatmul.mubr.bf16.vlgmr.msra.gmra.mrb[76].mxu1 %v2624_v53 }
 0xf70   :  { %3071 = vmatpush3.bf16.msra.mxu0 %v3070_v7  ;;  %3066 = vmatprep.mubr.msk.f32.mxu0 %vm3571_vm0, %v3572_v44 }
 0xf71   :  { %3072 = vmatprep.subr.bf16.mxu0 %v3570_v14 }
 0xf74   :  { %3074 = vmatpush3.bf16.msra.mxu0 %v3073_v38 }
 0xf75   :  { %3075 = vmatprep.subr.bf16.mxu0 %v3570_v14 }
 0xf78   :  { %3077 = vmatpush3.bf16.msra.mxu0 %v3076_v63 }
 0xf79   :  { %3078 = vmatprep.subr.bf16.mxu0 %v3570_v14 }
 0xf7c   :  { %3080 = vmatpush3.bf16.msra.mxu0 %v3079_v32 }
 0xf7d   :  { %3081 = vmatprep.subr.bf16.mxu0 %v3570_v14 }
 0xf80   :  { %3083 = vmatpush3.bf16.msra.mxu0 %v3082_v54 }
 0xf81   :  { %3084 = vmatprep.subr.bf16.mxu0 %v3570_v14 }
 0xf84   :  { %3086 = vmatpush3.bf16.msra.mxu0 %v3085_v59 }
 0xf85   :  { %3087 = vmatprep.subr.bf16.mxu0 %v3570_v14 }
 0xf88   :  { %3089 = vmatpush3.bf16.msra.mxu0 %v3088_v8 }
 0xf89   :  { %3090 = vmatprep.subr.bf16.mxu0 %v3570_v14 }
 0xf8c   :  { %3092 = vmatpush3.bf16.msra.mxu0 %v3091_v9 }
0x1042   :  { %v2659_v3 = vpop.f32.mrb[76].mxu0  ;;  %v2700_v2 = vpop.f32.mrb[76].mxu1 }
0x1043   :  { %v2707_v58 = vadd.f32 %v2659_v3, %v1581_v41  ;;  %v2709_v51 = vadd.f32 %v2700_v2, %v1583_v11  ;;  %v2661_v12 = vpop.f32.mrb[77].mxu0  ;;  %v2702_v43 = vpop.f32.mrb[77].mxu1 }
0x1044   :  { %v2708_v34 = vadd.f32 %v2661_v12, %v1582_v42  ;;  %v2710_v18 = vadd.f32 %v2702_v43, %v1584_v50  ;;  %v2663_v19 = vpop.f32.mrb[78].mxu0  ;;  %v2704_v20 = vpop.f32.mrb[78].mxu1 }
0x1045   :  { %v3012_v13 = vmul.f32 -1.442695, %v2707_v58  ;;  %v2664_v21 = vpop.f32.mrb[79].mxu0  ;;  %v2705_v22 = vpop.f32.mrb[79].mxu1 }
0x1046   :  { %v3013_v5 = vmul.f32 -1.442695, %v2708_v34  ;;  %v3014_v33 = vmul.f32 -1.442695, %v2710_v18 }
0x1047   :  { %3485 = vpow2.f32 %v3012_v13 }
0x1048   :  { %3487 = vpow2.f32 %v3013_v5 }
0x1049   :  { %3489 = vpow2.f32 %v3014_v33 }
0x104a   :  { %3491 = vtanh.f32 %v2709_v51 }
0x1051   :  { %v3486_v23 = vpop.eup %3485 }
0x1052   :  { %v3488_v24 = vpop.eup %3487  ;;  %v2714_v1 = vadd.f32 1.0, %v3486_v23 }
0x1053   :  { %v2720_v25 = vadd.f32 1.0, %v3488_v24  ;;  %v3490_v26 = vpop.eup %3489 }
0x1054   :  { %3493 = vrcp.f32 %v2714_v1  ;;  %v3492_v27 = vpop.eup %3491  ;;  %v2727_v6 = vadd.f32 1.0, %v3490_v26 }
0x1055   :  { %3495 = vrcp.f32 %v2720_v25 }
0x1056   :  { %3497 = vrcp.f32 %v2727_v6 }
0x105e   :  { %v3494_v28 = vpop.eup %3493 }
0x105f   :  { %v3496_v29 = vpop.eup %3495  ;;  %v2731_v60 = vmul.f32 %v3494_v28, %v3492_v27 }
0x1060   :  { %v2730_v61 = vmul.f32 %v3496_v29, %v5088_v15  ;;  %v3498_v62 = vpop.eup %3497 }
0x1062   :  { %v2732_v17 = vadd.f32 %v2731_v60, %v2730_v61 }
0x1064   :  { %3499 = vtanh.f32 %v2732_v17 }
0x106e   :  { %v3500_v53 = vpop.eup %3499 }
0x106f   :  { %v2734_v47 = vmul.f32 %v3500_v53, %v3498_v62 }
0x1071   :  { %3067 = vmatmul.mubr.f32.vlgmr.msra.gmra.mrb[80].mxu0 %v2734_v47 }
0x1144   :  { %v2824_v7 = vpop.f32.mrb[80].mxu0 }
0x1145   :  { %v2825_v14 = vadd.f32 %v3015_v35, %v2824_v7  ;;  %v3068_v4 = vpop.f32.mrb[81].mxu0 }
0x1147   :  { %v3016_v16 = vmul.f32 -1.442695, %v2825_v14 }
0x1149   :  { %3501 = vpow2.f32 %v3016_v16 }
0x1153   :  { %v3502_v38 = vpop.eup %3501 }
0x1154   :  { %v2831_v46 = vadd.f32 1.0, %v3502_v38 }
0x1156   :  { %3503 = vrcp.f32 %v2831_v46 }
0x1160   :  { %v3504_v15 = vpop.eup %3503 }
0x1161   :  { %2834 = vst [vmem:[%s5161_s7] sm:$0xff] %v3504_v15 }

</bundles_post_ra>
